<compile_context>
chip_gen: v7x
topology: tpu7x:2x2x1
jax: 0.10.0
libtpu: 0.0.40
codegen_flags: <defaults>
</compile_context>

<pallas_src>
import jax
import jax.numpy as jnp
from jax import lax
from jax.experimental import pallas as pl
from jax.experimental.pallas import tpu as pltpu

_GROUP = 8                      # pooled positions packed per conv1 MXU row-group
_BATCH_BLOCK_CAP = 128          # samples per grid step (review: 128-256 range)
_VMEM_LIMIT = 32 * 1024 * 1024  # explicit scoped-VMEM limit (v5e default is 16 MiB)


def _round_up(x, m):
    return ((x + m - 1) // m) * m


def _choose_batch_block(b):
    # bt multiple of 16 (keeps conv1's grouped row-block a multiple of 8);
    # padding waste bounded by one block; keep >=2 grid steps when possible
    # so v7x's two TensorCores both get work on the "parallel" axis.
    rb = _round_up(b, 16)
    n = max(1, -(-rb // _BATCH_BLOCK_CAP))
    if n == 1 and rb > 16:
        n = 2
    bt = _round_up(-(-rb // n), 16)
    return bt, bt * n


# ---------------- Pallas kernels (hot path) ----------------

def _conv_pool_kernel(p_ref, w_ref, b_ref, o_ref):
    # p_ref: (rows, K)    bf16  pooled 4x4 windows (possibly group-packed)
    # w_ref: (K, 4*N)     bf16  conv weight embedded at the 4 pooling phases
    #                           (phase-major columns; block-diagonal if grouped)
    # b_ref: (1, N)       f32   bias (tiled per group if grouped)
    # o_ref: (rows, N)    bf16  conv + bias + ReLU + 2x2/2 max-pool
    z = jnp.dot(p_ref[...], w_ref[...], preferred_element_type=jnp.float32)
    n = o_ref.shape[-1]
    m = jnp.maximum(jnp.maximum(z[:, 0:n], z[:, n:2 * n]),
                    jnp.maximum(z[:, 2 * n:3 * n], z[:, 3 * n:4 * n]))
    o_ref[...] = jnp.maximum(m + b_ref[...], 0.0).astype(o_ref.dtype)


def _fc_kernel(x_ref, w_ref, b_ref, o_ref):
    # x_ref: (Bt, F) bf16, w_ref: (F, 10) bf16, b_ref: (1, 10) f32, o_ref: (Bt, 10) f32
    o_ref[...] = (jnp.dot(x_ref[...], w_ref[...],
                          preferred_element_type=jnp.float32)
                  + b_ref[...]).astype(o_ref.dtype)


# ---------------- pallas_call wrappers ----------------

def _conv_relu_pool(patches, w_e, bias, rows_blk):
    rows, k = patches.shape
    n4 = w_e.shape[1]
    n = n4 // 4
    return pl.pallas_call(
        _conv_pool_kernel,
        out_shape=jax.ShapeDtypeStruct((rows, n), jnp.bfloat16),
        grid=(rows // rows_blk,),
        in_specs=[
            pl.BlockSpec((rows_blk, k), lambda i: (i, 0)),
            pl.BlockSpec((k, n4), lambda i: (0, 0)),
            pl.BlockSpec((1, n), lambda i: (0, 0)),
        ],
        out_specs=pl.BlockSpec((rows_blk, n), lambda i: (i, 0)),
        compiler_params=pltpu.CompilerParams(
            dimension_semantics=("parallel",),
            vmem_limit_bytes=_VMEM_LIMIT),
    )(patches, w_e, bias)


def _fc(feat, wfp, bias, bt):
    b, f = feat.shape
    n_out = wfp.shape[1]
    return pl.pallas_call(
        _fc_kernel,
        out_shape=jax.ShapeDtypeStruct((b, n_out), jnp.float32),
        grid=(b // bt,),
        in_specs=[
            pl.BlockSpec((bt, f), lambda i: (i, 0)),
            pl.BlockSpec((f, n_out), lambda i: (0, 0)),
            pl.BlockSpec((1, n_out), lambda i: (0, 0)),
        ],
        out_specs=pl.BlockSpec((bt, n_out), lambda i: (i, 0)),
        compiler_params=pltpu.CompilerParams(
            dimension_semantics=("parallel",),
            vmem_limit_bytes=_VMEM_LIMIT),
    )(feat, wfp, bias)


# ---------------- XLA-side layout glue ----------------

def _pooled_patches(x_nhwc):
    # (B, H, W, C) -> (B*(H/2)*(W/2), 16*C) bf16.
    # Row = pooled output position (b, i, j); column = ((a*4 + b')*C + c) where
    # (a, b') indexes the 4x4 padded-input window covering that pooled position.
    b, h, w, c = x_nhwc.shape
    hp, wp = h // 2, w // 2
    xp = jnp.pad(x_nhwc, ((0, 0), (1, 1), (1, 1), (0, 0)))
    taps = [xp[:, a:a + h:2, bb:bb + w:2, :] for a in range(4) for bb in range(4)]
    t = jnp.stack(taps, axis=3)                       # (B, Hp, Wp, 16, C)
    return t.reshape(b * hp * wp, 16 * c).astype(jnp.bfloat16)


def _expand_conv_weight(w):
    # (Cout, Cin, 3, 3) -> (16*Cin, 4*Cout): rows match _pooled_patches columns,
    # column group q (width Cout) holds the 3x3 kernel embedded at pooling phase
    # (dy, dx), so one matmul yields all 4 pre-pool conv outputs per pooled pixel.
    cout, cin, _, _ = w.shape
    wp = jnp.transpose(w, (1, 2, 3, 0))               # (Cin, 3, 3, Cout)
    phases = [jnp.pad(wp, ((0, 0), (dy, 1 - dy), (dx, 1 - dx), (0, 0)))
              for dy in (0, 1) for dx in (0, 1)]      # each (Cin, 4, 4, Cout)
    we = jnp.stack(phases, axis=0)                    # (q, Cin, a, b, Cout)
    we = jnp.transpose(we, (2, 3, 1, 0, 4))           # (a, b, Cin, q, Cout)
    return we.reshape(16 * cin, 4 * cout).astype(jnp.bfloat16)


def prepare_params(params):
    # One-time (outside jit) weight re-layout.
    w1, b1, w2, b2, wf, bf = params
    g = _GROUP

    # Conv1: block-diagonal group-of-g expansion.
    #   W1g[g_r*16+t, p*(g*16) + g_c*16 + c] = w1e[t, p*16+c] iff g_r == g_c.
    # Columns are phase-major so the in-kernel pool-max is 4 aligned 128-wide
    # lane slices; output columns come out packed as (group, channel).
    w1e = _expand_conv_weight(w1)                     # (16, 64), cols (phase, c)
    w1e4 = w1e.reshape(16, 4, 16)                     # (tap, phase, c)
    eye = jnp.eye(g, dtype=w1e.dtype)
    w1g = jnp.einsum("gh,tpc->gtphc", eye, w1e4).reshape(g * 16, 4 * g * 16)
    b1g = jnp.tile(b1.astype(jnp.float32), g).reshape(1, g * 16)

    w2e = _expand_conv_weight(w2)                     # (256, 128)
    # FC columns permuted to the (h, w, c) flatten order the conv2 kernel emits
    # (PyTorch .view flattens in (c, h, w) order): wfp[n*32+c, k] = wf[k, c*49+n].
    wfp = jnp.transpose(wf.reshape(10, 32, 49), (2, 1, 0)).reshape(49 * 32, 10)
    return (w1g, b1g, w2e, b2.reshape(1, -1).astype(jnp.float32),
            wfp.astype(jnp.bfloat16), bf.reshape(1, -1).astype(jnp.float32))


def cnn_forward(x_nchw, prep):
    w1g, b1g, w2e, b2, wfp, bf = prep
    g = _GROUP
    b = x_nchw.shape[0]
    bt, bpad = _choose_batch_block(b)

    x = jnp.transpose(x_nchw, (0, 2, 3, 1))           # NCHW -> NHWC (Cin = 1)
    if bpad != b:
        x = jnp.pad(x, ((0, bpad - b), (0, 0), (0, 0), (0, 0)))

    # Conv1 (grouped, lane-dense): rows pack g pooled positions each.
    p1 = _pooled_patches(x)                            # (Bpad*196, 16)      bf16
    p1g = p1.reshape(bpad * 196 // g, g * 16)          # free row-major regroup
    h1 = _conv_relu_pool(p1g, w1g, b1g, bt * 196 // g) # (Bpad*196/g, 128)   bf16
    h1 = h1.reshape(bpad, 14, 14, 16)                  # free row-major reshape

    # Conv2.
    p2 = _pooled_patches(h1)                           # (Bpad*49, 256)      bf16
    h2 = _conv_relu_pool(p2, w2e, b2, bt * 49)         # (Bpad*49, 32)       bf16

    # FC (bf16 operands, f32 accumulation).
    feat = h2.reshape(bpad, 49 * 32)                   # free flatten, no transpose
    logits = _fc(feat, wfp, bf, bt)                    # (Bpad, 10)          f32
    return logits[:b]


# ---------------- Reference (pure JAX, PyTorch semantics) ----------------

def reference_forward(x_nchw, params):
    w1, b1, w2, b2, wf, bf = params

    def conv(x, w, b):
        y = lax.conv_general_dilated(x, w, (1, 1), ((1, 1), (1, 1)),
                                     dimension_numbers=("NCHW", "OIHW", "NCHW"),
                                     precision=lax.Precision.HIGHEST)
        return jax.nn.relu(y + b.reshape(1, -1, 1, 1))

    def pool(x):
        return lax.reduce_window(x, -jnp.inf, lax.max,
                                 (1, 1, 2, 2), (1, 1, 2, 2), "VALID")

    y = pool(conv(x_nchw, w1, b1))
    y = pool(conv(y, w2, b2))
    y = y.reshape(y.shape[0], -1)
    return jnp.dot(y, wf.T, precision=lax.Precision.HIGHEST) + bf


# ---------------- Deterministic parameter init (PyTorch-style) ----------------

def init_params(key):
    ks = jax.random.split(key, 6)

    def u(k, shape, fan_in):
        bound = 1.0 / jnp.sqrt(jnp.float32(fan_in))
        return jax.random.uniform(k, shape, jnp.float32, -bound, bound)

    w1 = u(ks[0], (16, 1, 3, 3), 1 * 9)
    b1 = u(ks[1], (16,), 1 * 9)
    w2 = u(ks[2], (32, 16, 3, 3), 16 * 9)
    b2 = u(ks[3], (32,), 16 * 9)
    wf = u(ks[4], (10, 32 * 7 * 7), 32 * 7 * 7)
    bf = u(ks[5], (10,), 32 * 7 * 7)
    return (w1, b1, w2, b2, wf, bf)


if __name__ == "__main__":
    key = jax.random.PRNGKey(0)
    kx, kp = jax.random.split(key)
    x = jax.random.normal(kx, (2, 1, 28, 28), jnp.float32)   # NCHW, 28x28 required by FC
    params = init_params(kp)
    prep = prepare_params(params)                             # one-time weight re-layout

    out = jax.jit(cnn_forward)(x, prep)
    out = jax.block_until_ready(out)

    ref = reference_forward(x, params)
    assert out.shape == (2, 10), out.shape
    max_err = jnp.max(jnp.abs(out - ref))
    # bf16 matmul operands / f32 accumulation vs f32-HIGHEST reference.
    assert jnp.allclose(out, ref, atol=2e-2, rtol=2e-2), ("mismatch", max_err)
    print("KERNEL_OK")
</pallas_src>

<mosaic_0001>
module attributes {stable_mosaic.version = 11 : i64} {
  func.func @_conv_pool_kernel(%arg0: i32, %arg1: memref<392x128xbf16, #tpu.memory_space<vmem>>, %arg2: memref<128x512xbf16, #tpu.memory_space<vmem>>, %arg3: memref<1x128xf32, #tpu.memory_space<vmem>>, %arg4: memref<392x128xbf16, #tpu.memory_space<vmem>>) attributes {dimension_semantics = [#tpu.dimension_semantics<parallel>], iteration_bounds = array<i64: 1>, scalar_prefetch = 0 : i64, scratch_operands = 0 : i64, tpu.core_type = #tpu.core_type<tc>, window_params = [{transform_indices = @transform_0, window_bounds = array<i64: 392, 128>}, {pipeline_mode = #tpu.pipeline_mode<synchronous>, transform_indices = @transform_1, window_bounds = array<i64: 128, 512>}, {pipeline_mode = #tpu.pipeline_mode<synchronous>, transform_indices = @transform_2, window_bounds = array<i64: 1, 128>}, {transform_indices = @transform_3, window_bounds = array<i64: 392, 128>}]} {
    %c0 = arith.constant 0 : index
    %c0_0 = arith.constant 0 : index
    %0 = vector.load %arg1[%c0, %c0_0] : memref<392x128xbf16, #tpu.memory_space<vmem>>, vector<392x128xbf16>
    %c0_1 = arith.constant 0 : index
    %c0_2 = arith.constant 0 : index
    %1 = vector.load %arg2[%c0_1, %c0_2] : memref<128x512xbf16, #tpu.memory_space<vmem>>, vector<128x512xbf16>
    %cst = arith.constant dense<0.000000e+00> : vector<392x512xf32>
    %2 = tpu.matmul %0, %1, %cst {dimension_numbers = #tpu.dot_dimension_numbers<[1], [0], [0], [1], [0, 0, 1, 1], [], []>} : vector<392x128xbf16>, vector<128x512xbf16>, vector<392x512xf32> -> vector<392x512xf32>
    %3 = vector.extract_strided_slice %2 {offsets = [0, 0], sizes = [392, 128], strides = [1, 1]} : vector<392x512xf32> to vector<392x128xf32>
    %4 = vector.extract_strided_slice %2 {offsets = [0, 128], sizes = [392, 128], strides = [1, 1]} : vector<392x512xf32> to vector<392x128xf32>
    %5 = arith.maximumf %3, %4 : vector<392x128xf32>
    %6 = vector.extract_strided_slice %2 {offsets = [0, 256], sizes = [392, 128], strides = [1, 1]} : vector<392x512xf32> to vector<392x128xf32>
    %7 = vector.extract_strided_slice %2 {offsets = [0, 384], sizes = [392, 128], strides = [1, 1]} : vector<392x512xf32> to vector<392x128xf32>
    %8 = arith.maximumf %6, %7 : vector<392x128xf32>
    %9 = arith.maximumf %5, %8 : vector<392x128xf32>
    %c0_3 = arith.constant 0 : index
    %c0_4 = arith.constant 0 : index
    %10 = vector.load %arg3[%c0_3, %c0_4] : memref<1x128xf32, #tpu.memory_space<vmem>>, vector<1x128xf32>
    %11 = vector.broadcast %10 : vector<1x128xf32> to vector<392x128xf32>
    %12 = arith.addf %9, %11 : vector<392x128xf32>
    %cst_5 = arith.constant 0.000000e+00 : f32
    %13 = vector.broadcast %cst_5 : f32 to vector<392x128xf32>
    %14 = arith.maximumf %12, %13 : vector<392x128xf32>
    %15 = arith.truncf %14 : vector<392x128xf32> to vector<392x128xbf16>
    %c0_6 = arith.constant 0 : index
    %c0_7 = arith.constant 0 : index
    %16 = vector.load %arg4[%c0_6, %c0_7] : memref<392x128xbf16, #tpu.memory_space<vmem>>, vector<392x128xbf16>
    tpu.vector_store %arg4[%c0_6, %c0_7], %15 {strides = array<i32>} : memref<392x128xbf16, #tpu.memory_space<vmem>>, vector<392x128xbf16>,
    return
  }
  func.func @transform_0(%arg0: i32) -> (i32, i32) {
    %c0_i32 = arith.constant 0 : i32
    %c0_i32_0 = arith.constant 0 : i32
    return %arg0, %c0_i32 : i32, i32
  }
  func.func @transform_1(%arg0: i32) -> (i32, i32) {
    %c0_i32 = arith.constant 0 : i32
    %c0_i32_0 = arith.constant 0 : i32
    %c0_i32_1 = arith.constant 0 : i32
    return %c0_i32, %c0_i32_0 : i32, i32
  }
  func.func @transform_2(%arg0: i32) -> (i32, i32) {
    %c0_i32 = arith.constant 0 : i32
    %c0_i32_0 = arith.constant 0 : i32
    %c0_i32_1 = arith.constant 0 : i32
    return %c0_i32, %c0_i32_0 : i32, i32
  }
  func.func @transform_3(%arg0: i32) -> (i32, i32) {
    %c0_i32 = arith.constant 0 : i32
    %c0_i32_0 = arith.constant 0 : i32
    return %arg0, %c0_i32 : i32, i32
  }
}

module attributes {stable_mosaic.version = 11 : i64} {
  func.func @_conv_pool_kernel(%arg0: i32, %arg1: memref<784x256xbf16, #tpu.memory_space<vmem>>, %arg2: memref<256x128xbf16, #tpu.memory_space<vmem>>, %arg3: memref<1x32xf32, #tpu.memory_space<vmem>>, %arg4: memref<784x32xbf16, #tpu.memory_space<vmem>>) attributes {dimension_semantics = [#tpu.dimension_semantics<parallel>], iteration_bounds = array<i64: 1>, scalar_prefetch = 0 : i64, scratch_operands = 0 : i64, tpu.core_type = #tpu.core_type<tc>, window_params = [{transform_indices = @transform_0, window_bounds = array<i64: 784, 256>}, {pipeline_mode = #tpu.pipeline_mode<synchronous>, transform_indices = @transform_1, window_bounds = array<i64: 256, 128>}, {pipeline_mode = #tpu.pipeline_mode<synchronous>, transform_indices = @transform_2, window_bounds = array<i64: 1, 32>}, {transform_indices = @transform_3, window_bounds = array<i64: 784, 32>}]} {
    %c0 = arith.constant 0 : index
    %c0_0 = arith.constant 0 : index
    %0 = vector.load %arg1[%c0, %c0_0] : memref<784x256xbf16, #tpu.memory_space<vmem>>, vector<784x256xbf16>
    %c0_1 = arith.constant 0 : index
    %c0_2 = arith.constant 0 : index
    %1 = vector.load %arg2[%c0_1, %c0_2] : memref<256x128xbf16, #tpu.memory_space<vmem>>, vector<256x128xbf16>
    %cst = arith.constant dense<0.000000e+00> : vector<784x128xf32>
    %2 = tpu.matmul %0, %1, %cst {dimension_numbers = #tpu.dot_dimension_numbers<[1], [0], [0], [1], [0, 0, 1, 1], [], []>} : vector<784x256xbf16>, vector<256x128xbf16>, vector<784x128xf32> -> vector<784x128xf32>
    %3 = vector.extract_strided_slice %2 {offsets = [0, 0], sizes = [784, 32], strides = [1, 1]} : vector<784x128xf32> to vector<784x32xf32>
    %4 = vector.extract_strided_slice %2 {offsets = [0, 32], sizes = [784, 32], strides = [1, 1]} : vector<784x128xf32> to vector<784x32xf32>
    %5 = arith.maximumf %3, %4 : vector<784x32xf32>
    %6 = vector.extract_strided_slice %2 {offsets = [0, 64], sizes = [784, 32], strides = [1, 1]} : vector<784x128xf32> to vector<784x32xf32>
    %7 = vector.extract_strided_slice %2 {offsets = [0, 96], sizes = [784, 32], strides = [1, 1]} : vector<784x128xf32> to vector<784x32xf32>
    %8 = arith.maximumf %6, %7 : vector<784x32xf32>
    %9 = arith.maximumf %5, %8 : vector<784x32xf32>
    %c0_3 = arith.constant 0 : index
    %c0_4 = arith.constant 0 : index
    %10 = vector.load %arg3[%c0_3, %c0_4] : memref<1x32xf32, #tpu.memory_space<vmem>>, vector<1x32xf32>
    %11 = vector.broadcast %10 : vector<1x32xf32> to vector<784x32xf32>
    %12 = arith.addf %9, %11 : vector<784x32xf32>
    %cst_5 = arith.constant 0.000000e+00 : f32
    %13 = vector.broadcast %cst_5 : f32 to vector<784x32xf32>
    %14 = arith.maximumf %12, %13 : vector<784x32xf32>
    %15 = arith.truncf %14 : vector<784x32xf32> to vector<784x32xbf16>
    %c0_6 = arith.constant 0 : index
    %c0_7 = arith.constant 0 : index
    %16 = vector.load %arg4[%c0_6, %c0_7] : memref<784x32xbf16, #tpu.memory_space<vmem>>, vector<784x32xbf16>
    tpu.vector_store %arg4[%c0_6, %c0_7], %15 {strides = array<i32>} : memref<784x32xbf16, #tpu.memory_space<vmem>>, vector<784x32xbf16>,
    return
  }
  func.func @transform_0(%arg0: i32) -> (i32, i32) {
    %c0_i32 = arith.constant 0 : i32
    %c0_i32_0 = arith.constant 0 : i32
    return %arg0, %c0_i32 : i32, i32
  }
  func.func @transform_1(%arg0: i32) -> (i32, i32) {
    %c0_i32 = arith.constant 0 : i32
    %c0_i32_0 = arith.constant 0 : i32
    %c0_i32_1 = arith.constant 0 : i32
    return %c0_i32, %c0_i32_0 : i32, i32
  }
  func.func @transform_2(%arg0: i32) -> (i32, i32) {
    %c0_i32 = arith.constant 0 : i32
    %c0_i32_0 = arith.constant 0 : i32
    %c0_i32_1 = arith.constant 0 : i32
    return %c0_i32, %c0_i32_0 : i32, i32
  }
  func.func @transform_3(%arg0: i32) -> (i32, i32) {
    %c0_i32 = arith.constant 0 : i32
    %c0_i32_0 = arith.constant 0 : i32
    return %arg0, %c0_i32 : i32, i32
  }
}

module attributes {stable_mosaic.version = 11 : i64} {
  func.func @_fc_kernel(%arg0: i32, %arg1: memref<16x1568xbf16, #tpu.memory_space<vmem>>, %arg2: memref<1568x10xbf16, #tpu.memory_space<vmem>>, %arg3: memref<1x10xf32, #tpu.memory_space<vmem>>, %arg4: memref<16x10xf32, #tpu.memory_space<vmem>>) attributes {dimension_semantics = [#tpu.dimension_semantics<parallel>], iteration_bounds = array<i64: 1>, scalar_prefetch = 0 : i64, scratch_operands = 0 : i64, tpu.core_type = #tpu.core_type<tc>, window_params = [{transform_indices = @transform_0, window_bounds = array<i64: 16, 1568>}, {pipeline_mode = #tpu.pipeline_mode<synchronous>, transform_indices = @transform_1, window_bounds = array<i64: 1568, 10>}, {pipeline_mode = #tpu.pipeline_mode<synchronous>, transform_indices = @transform_2, window_bounds = array<i64: 1, 10>}, {transform_indices = @transform_3, window_bounds = array<i64: 16, 10>}]} {
    %c0 = arith.constant 0 : index
    %c0_0 = arith.constant 0 : index
    %0 = vector.load %arg1[%c0, %c0_0] : memref<16x1568xbf16, #tpu.memory_space<vmem>>, vector<16x1568xbf16>
    %c0_1 = arith.constant 0 : index
    %c0_2 = arith.constant 0 : index
    %1 = vector.load %arg2[%c0_1, %c0_2] : memref<1568x10xbf16, #tpu.memory_space<vmem>>, vector<1568x10xbf16>
    %cst = arith.constant dense<0.000000e+00> : vector<16x10xf32>
    %2 = tpu.matmul %0, %1, %cst {dimension_numbers = #tpu.dot_dimension_numbers<[1], [0], [0], [1], [0, 0, 1, 1], [], []>} : vector<16x1568xbf16>, vector<1568x10xbf16>, vector<16x10xf32> -> vector<16x10xf32>
    %c0_3 = arith.constant 0 : index
    %c0_4 = arith.constant 0 : index
    %3 = vector.load %arg3[%c0_3, %c0_4] : memref<1x10xf32, #tpu.memory_space<vmem>>, vector<1x10xf32>
    %4 = vector.broadcast %3 : vector<1x10xf32> to vector<16x10xf32>
    %5 = arith.addf %2, %4 : vector<16x10xf32>
    %c0_5 = arith.constant 0 : index
    %c0_6 = arith.constant 0 : index
    %6 = vector.load %arg4[%c0_5, %c0_6] : memref<16x10xf32, #tpu.memory_space<vmem>>, vector<16x10xf32>
    tpu.vector_store %arg4[%c0_5, %c0_6], %5 {strides = array<i32>} : memref<16x10xf32, #tpu.memory_space<vmem>>, vector<16x10xf32>,
    return
  }
  func.func @transform_0(%arg0: i32) -> (i32, i32) {
    %c0_i32 = arith.constant 0 : i32
    %c0_i32_0 = arith.constant 0 : i32
    return %arg0, %c0_i32 : i32, i32
  }
  func.func @transform_1(%arg0: i32) -> (i32, i32) {
    %c0_i32 = arith.constant 0 : i32
    %c0_i32_0 = arith.constant 0 : i32
    %c0_i32_1 = arith.constant 0 : i32
    return %c0_i32, %c0_i32_0 : i32, i32
  }
  func.func @transform_2(%arg0: i32) -> (i32, i32) {
    %c0_i32 = arith.constant 0 : i32
    %c0_i32_0 = arith.constant 0 : i32
    %c0_i32_1 = arith.constant 0 : i32
    return %c0_i32, %c0_i32_0 : i32, i32
  }
  func.func @transform_3(%arg0: i32) -> (i32, i32) {
    %c0_i32 = arith.constant 0 : i32
    %c0_i32_0 = arith.constant 0 : i32
    return %arg0, %c0_i32 : i32, i32
  }
}

</mosaic_0001>

<bundles_post_ra>
// kernel: cnn_forward.3
= control target key start
LH: loop header
LB: loop body
LE: loop exit
PB: predicated region body
PF: predicated region fallthrough
CT: control target
= control target key end

     0   :  { %v1841_v1 = vmov 0   ;;  %s2212_s1 = inlined_call_operand.vmem [shape: bf16[128,512], index: 1, kind: input, shape index: {}]   ;;  %s2213_s0 = inlined_call_operand.vmem [shape: bf16[392,128], index: 0, kind: input, shape index: {}]   ;;  %s2214_s2 = inlined_call_operand.vmem [shape: f32[1,128], index: 2, kind: input, shape index: {}]   ;;  %s2215_s3 = inlined_call_operand.vmem [shape: bf16[392,128], index: 3, kind: output, shape index: {}]  }
   0x1   :  { %v1768_v0 = vld [vmem:[%s2212_s1 + $0x4] ss:$16 sps:$4 sm:$0xff]   ;;  %436 = vmatprep.mubr.bf16.mxu0 %v1841_v1  ;;  %717 = vmatprep.mubr.bf16.mxu1 %v1841_v1  ;;  %v1770_v2 = vld [vmem:[%s2212_s1 + $0xc] ss:$16 sps:$4 sm:$0xff]   ;;  %v1772_v3 = vld [vmem:[%s2212_s1] ss:$16 sps:$4 sm:$0xff]  }
   0x2   :  { %404 = vmatprep.subr.bf16.mxu0 %v1768_v0  ;;  %v1773_v4 = vld [vmem:[%s2212_s1 + $0x8] ss:$16 sps:$4 sm:$0xff]   ;;  %685 = vmatprep.subr.bf16.mxu1 %v1770_v2  ;;  %v1774_v5 = vld [vmem:[%s2212_s1 + $0x24] ss:$16 sps:$4 sm:$0xff]   ;;  %v1776_v6 = vld [vmem:[%s2212_s1 + $0x2c] ss:$16 sps:$4 sm:$0xff]  }
   0x3   :  { %405 = vmatpush1.bf16.msra.mxu0 %v1772_v3  ;;  %686 = vmatpush1.bf16.msra.mxu1 %v1773_v4  ;;  %v1778_v7 = vld [vmem:[%s2212_s1 + $0x20] ss:$16 sps:$4 sm:$0xff]   ;;  %v1779_v8 = vld [vmem:[%s2212_s1 + $0x28] ss:$16 sps:$4 sm:$0xff]   ;;  %v1780_v9 = vld [vmem:[%s2212_s1 + $0x44] ss:$16 sps:$4 sm:$0xff]  }
   0x4   :  { %406 = vmatprep.subr.bf16.mxu0 %v1774_v5  ;;  %687 = vmatprep.subr.bf16.mxu1 %v1776_v6  ;;  %v1782_v10 = vld [vmem:[%s2212_s1 + $0x4c] ss:$16 sps:$4 sm:$0xff]   ;;  %v1784_v11 = vld [vmem:[%s2212_s1 + $0x40] ss:$16 sps:$4 sm:$0xff]   ;;  %v1785_v12 = vld [vmem:[%s2212_s1 + $0x48] ss:$16 sps:$4 sm:$0xff]  }
   0x5   :  { %v1786_v13 = vld [vmem:[%s2212_s1 + $0x64] ss:$16 sps:$4 sm:$0xff]   ;;  %v1788_v14 = vld [vmem:[%s2212_s1 + $0x6c] ss:$16 sps:$4 sm:$0xff]   ;;  %v1790_v15 = vld [vmem:[%s2212_s1 + $0x60] ss:$16 sps:$4 sm:$0xff]  }
   0x6   :  { %v1791_v16 = vld [vmem:[%s2212_s1 + $0x68] ss:$16 sps:$4 sm:$0xff]   ;;  %v1792_v17 = vld [vmem:[%s2212_s1 + $0x84] ss:$16 sps:$4 sm:$0xff]   ;;  %v1794_v18 = vld [vmem:[%s2212_s1 + $0x8c] ss:$16 sps:$4 sm:$0xff]  }
   0x7   :  { %407 = vmatpush1.bf16.msra.mxu0 %v1778_v7  ;;  %688 = vmatpush1.bf16.msra.mxu1 %v1779_v8  ;;  %v1796_v19 = vld [vmem:[%s2212_s1 + $0x80] ss:$16 sps:$4 sm:$0xff]   ;;  %v1797_v20 = vld [vmem:[%s2212_s1 + $0x88] ss:$16 sps:$4 sm:$0xff]   ;;  %v1798_v21 = vld [vmem:[%s2212_s1 + $0xa4] ss:$16 sps:$4 sm:$0xff]  }
   0x8   :  { %408 = vmatprep.subr.bf16.mxu0 %v1780_v9  ;;  %689 = vmatprep.subr.bf16.mxu1 %v1782_v10  ;;  %v1800_v22 = vld [vmem:[%s2212_s1 + $0xac] ss:$16 sps:$4 sm:$0xff]   ;;  %v1802_v23 = vld [vmem:[%s2212_s1 + $0xa0] ss:$16 sps:$4 sm:$0xff]   ;;  %v1803_v24 = vld [vmem:[%s2212_s1 + $0xa8] ss:$16 sps:$4 sm:$0xff]  }
   0x9   :  { %v1804_v25 = vld [vmem:[%s2212_s1 + $0xc4] ss:$16 sps:$4 sm:$0xff]   ;;  %v1806_v26 = vld [vmem:[%s2212_s1 + $0xcc] ss:$16 sps:$4 sm:$0xff]   ;;  %v1808_v27 = vld [vmem:[%s2212_s1 + $0xc0] ss:$16 sps:$4 sm:$0xff]  }
   0xa   :  { %v1809_v28 = vld [vmem:[%s2212_s1 + $0xc8] ss:$16 sps:$4 sm:$0xff]   ;;  %v1810_v29 = vld [vmem:[%s2212_s1 + $0xe4] ss:$16 sps:$4 sm:$0xff]   ;;  %v1812_v30 = vld [vmem:[%s2212_s1 + $0xec] ss:$16 sps:$4 sm:$0xff]  }
   0xb   :  { %409 = vmatpush1.bf16.msra.mxu0 %v1784_v11  ;;  %690 = vmatpush1.bf16.msra.mxu1 %v1785_v12  ;;  %v1814_v31 = vld [vmem:[%s2212_s1 + $0xe0] ss:$16 sps:$4 sm:$0xff]   ;;  %v1815_v32 = vld [vmem:[%s2212_s1 + $0xe8] ss:$16 sps:$4 sm:$0xff]  }
   0xc   :  { %410 = vmatprep.subr.bf16.mxu0 %v1786_v13  ;;  %691 = vmatprep.subr.bf16.mxu1 %v1788_v14  ;;  %v1816_v33 = vld [vmem:[%s2213_s0] sm:$0xff]   ;;  %v1817_v34 = vld [vmem:[%s2213_s0 + $0x8] sm:$0xff]   ;;  %v1818_v35 = vld [vmem:[%s2213_s0 + $0x10] sm:$0xff]  }
   0xd   :  { %v1819_v36 = vld [vmem:[%s2213_s0 + $0x18] sm:$0xff]   ;;  %v1820_v37 = vld [vmem:[%s2213_s0 + $0x20] sm:$0xff]   ;;  %v1821_v38 = vld [vmem:[%s2213_s0 + $0x28] sm:$0xff]  }
   0xe   :  { %v1822_v39 = vld [vmem:[%s2213_s0 + $0x30] sm:$0xff]   ;;  %v1823_v40 = vld [vmem:[%s2213_s0 + $0x38] sm:$0xff]   ;;  %v1824_v41 = vld [vmem:[%s2213_s0 + $0x40] sm:$0xff]  }
   0xf   :  { %411 = vmatpush1.bf16.msra.mxu0 %v1790_v15  ;;  %692 = vmatpush1.bf16.msra.mxu1 %v1791_v16  ;;  %v1825_v42 = vld [vmem:[%s2213_s0 + $0x48] sm:$0xff]   ;;  %v1826_v43 = vld [vmem:[%s2213_s0 + $0x50] sm:$0xff]   ;;  %v1827_v44 = vld [vmem:[%s2213_s0 + $0x58] sm:$0xff]  }
  0x10   :  { %412 = vmatprep.subr.bf16.mxu0 %v1792_v17  ;;  %693 = vmatprep.subr.bf16.mxu1 %v1794_v18  ;;  %v1828_v45 = vld [vmem:[%s2213_s0 + $0x60] sm:$0xff]   ;;  %v1829_v46 = vld [vmem:[%s2213_s0 + $0x68] sm:$0xff]   ;;  %v1830_v47 = vld [vmem:[%s2213_s0 + $0x70] sm:$0xff]  }
  0x11   :  { %v1831_v48 = vld [vmem:[%s2213_s0 + $0x78] sm:$0xff]   ;;  %v1832_v49 = vld [vmem:[%s2213_s0 + $0x80] sm:$0xff]   ;;  %v1833_v50 = vld [vmem:[%s2213_s0 + $0x88] sm:$0xff]  }
  0x12   :  { %v1834_v51 = vld [vmem:[%s2213_s0 + $0x90] sm:$0xff]   ;;  %v1835_v52 = vld [vmem:[%s2213_s0 + $0x98] sm:$0xff]   ;;  %v1836_v53 = vld [vmem:[%s2213_s0 + $0xa0] sm:$0xff]  }
  0x13   :  { %413 = vmatpush1.bf16.msra.mxu0 %v1796_v19  ;;  %694 = vmatpush1.bf16.msra.mxu1 %v1797_v20  ;;  %v1837_v54 = vld [vmem:[%s2213_s0 + $0xa8] sm:$0xff]   ;;  %v1838_v55 = vld [vmem:[%s2213_s0 + $0xb0] sm:$0xff]   ;;  %v1839_v56 = vld [vmem:[%s2213_s0 + $0xb8] sm:$0xff]  }
  0x14   :  { %414 = vmatprep.subr.bf16.mxu0 %v1798_v21  ;;  %695 = vmatprep.subr.bf16.mxu1 %v1800_v22  ;;  %v1840_v57 = vld [vmem:[%s2213_s0 + $0xc0] ss:$0 sps:$4 sm:$0xff]  }
  0x15   :  { %v2086_v3 = vld [vmem:[%s2214_s2] ss:$0 sm:$0xff] }
  0x17   :  { %415 = vmatpush1.bf16.msra.mxu0 %v1802_v23  ;;  %696 = vmatpush1.bf16.msra.mxu1 %v1803_v24 }
  0x18   :  { %416 = vmatprep.subr.bf16.mxu0 %v1804_v25  ;;  %697 = vmatprep.subr.bf16.mxu1 %v1806_v26 }
  0x1b   :  { %417 = vmatpush1.bf16.msra.mxu0 %v1808_v27  ;;  %698 = vmatpush1.bf16.msra.mxu1 %v1809_v28 }
  0x1c   :  { %418 = vmatprep.subr.bf16.mxu0 %v1810_v29  ;;  %699 = vmatprep.subr.bf16.mxu1 %v1812_v30 }
  0x1f   :  { %419 = vmatpush1.bf16.msra.mxu0 %v1814_v31  ;;  %700 = vmatpush1.bf16.msra.mxu1 %v1815_v32 }
  0x22   :  { %437 = vmatmul.mubr.bf16.vlgmr.msra.gmra.mrb[0].mxu0 %v1816_v33  ;;  %718 = vmatmul.mubr.bf16.vlgmr.msra.gmra.mrb[0].mxu1 %v1816_v33 }
  0x23   :  { %446 = vmatprep.mubr.bf16.mxu0 %v1841_v1  ;;  %727 = vmatprep.mubr.bf16.mxu1 %v1841_v1 }
  0x2a   :  { %447 = vmatmul.mubr.bf16.gmra.mrb[4].mxu0 %v1817_v34  ;;  %728 = vmatmul.mubr.bf16.gmra.mrb[4].mxu1 %v1817_v34 }
  0x2b   :  { %456 = vmatprep.mubr.bf16.mxu0 %v1841_v1  ;;  %737 = vmatprep.mubr.bf16.mxu1 %v1841_v1 }
  0x32   :  { %457 = vmatmul.mubr.bf16.gmra.mrb[8].mxu0 %v1818_v35  ;;  %738 = vmatmul.mubr.bf16.gmra.mrb[8].mxu1 %v1818_v35 }
  0x33   :  { %466 = vmatprep.mubr.bf16.mxu0 %v1841_v1  ;;  %747 = vmatprep.mubr.bf16.mxu1 %v1841_v1 }
  0x3a   :  { %467 = vmatmul.mubr.bf16.gmra.mrb[12].mxu0 %v1819_v36  ;;  %748 = vmatmul.mubr.bf16.gmra.mrb[12].mxu1 %v1819_v36 }
  0x3b   :  { %476 = vmatprep.mubr.bf16.mxu0 %v1841_v1  ;;  %757 = vmatprep.mubr.bf16.mxu1 %v1841_v1 }
  0x42   :  { %477 = vmatmul.mubr.bf16.gmra.mrb[16].mxu0 %v1820_v37  ;;  %758 = vmatmul.mubr.bf16.gmra.mrb[16].mxu1 %v1820_v37 }
  0x43   :  { %486 = vmatprep.mubr.bf16.mxu0 %v1841_v1  ;;  %767 = vmatprep.mubr.bf16.mxu1 %v1841_v1 }
  0x4a   :  { %487 = vmatmul.mubr.bf16.gmra.mrb[20].mxu0 %v1821_v38  ;;  %768 = vmatmul.mubr.bf16.gmra.mrb[20].mxu1 %v1821_v38 }
  0x4b   :  { %496 = vmatprep.mubr.bf16.mxu0 %v1841_v1  ;;  %777 = vmatprep.mubr.bf16.mxu1 %v1841_v1 }
  0x52   :  { %497 = vmatmul.mubr.bf16.gmra.mrb[24].mxu0 %v1822_v39  ;;  %778 = vmatmul.mubr.bf16.gmra.mrb[24].mxu1 %v1822_v39 }
  0x53   :  { %506 = vmatprep.mubr.bf16.mxu0 %v1841_v1  ;;  %787 = vmatprep.mubr.bf16.mxu1 %v1841_v1 }
  0x5a   :  { %507 = vmatmul.mubr.bf16.gmra.mrb[28].mxu0 %v1823_v40  ;;  %788 = vmatmul.mubr.bf16.gmra.mrb[28].mxu1 %v1823_v40 }
  0x5b   :  { %516 = vmatprep.mubr.bf16.mxu0 %v1841_v1  ;;  %797 = vmatprep.mubr.bf16.mxu1 %v1841_v1 }
  0x62   :  { %517 = vmatmul.mubr.bf16.gmra.mrb[32].mxu0 %v1824_v41  ;;  %798 = vmatmul.mubr.bf16.gmra.mrb[32].mxu1 %v1824_v41 }
  0x63   :  { %526 = vmatprep.mubr.bf16.mxu0 %v1841_v1  ;;  %807 = vmatprep.mubr.bf16.mxu1 %v1841_v1 }
  0x6a   :  { %527 = vmatmul.mubr.bf16.gmra.mrb[36].mxu0 %v1825_v42  ;;  %808 = vmatmul.mubr.bf16.gmra.mrb[36].mxu1 %v1825_v42 }
  0x6b   :  { %536 = vmatprep.mubr.bf16.mxu0 %v1841_v1  ;;  %817 = vmatprep.mubr.bf16.mxu1 %v1841_v1 }
  0x72   :  { %537 = vmatmul.mubr.bf16.gmra.mrb[40].mxu0 %v1826_v43  ;;  %818 = vmatmul.mubr.bf16.gmra.mrb[40].mxu1 %v1826_v43 }
  0x73   :  { %546 = vmatprep.mubr.bf16.mxu0 %v1841_v1  ;;  %827 = vmatprep.mubr.bf16.mxu1 %v1841_v1 }
  0x7a   :  { %547 = vmatmul.mubr.bf16.gmra.mrb[44].mxu0 %v1827_v44  ;;  %828 = vmatmul.mubr.bf16.gmra.mrb[44].mxu1 %v1827_v44 }
  0x7b   :  { %556 = vmatprep.mubr.bf16.mxu0 %v1841_v1  ;;  %837 = vmatprep.mubr.bf16.mxu1 %v1841_v1 }
  0x82   :  { %557 = vmatmul.mubr.bf16.gmra.mrb[48].mxu0 %v1828_v45  ;;  %838 = vmatmul.mubr.bf16.gmra.mrb[48].mxu1 %v1828_v45 }
  0x83   :  { %566 = vmatprep.mubr.bf16.mxu0 %v1841_v1  ;;  %847 = vmatprep.mubr.bf16.mxu1 %v1841_v1 }
  0x8a   :  { %567 = vmatmul.mubr.bf16.gmra.mrb[52].mxu0 %v1829_v46  ;;  %848 = vmatmul.mubr.bf16.gmra.mrb[52].mxu1 %v1829_v46 }
  0x8b   :  { %576 = vmatprep.mubr.bf16.mxu0 %v1841_v1  ;;  %857 = vmatprep.mubr.bf16.mxu1 %v1841_v1 }
  0x92   :  { %577 = vmatmul.mubr.bf16.gmra.mrb[56].mxu0 %v1830_v47  ;;  %858 = vmatmul.mubr.bf16.gmra.mrb[56].mxu1 %v1830_v47 }
  0x93   :  { %586 = vmatprep.mubr.bf16.mxu0 %v1841_v1  ;;  %867 = vmatprep.mubr.bf16.mxu1 %v1841_v1 }
  0x9a   :  { %587 = vmatmul.mubr.bf16.gmra.mrb[60].mxu0 %v1831_v48  ;;  %868 = vmatmul.mubr.bf16.gmra.mrb[60].mxu1 %v1831_v48 }
  0x9b   :  { %596 = vmatprep.mubr.bf16.mxu0 %v1841_v1  ;;  %877 = vmatprep.mubr.bf16.mxu1 %v1841_v1 }
  0xa2   :  { %597 = vmatmul.mubr.bf16.gmra.mrb[64].mxu0 %v1832_v49  ;;  %878 = vmatmul.mubr.bf16.gmra.mrb[64].mxu1 %v1832_v49 }
  0xa3   :  { %606 = vmatprep.mubr.bf16.mxu0 %v1841_v1  ;;  %887 = vmatprep.mubr.bf16.mxu1 %v1841_v1 }
  0xaa   :  { %607 = vmatmul.mubr.bf16.gmra.mrb[68].mxu0 %v1833_v50  ;;  %888 = vmatmul.mubr.bf16.gmra.mrb[68].mxu1 %v1833_v50 }
  0xab   :  { %616 = vmatprep.mubr.bf16.mxu0 %v1841_v1  ;;  %897 = vmatprep.mubr.bf16.mxu1 %v1841_v1 }
  0xb2   :  { %617 = vmatmul.mubr.bf16.gmra.mrb[72].mxu0 %v1834_v51  ;;  %898 = vmatmul.mubr.bf16.gmra.mrb[72].mxu1 %v1834_v51 }
  0xb3   :  { %626 = vmatprep.mubr.bf16.mxu0 %v1841_v1  ;;  %907 = vmatprep.mubr.bf16.mxu1 %v1841_v1 }
  0xba   :  { %627 = vmatmul.mubr.bf16.gmra.mrb[76].mxu0 %v1835_v52  ;;  %908 = vmatmul.mubr.bf16.gmra.mrb[76].mxu1 %v1835_v52 }
  0xbb   :  { %636 = vmatprep.mubr.bf16.mxu0 %v1841_v1  ;;  %917 = vmatprep.mubr.bf16.mxu1 %v1841_v1 }
  0xc2   :  { %637 = vmatmul.mubr.bf16.gmra.mrb[80].mxu0 %v1836_v53  ;;  %918 = vmatmul.mubr.bf16.gmra.mrb[80].mxu1 %v1836_v53 }
  0xc3   :  { %646 = vmatprep.mubr.bf16.mxu0 %v1841_v1  ;;  %927 = vmatprep.mubr.bf16.mxu1 %v1841_v1 }
  0xca   :  { %647 = vmatmul.mubr.bf16.gmra.mrb[84].mxu0 %v1837_v54  ;;  %928 = vmatmul.mubr.bf16.gmra.mrb[84].mxu1 %v1837_v54 }
  0xcb   :  { %656 = vmatprep.mubr.bf16.mxu0 %v1841_v1  ;;  %937 = vmatprep.mubr.bf16.mxu1 %v1841_v1 }
  0xd2   :  { %657 = vmatmul.mubr.bf16.gmra.mrb[88].mxu0 %v1838_v55  ;;  %938 = vmatmul.mubr.bf16.gmra.mrb[88].mxu1 %v1838_v55 }
  0xd3   :  { %666 = vmatprep.mubr.bf16.mxu0 %v1841_v1  ;;  %947 = vmatprep.mubr.bf16.mxu1 %v1841_v1 }
  0xda   :  { %667 = vmatmul.mubr.bf16.gmra.mrb[92].mxu0 %v1839_v56  ;;  %948 = vmatmul.mubr.bf16.gmra.mrb[92].mxu1 %v1839_v56 }
  0xdb   :  { %676 = vmatprep.mubr.bf16.mxu0 %v1841_v1  ;;  %957 = vmatprep.mubr.bf16.mxu1 %v1841_v1 }
  0xe2   :  { %677 = vmatmul.mubr.bf16.gmra.mrb[96].mxu0 %v1840_v57  ;;  %958 = vmatmul.mubr.bf16.gmra.mrb[96].mxu1 %v1840_v57 }
  0xf5   :  { %v438_v58 = vpop.f32.mrb[0].mxu0  ;;  %v719_v59 = vpop.f32.mrb[0].mxu1 }
  0xf6   :  { %v440_v60 = vpop.f32.mrb[1].mxu0  ;;  %v721_v61 = vpop.f32.mrb[1].mxu1 }
  0xf7   :  { %v966_v62 = vmax.f32 %v438_v58, %v440_v60  ;;  %v1015_v63 = vmax.f32 %v719_v59, %v721_v61  ;;  %v442_v0 = vpop.f32.mrb[2].mxu0  ;;  %v723_v2 = vpop.f32.mrb[2].mxu1 }
  0xf8   :  { %v444_v1 = vpop.f32.mrb[3].mxu0  ;;  %v725_v4 = vpop.f32.mrb[3].mxu1 }
  0xf9   :  { %v1064_v5 = vmax.f32 %v966_v62, %v1015_v63  ;;  %v967_v6 = vmax.f32 %v442_v0, %v444_v1  ;;  %v1016_v7 = vmax.f32 %v723_v2, %v725_v4 }
  0xfb   :  { %v1120_v8 = vadd.f32 %v2086_v3, %v1064_v5  ;;  %v1065_v9 = vmax.f32 %v967_v6, %v1016_v7 }
  0xfd   :  { %v1121_v10 = vadd.f32 %v2086_v3, %v1065_v9  ;;  %v448_v11 = vpop.f32.mrb[4].mxu0  ;;  %v729_v12 = vpop.f32.mrb[4].mxu1  ;;  %v1169_v15 = vmax.f32 %v1120_v8, 0.0 }
  0xfe   :  { %v450_v13 = vpop.f32.mrb[5].mxu0  ;;  %v731_v14 = vpop.f32.mrb[5].mxu1 }
  0xff   :  { %v1170_v16 = vmax.f32 %v1121_v10, 0.0  ;;  %v968_v17 = vmax.f32 %v448_v11, %v450_v13  ;;  %v1017_v18 = vmax.f32 %v729_v12, %v731_v14  ;;  %v452_v19 = vpop.f32.mrb[6].mxu0  ;;  %v733_v20 = vpop.f32.mrb[6].mxu1 }
 0x100   :  { %v454_v21 = vpop.f32.mrb[7].mxu0  ;;  %v735_v22 = vpop.f32.mrb[7].mxu1 }
 0x101   :  { %v1627_v23 = vpack.c.bf16 %v1170_v16, %v1169_v15  ;;  %v1066_v24 = vmax.f32 %v968_v17, %v1017_v18  ;;  %v969_v25 = vmax.f32 %v452_v19, %v454_v21  ;;  %v1018_v26 = vmax.f32 %v733_v20, %v735_v22 }
 0x103   :  { %1628 = vst [vmem:[%s2215_s3] sm:$0xff] %v1627_v23   ;;  %v1122_v27 = vadd.f32 %v2086_v3, %v1066_v24  ;;  %v1067_v28 = vmax.f32 %v969_v25, %v1018_v26 }
 0x105   :  { %v1123_v29 = vadd.f32 %v2086_v3, %v1067_v28  ;;  %v458_v30 = vpop.f32.mrb[8].mxu0  ;;  %v739_v31 = vpop.f32.mrb[8].mxu1  ;;  %v1171_v34 = vmax.f32 %v1122_v27, 0.0 }
 0x106   :  { %v460_v32 = vpop.f32.mrb[9].mxu0  ;;  %v741_v33 = vpop.f32.mrb[9].mxu1 }
 0x107   :  { %v1172_v35 = vmax.f32 %v1123_v29, 0.0  ;;  %v970_v36 = vmax.f32 %v458_v30, %v460_v32  ;;  %v1019_v37 = vmax.f32 %v739_v31, %v741_v33  ;;  %v462_v38 = vpop.f32.mrb[10].mxu0  ;;  %v743_v39 = vpop.f32.mrb[10].mxu1 }
 0x108   :  { %v464_v40 = vpop.f32.mrb[11].mxu0  ;;  %v745_v41 = vpop.f32.mrb[11].mxu1 }
 0x109   :  { %v1632_v42 = vpack.c.bf16 %v1172_v35, %v1171_v34  ;;  %v1068_v43 = vmax.f32 %v970_v36, %v1019_v37  ;;  %v971_v44 = vmax.f32 %v462_v38, %v464_v40  ;;  %v1020_v45 = vmax.f32 %v743_v39, %v745_v41 }
 0x10b   :  { %1744 = vst [vmem:[%s2215_s3 + $0x8] sm:$0xff] %v1632_v42   ;;  %v1124_v46 = vadd.f32 %v2086_v3, %v1068_v43  ;;  %v1069_v47 = vmax.f32 %v971_v44, %v1020_v45 }
 0x10d   :  { %v1125_v48 = vadd.f32 %v2086_v3, %v1069_v47  ;;  %v468_v49 = vpop.f32.mrb[12].mxu0  ;;  %v749_v50 = vpop.f32.mrb[12].mxu1  ;;  %v1173_v53 = vmax.f32 %v1124_v46, 0.0 }
 0x10e   :  { %v470_v51 = vpop.f32.mrb[13].mxu0  ;;  %v751_v52 = vpop.f32.mrb[13].mxu1 }
 0x10f   :  { %v1174_v54 = vmax.f32 %v1125_v48, 0.0  ;;  %v972_v55 = vmax.f32 %v468_v49, %v470_v51  ;;  %v1021_v56 = vmax.f32 %v749_v50, %v751_v52  ;;  %v472_v57 = vpop.f32.mrb[14].mxu0  ;;  %v753_v58 = vpop.f32.mrb[14].mxu1 }
 0x110   :  { %v474_v59 = vpop.f32.mrb[15].mxu0  ;;  %v755_v60 = vpop.f32.mrb[15].mxu1 }
 0x111   :  { %v1637_v61 = vpack.c.bf16 %v1174_v54, %v1173_v53  ;;  %v1070_v62 = vmax.f32 %v972_v55, %v1021_v56  ;;  %v973_v63 = vmax.f32 %v472_v57, %v474_v59  ;;  %v1022_v0 = vmax.f32 %v753_v58, %v755_v60 }
 0x113   :  { %1745 = vst [vmem:[%s2215_s3 + $0x10] sm:$0xff] %v1637_v61   ;;  %v1126_v2 = vadd.f32 %v2086_v3, %v1070_v62  ;;  %v1071_v1 = vmax.f32 %v973_v63, %v1022_v0 }
 0x115   :  { %v1127_v4 = vadd.f32 %v2086_v3, %v1071_v1  ;;  %v478_v5 = vpop.f32.mrb[16].mxu0  ;;  %v759_v6 = vpop.f32.mrb[16].mxu1  ;;  %v1175_v9 = vmax.f32 %v1126_v2, 0.0 }
 0x116   :  { %v480_v7 = vpop.f32.mrb[17].mxu0  ;;  %v761_v8 = vpop.f32.mrb[17].mxu1 }
 0x117   :  { %v1176_v10 = vmax.f32 %v1127_v4, 0.0  ;;  %v974_v11 = vmax.f32 %v478_v5, %v480_v7  ;;  %v1023_v12 = vmax.f32 %v759_v6, %v761_v8  ;;  %v482_v13 = vpop.f32.mrb[18].mxu0  ;;  %v763_v14 = vpop.f32.mrb[18].mxu1 }
 0x118   :  { %v484_v15 = vpop.f32.mrb[19].mxu0  ;;  %v765_v16 = vpop.f32.mrb[19].mxu1 }
 0x119   :  { %v1642_v17 = vpack.c.bf16 %v1176_v10, %v1175_v9  ;;  %v1072_v18 = vmax.f32 %v974_v11, %v1023_v12  ;;  %v975_v19 = vmax.f32 %v482_v13, %v484_v15  ;;  %v1024_v20 = vmax.f32 %v763_v14, %v765_v16 }
 0x11b   :  { %1746 = vst [vmem:[%s2215_s3 + $0x18] sm:$0xff] %v1642_v17   ;;  %v1128_v21 = vadd.f32 %v2086_v3, %v1072_v18  ;;  %v1073_v22 = vmax.f32 %v975_v19, %v1024_v20 }
 0x11d   :  { %v1129_v23 = vadd.f32 %v2086_v3, %v1073_v22  ;;  %v488_v24 = vpop.f32.mrb[20].mxu0  ;;  %v769_v25 = vpop.f32.mrb[20].mxu1  ;;  %v1177_v28 = vmax.f32 %v1128_v21, 0.0 }
 0x11e   :  { %v490_v26 = vpop.f32.mrb[21].mxu0  ;;  %v771_v27 = vpop.f32.mrb[21].mxu1 }
 0x11f   :  { %v1178_v29 = vmax.f32 %v1129_v23, 0.0  ;;  %v976_v30 = vmax.f32 %v488_v24, %v490_v26  ;;  %v1025_v31 = vmax.f32 %v769_v25, %v771_v27  ;;  %v492_v32 = vpop.f32.mrb[22].mxu0  ;;  %v773_v33 = vpop.f32.mrb[22].mxu1 }
 0x120   :  { %v494_v34 = vpop.f32.mrb[23].mxu0  ;;  %v775_v35 = vpop.f32.mrb[23].mxu1 }
 0x121   :  { %v1647_v36 = vpack.c.bf16 %v1178_v29, %v1177_v28  ;;  %v1074_v37 = vmax.f32 %v976_v30, %v1025_v31  ;;  %v977_v38 = vmax.f32 %v492_v32, %v494_v34  ;;  %v1026_v39 = vmax.f32 %v773_v33, %v775_v35 }
 0x123   :  { %1747 = vst [vmem:[%s2215_s3 + $0x20] sm:$0xff] %v1647_v36   ;;  %v1130_v40 = vadd.f32 %v2086_v3, %v1074_v37  ;;  %v1075_v41 = vmax.f32 %v977_v38, %v1026_v39 }
 0x125   :  { %v1131_v42 = vadd.f32 %v2086_v3, %v1075_v41  ;;  %v498_v43 = vpop.f32.mrb[24].mxu0  ;;  %v779_v44 = vpop.f32.mrb[24].mxu1  ;;  %v1179_v47 = vmax.f32 %v1130_v40, 0.0 }
 0x126   :  { %v500_v45 = vpop.f32.mrb[25].mxu0  ;;  %v781_v46 = vpop.f32.mrb[25].mxu1 }
 0x127   :  { %v1180_v48 = vmax.f32 %v1131_v42, 0.0  ;;  %v978_v49 = vmax.f32 %v498_v43, %v500_v45  ;;  %v1027_v50 = vmax.f32 %v779_v44, %v781_v46  ;;  %v502_v51 = vpop.f32.mrb[26].mxu0  ;;  %v783_v52 = vpop.f32.mrb[26].mxu1 }
 0x128   :  { %v504_v53 = vpop.f32.mrb[27].mxu0  ;;  %v785_v54 = vpop.f32.mrb[27].mxu1 }
 0x129   :  { %v1652_v55 = vpack.c.bf16 %v1180_v48, %v1179_v47  ;;  %v1076_v56 = vmax.f32 %v978_v49, %v1027_v50  ;;  %v979_v57 = vmax.f32 %v502_v51, %v504_v53  ;;  %v1028_v58 = vmax.f32 %v783_v52, %v785_v54 }
 0x12b   :  { %1748 = vst [vmem:[%s2215_s3 + $0x28] sm:$0xff] %v1652_v55   ;;  %v1132_v59 = vadd.f32 %v2086_v3, %v1076_v56  ;;  %v1077_v60 = vmax.f32 %v979_v57, %v1028_v58 }
 0x12d   :  { %v1133_v61 = vadd.f32 %v2086_v3, %v1077_v60  ;;  %v508_v62 = vpop.f32.mrb[28].mxu0  ;;  %v789_v63 = vpop.f32.mrb[28].mxu1  ;;  %v1181_v1 = vmax.f32 %v1132_v59, 0.0 }
 0x12e   :  { %v510_v0 = vpop.f32.mrb[29].mxu0  ;;  %v791_v2 = vpop.f32.mrb[29].mxu1 }
 0x12f   :  { %v1182_v4 = vmax.f32 %v1133_v61, 0.0  ;;  %v980_v5 = vmax.f32 %v508_v62, %v510_v0  ;;  %v1029_v6 = vmax.f32 %v789_v63, %v791_v2  ;;  %v512_v7 = vpop.f32.mrb[30].mxu0  ;;  %v793_v8 = vpop.f32.mrb[30].mxu1 }
 0x130   :  { %v514_v9 = vpop.f32.mrb[31].mxu0  ;;  %v795_v10 = vpop.f32.mrb[31].mxu1 }
 0x131   :  { %v1657_v11 = vpack.c.bf16 %v1182_v4, %v1181_v1  ;;  %v1078_v12 = vmax.f32 %v980_v5, %v1029_v6  ;;  %v981_v13 = vmax.f32 %v512_v7, %v514_v9  ;;  %v1030_v14 = vmax.f32 %v793_v8, %v795_v10 }
 0x133   :  { %1749 = vst [vmem:[%s2215_s3 + $0x30] sm:$0xff] %v1657_v11   ;;  %v1134_v15 = vadd.f32 %v2086_v3, %v1078_v12  ;;  %v1079_v16 = vmax.f32 %v981_v13, %v1030_v14 }
 0x135   :  { %v1135_v17 = vadd.f32 %v2086_v3, %v1079_v16  ;;  %v518_v18 = vpop.f32.mrb[32].mxu0  ;;  %v799_v19 = vpop.f32.mrb[32].mxu1  ;;  %v1183_v22 = vmax.f32 %v1134_v15, 0.0 }
 0x136   :  { %v520_v20 = vpop.f32.mrb[33].mxu0  ;;  %v801_v21 = vpop.f32.mrb[33].mxu1 }
 0x137   :  { %v1184_v23 = vmax.f32 %v1135_v17, 0.0  ;;  %v982_v24 = vmax.f32 %v518_v18, %v520_v20  ;;  %v1031_v25 = vmax.f32 %v799_v19, %v801_v21  ;;  %v522_v26 = vpop.f32.mrb[34].mxu0  ;;  %v803_v27 = vpop.f32.mrb[34].mxu1 }
 0x138   :  { %v524_v28 = vpop.f32.mrb[35].mxu0  ;;  %v805_v29 = vpop.f32.mrb[35].mxu1 }
 0x139   :  { %v1662_v30 = vpack.c.bf16 %v1184_v23, %v1183_v22  ;;  %v1080_v31 = vmax.f32 %v982_v24, %v1031_v25  ;;  %v983_v32 = vmax.f32 %v522_v26, %v524_v28  ;;  %v1032_v33 = vmax.f32 %v803_v27, %v805_v29 }
 0x13b   :  { %1750 = vst [vmem:[%s2215_s3 + $0x38] sm:$0xff] %v1662_v30   ;;  %v1136_v34 = vadd.f32 %v2086_v3, %v1080_v31  ;;  %v1081_v35 = vmax.f32 %v983_v32, %v1032_v33 }
 0x13d   :  { %v1137_v36 = vadd.f32 %v2086_v3, %v1081_v35  ;;  %v528_v37 = vpop.f32.mrb[36].mxu0  ;;  %v809_v38 = vpop.f32.mrb[36].mxu1  ;;  %v1185_v41 = vmax.f32 %v1136_v34, 0.0 }
 0x13e   :  { %v530_v39 = vpop.f32.mrb[37].mxu0  ;;  %v811_v40 = vpop.f32.mrb[37].mxu1 }
 0x13f   :  { %v1186_v42 = vmax.f32 %v1137_v36, 0.0  ;;  %v984_v43 = vmax.f32 %v528_v37, %v530_v39  ;;  %v1033_v44 = vmax.f32 %v809_v38, %v811_v40  ;;  %v532_v45 = vpop.f32.mrb[38].mxu0  ;;  %v813_v46 = vpop.f32.mrb[38].mxu1 }
 0x140   :  { %v534_v47 = vpop.f32.mrb[39].mxu0  ;;  %v815_v48 = vpop.f32.mrb[39].mxu1 }
 0x141   :  { %v1667_v49 = vpack.c.bf16 %v1186_v42, %v1185_v41  ;;  %v1082_v50 = vmax.f32 %v984_v43, %v1033_v44  ;;  %v985_v51 = vmax.f32 %v532_v45, %v534_v47  ;;  %v1034_v52 = vmax.f32 %v813_v46, %v815_v48 }
 0x143   :  { %1751 = vst [vmem:[%s2215_s3 + $0x40] sm:$0xff] %v1667_v49   ;;  %v1138_v53 = vadd.f32 %v2086_v3, %v1082_v50  ;;  %v1083_v54 = vmax.f32 %v985_v51, %v1034_v52 }
 0x145   :  { %v1139_v55 = vadd.f32 %v2086_v3, %v1083_v54  ;;  %v538_v56 = vpop.f32.mrb[40].mxu0  ;;  %v819_v57 = vpop.f32.mrb[40].mxu1  ;;  %v1187_v60 = vmax.f32 %v1138_v53, 0.0 }
 0x146   :  { %v540_v58 = vpop.f32.mrb[41].mxu0  ;;  %v821_v59 = vpop.f32.mrb[41].mxu1 }
 0x147   :  { %v1188_v61 = vmax.f32 %v1139_v55, 0.0  ;;  %v986_v62 = vmax.f32 %v538_v56, %v540_v58  ;;  %v1035_v63 = vmax.f32 %v819_v57, %v821_v59  ;;  %v542_v0 = vpop.f32.mrb[42].mxu0  ;;  %v823_v2 = vpop.f32.mrb[42].mxu1 }
 0x148   :  { %v544_v1 = vpop.f32.mrb[43].mxu0  ;;  %v825_v4 = vpop.f32.mrb[43].mxu1 }
 0x149   :  { %v1672_v5 = vpack.c.bf16 %v1188_v61, %v1187_v60  ;;  %v1084_v6 = vmax.f32 %v986_v62, %v1035_v63  ;;  %v987_v7 = vmax.f32 %v542_v0, %v544_v1  ;;  %v1036_v8 = vmax.f32 %v823_v2, %v825_v4 }
 0x14b   :  { %1752 = vst [vmem:[%s2215_s3 + $0x48] sm:$0xff] %v1672_v5   ;;  %v1140_v9 = vadd.f32 %v2086_v3, %v1084_v6  ;;  %v1085_v10 = vmax.f32 %v987_v7, %v1036_v8 }
 0x14d   :  { %v1141_v11 = vadd.f32 %v2086_v3, %v1085_v10  ;;  %v548_v12 = vpop.f32.mrb[44].mxu0  ;;  %v829_v13 = vpop.f32.mrb[44].mxu1  ;;  %v1189_v16 = vmax.f32 %v1140_v9, 0.0 }
 0x14e   :  { %v550_v14 = vpop.f32.mrb[45].mxu0  ;;  %v831_v15 = vpop.f32.mrb[45].mxu1 }
 0x14f   :  { %v1190_v17 = vmax.f32 %v1141_v11, 0.0  ;;  %v988_v18 = vmax.f32 %v548_v12, %v550_v14  ;;  %v1037_v19 = vmax.f32 %v829_v13, %v831_v15  ;;  %v552_v20 = vpop.f32.mrb[46].mxu0  ;;  %v833_v21 = vpop.f32.mrb[46].mxu1 }
 0x150   :  { %v554_v22 = vpop.f32.mrb[47].mxu0  ;;  %v835_v23 = vpop.f32.mrb[47].mxu1 }
 0x151   :  { %v1677_v24 = vpack.c.bf16 %v1190_v17, %v1189_v16  ;;  %v1086_v25 = vmax.f32 %v988_v18, %v1037_v19  ;;  %v989_v26 = vmax.f32 %v552_v20, %v554_v22  ;;  %v1038_v27 = vmax.f32 %v833_v21, %v835_v23 }
 0x153   :  { %1753 = vst [vmem:[%s2215_s3 + $0x50] sm:$0xff] %v1677_v24   ;;  %v1142_v28 = vadd.f32 %v2086_v3, %v1086_v25  ;;  %v1087_v29 = vmax.f32 %v989_v26, %v1038_v27 }
 0x155   :  { %v1143_v30 = vadd.f32 %v2086_v3, %v1087_v29  ;;  %v558_v31 = vpop.f32.mrb[48].mxu0  ;;  %v839_v32 = vpop.f32.mrb[48].mxu1  ;;  %v1191_v35 = vmax.f32 %v1142_v28, 0.0 }
 0x156   :  { %v560_v33 = vpop.f32.mrb[49].mxu0  ;;  %v841_v34 = vpop.f32.mrb[49].mxu1 }
 0x157   :  { %v1192_v36 = vmax.f32 %v1143_v30, 0.0  ;;  %v990_v37 = vmax.f32 %v558_v31, %v560_v33  ;;  %v1039_v38 = vmax.f32 %v839_v32, %v841_v34  ;;  %v562_v39 = vpop.f32.mrb[50].mxu0  ;;  %v843_v40 = vpop.f32.mrb[50].mxu1 }
 0x158   :  { %v564_v41 = vpop.f32.mrb[51].mxu0  ;;  %v845_v42 = vpop.f32.mrb[51].mxu1 }
 0x159   :  { %v1682_v43 = vpack.c.bf16 %v1192_v36, %v1191_v35  ;;  %v1088_v44 = vmax.f32 %v990_v37, %v1039_v38  ;;  %v991_v45 = vmax.f32 %v562_v39, %v564_v41  ;;  %v1040_v46 = vmax.f32 %v843_v40, %v845_v42 }
 0x15b   :  { %1754 = vst [vmem:[%s2215_s3 + $0x58] sm:$0xff] %v1682_v43   ;;  %v1144_v47 = vadd.f32 %v2086_v3, %v1088_v44  ;;  %v1089_v48 = vmax.f32 %v991_v45, %v1040_v46 }
 0x15d   :  { %v1145_v49 = vadd.f32 %v2086_v3, %v1089_v48  ;;  %v568_v50 = vpop.f32.mrb[52].mxu0  ;;  %v849_v51 = vpop.f32.mrb[52].mxu1  ;;  %v1193_v54 = vmax.f32 %v1144_v47, 0.0 }
 0x15e   :  { %v570_v52 = vpop.f32.mrb[53].mxu0  ;;  %v851_v53 = vpop.f32.mrb[53].mxu1 }
 0x15f   :  { %v1194_v55 = vmax.f32 %v1145_v49, 0.0  ;;  %v992_v56 = vmax.f32 %v568_v50, %v570_v52  ;;  %v1041_v57 = vmax.f32 %v849_v51, %v851_v53  ;;  %v572_v58 = vpop.f32.mrb[54].mxu0  ;;  %v853_v59 = vpop.f32.mrb[54].mxu1 }
 0x160   :  { %v574_v60 = vpop.f32.mrb[55].mxu0  ;;  %v855_v61 = vpop.f32.mrb[55].mxu1 }
 0x161   :  { %v1687_v62 = vpack.c.bf16 %v1194_v55, %v1193_v54  ;;  %v1090_v63 = vmax.f32 %v992_v56, %v1041_v57  ;;  %v993_v0 = vmax.f32 %v572_v58, %v574_v60  ;;  %v1042_v2 = vmax.f32 %v853_v59, %v855_v61 }
 0x163   :  { %1755 = vst [vmem:[%s2215_s3 + $0x60] sm:$0xff] %v1687_v62   ;;  %v1146_v1 = vadd.f32 %v2086_v3, %v1090_v63  ;;  %v1091_v4 = vmax.f32 %v993_v0, %v1042_v2 }
 0x165   :  { %v1147_v5 = vadd.f32 %v2086_v3, %v1091_v4  ;;  %v578_v6 = vpop.f32.mrb[56].mxu0  ;;  %v859_v7 = vpop.f32.mrb[56].mxu1  ;;  %v1195_v10 = vmax.f32 %v1146_v1, 0.0 }
 0x166   :  { %v580_v8 = vpop.f32.mrb[57].mxu0  ;;  %v861_v9 = vpop.f32.mrb[57].mxu1 }
 0x167   :  { %v1196_v11 = vmax.f32 %v1147_v5, 0.0  ;;  %v994_v12 = vmax.f32 %v578_v6, %v580_v8  ;;  %v1043_v13 = vmax.f32 %v859_v7, %v861_v9  ;;  %v582_v14 = vpop.f32.mrb[58].mxu0  ;;  %v863_v15 = vpop.f32.mrb[58].mxu1 }
 0x168   :  { %v584_v16 = vpop.f32.mrb[59].mxu0  ;;  %v865_v17 = vpop.f32.mrb[59].mxu1 }
 0x169   :  { %v1692_v18 = vpack.c.bf16 %v1196_v11, %v1195_v10  ;;  %v1092_v19 = vmax.f32 %v994_v12, %v1043_v13  ;;  %v995_v20 = vmax.f32 %v582_v14, %v584_v16  ;;  %v1044_v21 = vmax.f32 %v863_v15, %v865_v17 }
 0x16b   :  { %1756 = vst [vmem:[%s2215_s3 + $0x68] sm:$0xff] %v1692_v18   ;;  %v1148_v22 = vadd.f32 %v2086_v3, %v1092_v19  ;;  %v1093_v23 = vmax.f32 %v995_v20, %v1044_v21 }
 0x16d   :  { %v1149_v24 = vadd.f32 %v2086_v3, %v1093_v23  ;;  %v588_v25 = vpop.f32.mrb[60].mxu0  ;;  %v869_v26 = vpop.f32.mrb[60].mxu1  ;;  %v1197_v29 = vmax.f32 %v1148_v22, 0.0 }
 0x16e   :  { %v590_v27 = vpop.f32.mrb[61].mxu0  ;;  %v871_v28 = vpop.f32.mrb[61].mxu1 }
 0x16f   :  { %v1198_v30 = vmax.f32 %v1149_v24, 0.0  ;;  %v996_v31 = vmax.f32 %v588_v25, %v590_v27  ;;  %v1045_v32 = vmax.f32 %v869_v26, %v871_v28  ;;  %v592_v33 = vpop.f32.mrb[62].mxu0  ;;  %v873_v34 = vpop.f32.mrb[62].mxu1 }
 0x170   :  { %v594_v35 = vpop.f32.mrb[63].mxu0  ;;  %v875_v36 = vpop.f32.mrb[63].mxu1 }
 0x171   :  { %v1697_v37 = vpack.c.bf16 %v1198_v30, %v1197_v29  ;;  %v1094_v38 = vmax.f32 %v996_v31, %v1045_v32  ;;  %v997_v39 = vmax.f32 %v592_v33, %v594_v35  ;;  %v1046_v40 = vmax.f32 %v873_v34, %v875_v36 }
 0x173   :  { %1757 = vst [vmem:[%s2215_s3 + $0x70] sm:$0xff] %v1697_v37   ;;  %v1150_v41 = vadd.f32 %v2086_v3, %v1094_v38  ;;  %v1095_v42 = vmax.f32 %v997_v39, %v1046_v40 }
 0x175   :  { %v1151_v43 = vadd.f32 %v2086_v3, %v1095_v42  ;;  %v598_v44 = vpop.f32.mrb[64].mxu0  ;;  %v879_v45 = vpop.f32.mrb[64].mxu1  ;;  %v1199_v48 = vmax.f32 %v1150_v41, 0.0 }
 0x176   :  { %v600_v46 = vpop.f32.mrb[65].mxu0  ;;  %v881_v47 = vpop.f32.mrb[65].mxu1 }
 0x177   :  { %v1200_v49 = vmax.f32 %v1151_v43, 0.0  ;;  %v998_v50 = vmax.f32 %v598_v44, %v600_v46  ;;  %v1047_v51 = vmax.f32 %v879_v45, %v881_v47  ;;  %v602_v52 = vpop.f32.mrb[66].mxu0  ;;  %v883_v53 = vpop.f32.mrb[66].mxu1 }
 0x178   :  { %v604_v54 = vpop.f32.mrb[67].mxu0  ;;  %v885_v55 = vpop.f32.mrb[67].mxu1 }
 0x179   :  { %v1702_v56 = vpack.c.bf16 %v1200_v49, %v1199_v48  ;;  %v1096_v57 = vmax.f32 %v998_v50, %v1047_v51  ;;  %v999_v58 = vmax.f32 %v602_v52, %v604_v54  ;;  %v1048_v59 = vmax.f32 %v883_v53, %v885_v55 }
 0x17b   :  { %1758 = vst [vmem:[%s2215_s3 + $0x78] sm:$0xff] %v1702_v56   ;;  %v1152_v60 = vadd.f32 %v2086_v3, %v1096_v57  ;;  %v1097_v61 = vmax.f32 %v999_v58, %v1048_v59 }
 0x17d   :  { %v1153_v62 = vadd.f32 %v2086_v3, %v1097_v61  ;;  %v608_v63 = vpop.f32.mrb[68].mxu0  ;;  %v889_v0 = vpop.f32.mrb[68].mxu1  ;;  %v1201_v4 = vmax.f32 %v1152_v60, 0.0 }
 0x17e   :  { %v610_v2 = vpop.f32.mrb[69].mxu0  ;;  %v891_v1 = vpop.f32.mrb[69].mxu1 }
 0x17f   :  { %v1202_v5 = vmax.f32 %v1153_v62, 0.0  ;;  %v1000_v6 = vmax.f32 %v608_v63, %v610_v2  ;;  %v1049_v7 = vmax.f32 %v889_v0, %v891_v1  ;;  %v612_v8 = vpop.f32.mrb[70].mxu0  ;;  %v893_v9 = vpop.f32.mrb[70].mxu1 }
 0x180   :  { %v614_v10 = vpop.f32.mrb[71].mxu0  ;;  %v895_v11 = vpop.f32.mrb[71].mxu1 }
 0x181   :  { %v1707_v12 = vpack.c.bf16 %v1202_v5, %v1201_v4  ;;  %v1098_v13 = vmax.f32 %v1000_v6, %v1049_v7  ;;  %v1001_v14 = vmax.f32 %v612_v8, %v614_v10  ;;  %v1050_v15 = vmax.f32 %v893_v9, %v895_v11 }
 0x183   :  { %1759 = vst [vmem:[%s2215_s3 + $0x80] sm:$0xff] %v1707_v12   ;;  %v1154_v16 = vadd.f32 %v2086_v3, %v1098_v13  ;;  %v1099_v17 = vmax.f32 %v1001_v14, %v1050_v15 }
 0x185   :  { %v1155_v18 = vadd.f32 %v2086_v3, %v1099_v17  ;;  %v618_v19 = vpop.f32.mrb[72].mxu0  ;;  %v899_v20 = vpop.f32.mrb[72].mxu1  ;;  %v1203_v23 = vmax.f32 %v1154_v16, 0.0 }
 0x186   :  { %v620_v21 = vpop.f32.mrb[73].mxu0  ;;  %v901_v22 = vpop.f32.mrb[73].mxu1 }
 0x187   :  { %v1204_v24 = vmax.f32 %v1155_v18, 0.0  ;;  %v1002_v25 = vmax.f32 %v618_v19, %v620_v21  ;;  %v1051_v26 = vmax.f32 %v899_v20, %v901_v22  ;;  %v622_v27 = vpop.f32.mrb[74].mxu0  ;;  %v903_v28 = vpop.f32.mrb[74].mxu1 }
 0x188   :  { %v624_v29 = vpop.f32.mrb[75].mxu0  ;;  %v905_v30 = vpop.f32.mrb[75].mxu1 }
 0x189   :  { %v1712_v31 = vpack.c.bf16 %v1204_v24, %v1203_v23  ;;  %v1100_v32 = vmax.f32 %v1002_v25, %v1051_v26  ;;  %v1003_v33 = vmax.f32 %v622_v27, %v624_v29  ;;  %v1052_v34 = vmax.f32 %v903_v28, %v905_v30 }
 0x18b   :  { %1760 = vst [vmem:[%s2215_s3 + $0x88] sm:$0xff] %v1712_v31   ;;  %v1156_v35 = vadd.f32 %v2086_v3, %v1100_v32  ;;  %v1101_v36 = vmax.f32 %v1003_v33, %v1052_v34 }
 0x18d   :  { %v1157_v37 = vadd.f32 %v2086_v3, %v1101_v36  ;;  %v628_v38 = vpop.f32.mrb[76].mxu0  ;;  %v909_v39 = vpop.f32.mrb[76].mxu1  ;;  %v1205_v42 = vmax.f32 %v1156_v35, 0.0 }
 0x18e   :  { %v630_v40 = vpop.f32.mrb[77].mxu0  ;;  %v911_v41 = vpop.f32.mrb[77].mxu1 }
 0x18f   :  { %v1206_v43 = vmax.f32 %v1157_v37, 0.0  ;;  %v1004_v44 = vmax.f32 %v628_v38, %v630_v40  ;;  %v1053_v45 = vmax.f32 %v909_v39, %v911_v41  ;;  %v632_v46 = vpop.f32.mrb[78].mxu0  ;;  %v913_v47 = vpop.f32.mrb[78].mxu1 }
 0x190   :  { %v634_v48 = vpop.f32.mrb[79].mxu0  ;;  %v915_v49 = vpop.f32.mrb[79].mxu1 }
 0x191   :  { %v1717_v50 = vpack.c.bf16 %v1206_v43, %v1205_v42  ;;  %v1102_v51 = vmax.f32 %v1004_v44, %v1053_v45  ;;  %v1005_v52 = vmax.f32 %v632_v46, %v634_v48  ;;  %v1054_v53 = vmax.f32 %v913_v47, %v915_v49 }
 0x193   :  { %1761 = vst [vmem:[%s2215_s3 + $0x90] sm:$0xff] %v1717_v50   ;;  %v1158_v54 = vadd.f32 %v2086_v3, %v1102_v51  ;;  %v1103_v55 = vmax.f32 %v1005_v52, %v1054_v53 }
 0x195   :  { %v1159_v56 = vadd.f32 %v2086_v3, %v1103_v55  ;;  %v638_v57 = vpop.f32.mrb[80].mxu0  ;;  %v919_v58 = vpop.f32.mrb[80].mxu1  ;;  %v1207_v61 = vmax.f32 %v1158_v54, 0.0 }
 0x196   :  { %v640_v59 = vpop.f32.mrb[81].mxu0  ;;  %v921_v60 = vpop.f32.mrb[81].mxu1 }
 0x197   :  { %v1208_v62 = vmax.f32 %v1159_v56, 0.0  ;;  %v1006_v63 = vmax.f32 %v638_v57, %v640_v59  ;;  %v1055_v0 = vmax.f32 %v919_v58, %v921_v60  ;;  %v642_v2 = vpop.f32.mrb[82].mxu0  ;;  %v923_v1 = vpop.f32.mrb[82].mxu1 }
 0x198   :  { %v644_v4 = vpop.f32.mrb[83].mxu0  ;;  %v925_v5 = vpop.f32.mrb[83].mxu1 }
 0x199   :  { %v1722_v6 = vpack.c.bf16 %v1208_v62, %v1207_v61  ;;  %v1104_v7 = vmax.f32 %v1006_v63, %v1055_v0  ;;  %v1007_v8 = vmax.f32 %v642_v2, %v644_v4  ;;  %v1056_v9 = vmax.f32 %v923_v1, %v925_v5 }
 0x19b   :  { %1762 = vst [vmem:[%s2215_s3 + $0x98] sm:$0xff] %v1722_v6   ;;  %v1160_v10 = vadd.f32 %v2086_v3, %v1104_v7  ;;  %v1105_v11 = vmax.f32 %v1007_v8, %v1056_v9 }
 0x19d   :  { %v1161_v12 = vadd.f32 %v2086_v3, %v1105_v11  ;;  %v648_v13 = vpop.f32.mrb[84].mxu0  ;;  %v929_v14 = vpop.f32.mrb[84].mxu1  ;;  %v1209_v17 = vmax.f32 %v1160_v10, 0.0 }
 0x19e   :  { %v650_v15 = vpop.f32.mrb[85].mxu0  ;;  %v931_v16 = vpop.f32.mrb[85].mxu1 }
 0x19f   :  { %v1210_v18 = vmax.f32 %v1161_v12, 0.0  ;;  %v1008_v19 = vmax.f32 %v648_v13, %v650_v15  ;;  %v1057_v20 = vmax.f32 %v929_v14, %v931_v16  ;;  %v652_v21 = vpop.f32.mrb[86].mxu0  ;;  %v933_v22 = vpop.f32.mrb[86].mxu1 }
 0x1a0   :  { %v654_v23 = vpop.f32.mrb[87].mxu0  ;;  %v935_v24 = vpop.f32.mrb[87].mxu1 }
 0x1a1   :  { %v1727_v25 = vpack.c.bf16 %v1210_v18, %v1209_v17  ;;  %v1106_v26 = vmax.f32 %v1008_v19, %v1057_v20  ;;  %v1009_v27 = vmax.f32 %v652_v21, %v654_v23  ;;  %v1058_v28 = vmax.f32 %v933_v22, %v935_v24 }
 0x1a3   :  { %1763 = vst [vmem:[%s2215_s3 + $0xa0] sm:$0xff] %v1727_v25   ;;  %v1162_v29 = vadd.f32 %v2086_v3, %v1106_v26  ;;  %v1107_v30 = vmax.f32 %v1009_v27, %v1058_v28 }
 0x1a5   :  { %v1163_v31 = vadd.f32 %v2086_v3, %v1107_v30  ;;  %v658_v32 = vpop.f32.mrb[88].mxu0  ;;  %v939_v33 = vpop.f32.mrb[88].mxu1  ;;  %v1211_v36 = vmax.f32 %v1162_v29, 0.0 }
 0x1a6   :  { %v660_v34 = vpop.f32.mrb[89].mxu0  ;;  %v941_v35 = vpop.f32.mrb[89].mxu1 }
 0x1a7   :  { %v1212_v37 = vmax.f32 %v1163_v31, 0.0  ;;  %v1010_v38 = vmax.f32 %v658_v32, %v660_v34  ;;  %v1059_v39 = vmax.f32 %v939_v33, %v941_v35  ;;  %v662_v40 = vpop.f32.mrb[90].mxu0  ;;  %v943_v41 = vpop.f32.mrb[90].mxu1 }
 0x1a8   :  { %v664_v42 = vpop.f32.mrb[91].mxu0  ;;  %v945_v43 = vpop.f32.mrb[91].mxu1 }
 0x1a9   :  { %v1732_v44 = vpack.c.bf16 %v1212_v37, %v1211_v36  ;;  %v1108_v45 = vmax.f32 %v1010_v38, %v1059_v39  ;;  %v1011_v46 = vmax.f32 %v662_v40, %v664_v42  ;;  %v1060_v47 = vmax.f32 %v943_v41, %v945_v43 }
 0x1ab   :  { %1764 = vst [vmem:[%s2215_s3 + $0xa8] sm:$0xff] %v1732_v44   ;;  %v1164_v48 = vadd.f32 %v2086_v3, %v1108_v45  ;;  %v1109_v49 = vmax.f32 %v1011_v46, %v1060_v47 }
 0x1ad   :  { %v1165_v50 = vadd.f32 %v2086_v3, %v1109_v49  ;;  %v668_v51 = vpop.f32.mrb[92].mxu0  ;;  %v949_v52 = vpop.f32.mrb[92].mxu1  ;;  %v1213_v55 = vmax.f32 %v1164_v48, 0.0 }
 0x1ae   :  { %v670_v53 = vpop.f32.mrb[93].mxu0  ;;  %v951_v54 = vpop.f32.mrb[93].mxu1 }
 0x1af   :  { %v1214_v56 = vmax.f32 %v1165_v50, 0.0  ;;  %v1012_v57 = vmax.f32 %v668_v51, %v670_v53  ;;  %v1061_v58 = vmax.f32 %v949_v52, %v951_v54  ;;  %v672_v59 = vpop.f32.mrb[94].mxu0  ;;  %v953_v60 = vpop.f32.mrb[94].mxu1 }
 0x1b0   :  { %v674_v61 = vpop.f32.mrb[95].mxu0  ;;  %v955_v62 = vpop.f32.mrb[95].mxu1 }
 0x1b1   :  { %v1737_v63 = vpack.c.bf16 %v1214_v56, %v1213_v55  ;;  %v1110_v0 = vmax.f32 %v1012_v57, %v1061_v58  ;;  %v1013_v2 = vmax.f32 %v672_v59, %v674_v61  ;;  %v1062_v1 = vmax.f32 %v953_v60, %v955_v62 }
 0x1b3   :  { %1765 = vst [vmem:[%s2215_s3 + $0xb0] sm:$0xff] %v1737_v63   ;;  %v1166_v4 = vadd.f32 %v2086_v3, %v1110_v0  ;;  %v1111_v5 = vmax.f32 %v1013_v2, %v1062_v1 }
 0x1b5   :  { %v1167_v6 = vadd.f32 %v2086_v3, %v1111_v5  ;;  %v678_v7 = vpop.f32.mrb[96].mxu0  ;;  %v959_v8 = vpop.f32.mrb[96].mxu1  ;;  %v1215_v11 = vmax.f32 %v1166_v4, 0.0 }
 0x1b6   :  { %v680_v9 = vpop.f32.mrb[97].mxu0  ;;  %v961_v10 = vpop.f32.mrb[97].mxu1 }
 0x1b7   :  { %v1216_v12 = vmax.f32 %v1167_v6, 0.0  ;;  %v1014_v13 = vmax.f32 %v678_v7, %v680_v9  ;;  %v1063_v14 = vmax.f32 %v959_v8, %v961_v10  ;;  %v682_v15 = vpop.f32.mrb[98].mxu0  ;;  %v963_v16 = vpop.f32.mrb[98].mxu1 }
 0x1b8   :  { %v683_v17 = vpop.f32.mrb[99].mxu0  ;;  %v964_v18 = vpop.f32.mrb[99].mxu1 }
 0x1b9   :  { %v1742_v19 = vpack.c.bf16 %v1216_v12, %v1215_v11  ;;  %v1112_v20 = vmax.f32 %v1014_v13, %v1063_v14 }
 0x1bb   :  { %1766 = vst [vmem:[%s2215_s3 + $0xb8] sm:$0xff] %v1742_v19   ;;  %v1168_v21 = vadd.f32 %v2086_v3, %v1112_v20 }
 0x1bd   :  { %v1217_v22 = vmax.f32 %v1168_v21, 0.0 }
 0x1bf   :  { %v1623_v23 = vpack.c.bf16 %v1217_v22, %v1217_v22 }
 0x1c1   :  { %1463 = vst [vmem:[%s2215_s3 + $0xc0] sm:$0xf] %v1623_v23 }

// kernel: cnn_forward.4
= control target key start
LH: loop header
LB: loop body
LE: loop exit
PB: predicated region body
PF: predicated region fallthrough
CT: control target
= control target key end

     0   :  { %v3344_v0 = vmov 0   ;;  %s3345_s17 = smov 96   ;;  %vm2731_vm0 = vcmask 257024   ;;  %s5440_s1 = inlined_call_operand.vmem [shape: bf16[256,128], index: 1, kind: input, shape index: {}]   ;;  %s5441_s0 = inlined_call_operand.vmem [shape: bf16[784,256], index: 0, kind: input, shape index: {}]   ;;  %s5442_s2 = inlined_call_operand.vmem [shape: f32[1,32], index: 2, kind: input, shape index: {}]   ;;  %s5443_s3 = inlined_call_operand.vmem [shape: bf16[784,32], index: 3, kind: output, shape index: {}]  }
   0x1   :  { %731 = vmatprep.subr.bf16.mxu0 %v3344_v0  ;;  %3145 = vmatprep.subr.bf16.mxu1 %v3344_v0  ;;  %v3180_v1 = vld [vmem:[%s5440_s1] sm:$0xff]   ;;  %v3181_v2 = vld [vmem:[%s5440_s1 + $0x8] sm:$0xff]   ;;  %v3182_v3 = vld [vmem:[%s5440_s1 + $0x10] sm:$0xff]  }
   0x2   :  { %732 = vmatpush1.bf16.msra.mxu0 %v3180_v1  ;;  %3161 = vmatpush1.bf16.msra.mxu1 %v3180_v1  ;;  %v3183_v4 = vld [vmem:[%s5440_s1 + $0x18] sm:$0xff]   ;;  %v3184_v5 = vld [vmem:[%s5440_s1 + $0x20] sm:$0xff]   ;;  %v3185_v7 = vld [vmem:[%s5440_s1 + $0x28] sm:$0xff]  }
   0x3   :  { %733 = vmatprep.subr.bf16.mxu0 %v3344_v0  ;;  %3146 = vmatprep.subr.bf16.mxu1 %v3344_v0  ;;  %v3198_v6 = vld [vmem:[%s5441_s0 + $0x4] ss:$8 sps:$4 sm:$0xff]   ;;  %v3201_v8 = vld [vmem:[%s5441_s0 + $0x194] ss:$8 sps:$4 sm:$0xff]   ;;  %v3196_v19 = vld [vmem:[%s5441_s0] ss:$8 sps:$4 sm:$0xff]  }
   0x4   :  { %763 = vmatprep.mubr.bf16.mxu0 %v3198_v6  ;;  %963 = vmatprep.mubr.bf16.mxu1 %v3201_v8  ;;  %v3186_v9 = vld [vmem:[%s5440_s1 + $0x30] sm:$0xff]   ;;  %v3187_v10 = vld [vmem:[%s5440_s1 + $0x38] sm:$0xff]   ;;  %v3188_v11 = vld [vmem:[%s5440_s1 + $0x40] sm:$0xff]  }
   0x5   :  { %v3189_v12 = vld [vmem:[%s5440_s1 + $0x48] sm:$0xff]   ;;  %v3190_v13 = vld [vmem:[%s5440_s1 + $0x50] sm:$0xff]   ;;  %v3191_v14 = vld [vmem:[%s5440_s1 + $0x58] sm:$0xff]  }
   0x6   :  { %734 = vmatpush1.bf16.msra.mxu0 %v3181_v2  ;;  %3162 = vmatpush1.bf16.msra.mxu1 %v3181_v2  ;;  %v3192_v15 = vld [vmem:[%s5440_s1 + $0x60] sm:$0xff]   ;;  %v3193_v16 = vld [vmem:[%s5440_s1 + $0x68] sm:$0xff]   ;;  %v3194_v17 = vld [vmem:[%s5440_s1 + $0x70] sm:$0xff]  }
   0x7   :  { %735 = vmatprep.subr.bf16.mxu0 %v3344_v0  ;;  %3147 = vmatprep.subr.bf16.mxu1 %v3344_v0  ;;  %v3195_v18 = vld [vmem:[%s5440_s1 + $0x78] sm:$0xff]   ;;  %v3205_v22 = vld [vmem:[%s5441_s0 + $0x1a4] ss:$8 sps:$4 sm:$0xff]   ;;  %v3207_v24 = vld [vmem:[%s5441_s0 + $0x1a0] ss:$8 sps:$4 sm:$0xff]  }
   0x8   :  { %v3199_v20 = vld [vmem:[%s5441_s0 + $0x190] ss:$8 sps:$4 sm:$0xff]   ;;  %v3202_v21 = vld [vmem:[%s5441_s0 + $0x14] ss:$8 sps:$4 sm:$0xff]   ;;  %v3208_v25 = vld [vmem:[%s5441_s0 + $0x24] ss:$8 sps:$4 sm:$0xff]  }
   0x9   :  { %v3204_v23 = vld [vmem:[%s5441_s0 + $0x10] ss:$8 sps:$4 sm:$0xff]   ;;  %v3211_v26 = vld [vmem:[%s5441_s0 + $0x1b4] ss:$8 sps:$4 sm:$0xff]   ;;  %v3210_v27 = vld [vmem:[%s5441_s0 + $0x20] ss:$8 sps:$4 sm:$0xff]  }
   0xa   :  { %736 = vmatpush1.bf16.msra.mxu0 %v3182_v3  ;;  %3163 = vmatpush1.bf16.msra.mxu1 %v3182_v3  ;;  %v3213_v28 = vld [vmem:[%s5441_s0 + $0x1b0] ss:$8 sps:$4 sm:$0xff]   ;;  %v3214_v29 = vld [vmem:[%s5441_s0 + $0x34] ss:$8 sps:$4 sm:$0xff]   ;;  %v3217_v30 = vld [vmem:[%s5441_s0 + $0x1c4] ss:$8 sps:$4 sm:$0xff]  }
   0xb   :  { %737 = vmatprep.subr.bf16.mxu0 %v3344_v0  ;;  %3148 = vmatprep.subr.bf16.mxu1 %v3344_v0  ;;  %v3216_v31 = vld [vmem:[%s5441_s0 + $0x30] ss:$8 sps:$4 sm:$0xff]   ;;  %v3219_v32 = vld [vmem:[%s5441_s0 + $0x1c0] ss:$8 sps:$4 sm:$0xff]   ;;  %v3220_v33 = vld [vmem:[%s5441_s0 + $0x44] ss:$8 sps:$4 sm:$0xff]  }
   0xc   :  { %v3223_v34 = vld [vmem:[%s5441_s0 + $0x1d4] ss:$8 sps:$4 sm:$0xff]   ;;  %v3222_v35 = vld [vmem:[%s5441_s0 + $0x40] ss:$8 sps:$4 sm:$0xff]   ;;  %v3225_v36 = vld [vmem:[%s5441_s0 + $0x1d0] ss:$8 sps:$4 sm:$0xff]  }
   0xd   :  { %v3226_v37 = vld [vmem:[%s5441_s0 + $0x54] ss:$8 sps:$4 sm:$0xff]   ;;  %v3229_v38 = vld [vmem:[%s5441_s0 + $0x1e4] ss:$8 sps:$4 sm:$0xff]   ;;  %v3228_v39 = vld [vmem:[%s5441_s0 + $0x50] ss:$8 sps:$4 sm:$0xff]  }
   0xe   :  { %738 = vmatpush1.bf16.msra.mxu0 %v3183_v4  ;;  %3164 = vmatpush1.bf16.msra.mxu1 %v3183_v4  ;;  %v3231_v40 = vld [vmem:[%s5441_s0 + $0x1e0] ss:$8 sps:$4 sm:$0xff]   ;;  %v3232_v41 = vld [vmem:[%s5441_s0 + $0x64] ss:$8 sps:$4 sm:$0xff]   ;;  %v3235_v42 = vld [vmem:[%s5441_s0 + $0x1f4] ss:$8 sps:$4 sm:$0xff]  }
   0xf   :  { %739 = vmatprep.subr.bf16.mxu0 %v3344_v0  ;;  %3149 = vmatprep.subr.bf16.mxu1 %v3344_v0  ;;  %v3234_v43 = vld [vmem:[%s5441_s0 + $0x60] ss:$8 sps:$4 sm:$0xff]   ;;  %v3237_v44 = vld [vmem:[%s5441_s0 + $0x1f0] ss:$8 sps:$4 sm:$0xff]   ;;  %v3238_v45 = vld [vmem:[%s5441_s0 + $0x74] ss:$8 sps:$4 sm:$0xff]  }
  0x10   :  { %v3241_v46 = vld [vmem:[%s5441_s0 + $0x204] ss:$8 sps:$4 sm:$0xff]   ;;  %v3240_v47 = vld [vmem:[%s5441_s0 + $0x70] ss:$8 sps:$4 sm:$0xff]   ;;  %v3243_v48 = vld [vmem:[%s5441_s0 + $0x200] ss:$8 sps:$4 sm:$0xff]  }
  0x11   :  { %v3244_v49 = vld [vmem:[%s5441_s0 + $0x84] ss:$8 sps:$4 sm:$0xff]   ;;  %v3247_v50 = vld [vmem:[%s5441_s0 + $0x214] ss:$8 sps:$4 sm:$0xff]   ;;  %v3246_v51 = vld [vmem:[%s5441_s0 + $0x80] ss:$8 sps:$4 sm:$0xff]  }
  0x12   :  { %740 = vmatpush1.bf16.msra.mxu0 %v3184_v5  ;;  %3165 = vmatpush1.bf16.msra.mxu1 %v3184_v5  ;;  %v3249_v52 = vld [vmem:[%s5441_s0 + $0x210] ss:$8 sps:$4 sm:$0xff]   ;;  %v3250_v53 = vld [vmem:[%s5441_s0 + $0x94] ss:$8 sps:$4 sm:$0xff]   ;;  %v3253_v54 = vld [vmem:[%s5441_s0 + $0x224] ss:$8 sps:$4 sm:$0xff]  }
  0x13   :  { %741 = vmatprep.subr.bf16.mxu0 %v3344_v0  ;;  %3150 = vmatprep.subr.bf16.mxu1 %v3344_v0  ;;  %v3252_v55 = vld [vmem:[%s5441_s0 + $0x90] ss:$8 sps:$4 sm:$0xff]   ;;  %v3255_v56 = vld [vmem:[%s5441_s0 + $0x220] ss:$8 sps:$4 sm:$0xff]   ;;  %v3256_v57 = vld [vmem:[%s5441_s0 + $0xa4] ss:$8 sps:$4 sm:$0xff]  }
  0x14   :  { %v3259_v58 = vld [vmem:[%s5441_s0 + $0x234] ss:$8 sps:$4 sm:$0xff]   ;;  %v3258_v59 = vld [vmem:[%s5441_s0 + $0xa0] ss:$8 sps:$4 sm:$0xff]   ;;  %v3261_v60 = vld [vmem:[%s5441_s0 + $0x230] ss:$8 sps:$4 sm:$0xff]  }
  0x15   :  { %v3262_v61 = vld [vmem:[%s5441_s0 + $0xb4] ss:$8 sps:$4 sm:$0xff]   ;;  %v3265_v62 = vld [vmem:[%s5441_s0 + $0x244] ss:$8 sps:$4 sm:$0xff]   ;;  %v3264_v63 = vld [vmem:[%s5441_s0 + $0xb0] ss:$8 sps:$4 sm:$0xff]  }
  0x16   :  { %742 = vmatpush1.bf16.msra.mxu0 %v3185_v7  ;;  %3166 = vmatpush1.bf16.msra.mxu1 %v3185_v7  ;;  %v3268_v1 = vld [vmem:[%s5441_s0 + $0xc4] ss:$8 sps:$4 sm:$0xff]   ;;  %v3271_v2 = vld [vmem:[%s5441_s0 + $0x254] ss:$8 sps:$4 sm:$0xff]   ;;  %v3270_v3 = vld [vmem:[%s5441_s0 + $0xc0] ss:$8 sps:$4 sm:$0xff]  }
  0x17   :  { %743 = vmatprep.subr.bf16.mxu0 %v3344_v0  ;;  %3151 = vmatprep.subr.bf16.mxu1 %v3344_v0  ;;  %v3273_v4 = vld [vmem:[%s5441_s0 + $0x250] ss:$8 sps:$4 sm:$0xff]   ;;  %v3274_v5 = vld [vmem:[%s5441_s0 + $0xd4] ss:$8 sps:$4 sm:$0xff]   ;;  %v3277_v6 = vld [vmem:[%s5441_s0 + $0x264] ss:$8 sps:$4 sm:$0xff]  }
  0x18   :  { %v3276_v7 = vld [vmem:[%s5441_s0 + $0xd0] ss:$8 sps:$4 sm:$0xff]   ;;  %v3279_v8 = vld [vmem:[%s5441_s0 + $0x260] ss:$8 sps:$4 sm:$0xff]  }
  0x1a   :  { %744 = vmatpush1.bf16.msra.mxu0 %v3186_v9  ;;  %3167 = vmatpush1.bf16.msra.mxu1 %v3186_v9  ;;  %v3280_v9 = vld [vmem:[%s5441_s0 + $0xe4] ss:$8 sps:$4 sm:$0xff]  }
  0x1b   :  { %745 = vmatprep.subr.bf16.mxu0 %v3344_v0  ;;  %3152 = vmatprep.subr.bf16.mxu1 %v3344_v0 }
  0x1e   :  { %746 = vmatpush1.bf16.msra.mxu0 %v3187_v10  ;;  %3168 = vmatpush1.bf16.msra.mxu1 %v3187_v10  ;;  %v3283_v10 = vld [vmem:[%s5441_s0 + $0x274] ss:$8 sps:$4 sm:$0xff]  }
  0x1f   :  { %747 = vmatprep.subr.bf16.mxu0 %v3344_v0  ;;  %3153 = vmatprep.subr.bf16.mxu1 %v3344_v0 }
  0x22   :  { %748 = vmatpush1.bf16.msra.mxu0 %v3188_v11  ;;  %3169 = vmatpush1.bf16.msra.mxu1 %v3188_v11  ;;  %v3282_v11 = vld [vmem:[%s5441_s0 + $0xe0] ss:$8 sps:$4 sm:$0xff]  }
  0x23   :  { %749 = vmatprep.subr.bf16.mxu0 %v3344_v0  ;;  %3154 = vmatprep.subr.bf16.mxu1 %v3344_v0 }
  0x26   :  { %750 = vmatpush1.bf16.msra.mxu0 %v3189_v12  ;;  %3170 = vmatpush1.bf16.msra.mxu1 %v3189_v12  ;;  %v3285_v12 = vld [vmem:[%s5441_s0 + $0x270] ss:$8 sps:$4 sm:$0xff]  }
  0x27   :  { %751 = vmatprep.subr.bf16.mxu0 %v3344_v0  ;;  %3155 = vmatprep.subr.bf16.mxu1 %v3344_v0 }
  0x2a   :  { %752 = vmatpush1.bf16.msra.mxu0 %v3190_v13  ;;  %3171 = vmatpush1.bf16.msra.mxu1 %v3190_v13  ;;  %v3286_v13 = vld [vmem:[%s5441_s0 + $0xf4] ss:$8 sps:$4 sm:$0xff]  }
  0x2b   :  { %753 = vmatprep.subr.bf16.mxu0 %v3344_v0  ;;  %3156 = vmatprep.subr.bf16.mxu1 %v3344_v0 }
  0x2e   :  { %754 = vmatpush1.bf16.msra.mxu0 %v3191_v14  ;;  %3172 = vmatpush1.bf16.msra.mxu1 %v3191_v14  ;;  %v3289_v14 = vld [vmem:[%s5441_s0 + $0x284] ss:$8 sps:$4 sm:$0xff]  }
  0x2f   :  { %755 = vmatprep.subr.bf16.mxu0 %v3344_v0  ;;  %3157 = vmatprep.subr.bf16.mxu1 %v3344_v0 }
  0x32   :  { %756 = vmatpush1.bf16.msra.mxu0 %v3192_v15  ;;  %3173 = vmatpush1.bf16.msra.mxu1 %v3192_v15  ;;  %v3288_v15 = vld [vmem:[%s5441_s0 + $0xf0] ss:$8 sps:$4 sm:$0xff]  }
  0x33   :  { %757 = vmatprep.subr.bf16.mxu0 %v3344_v0  ;;  %3158 = vmatprep.subr.bf16.mxu1 %v3344_v0 }
  0x36   :  { %758 = vmatpush1.bf16.msra.mxu0 %v3193_v16  ;;  %3174 = vmatpush1.bf16.msra.mxu1 %v3193_v16  ;;  %v3291_v16 = vld [vmem:[%s5441_s0 + $0x280] ss:$8 sps:$4 sm:$0xff]  }
  0x37   :  { %759 = vmatprep.subr.bf16.mxu0 %v3344_v0  ;;  %3159 = vmatprep.subr.bf16.mxu1 %v3344_v0 }
  0x3a   :  { %760 = vmatpush1.bf16.msra.mxu0 %v3194_v17  ;;  %3175 = vmatpush1.bf16.msra.mxu1 %v3194_v17  ;;  %v3292_v17 = vld [vmem:[%s5441_s0 + $0x104] ss:$8 sps:$4 sm:$0xff]  }
  0x3b   :  { %761 = vmatprep.subr.bf16.mxu0 %v3344_v0  ;;  %3160 = vmatprep.subr.bf16.mxu1 %v3344_v0  ;;  %v3267_v0 = vld [vmem:[%s5441_s0 + $0x240] ss:$8 sps:$4 sm:$0xff]  }
  0x3e   :  { %762 = vmatpush1.bf16.msra.mxu0 %v3195_v18  ;;  %3176 = vmatpush1.bf16.msra.mxu1 %v3195_v18  ;;  %v3295_v18 = vld [vmem:[%s5441_s0 + $0x294] ss:$8 sps:$4 sm:$0xff]  }
  0x41   :  { %764 = vmatmul.mubr.bf16.vlgmr.msra.gmra.mrb[0].mxu0 %v3196_v19  ;;  %964 = vmatmul.mubr.bf16.vlgmr.msra.gmra.mrb[0].mxu1 %v3199_v20  ;;  %v3294_v19 = vld [vmem:[%s5441_s0 + $0x100] ss:$8 sps:$4 sm:$0xff]   ;;  %v3297_v20 = vld [vmem:[%s5441_s0 + $0x290] ss:$8 sps:$4 sm:$0xff]  }
  0x42   :  { %771 = vmatprep.mubr.bf16.mxu0 %v3202_v21  ;;  %971 = vmatprep.mubr.bf16.mxu1 %v3205_v22  ;;  %v3298_v21 = vld [vmem:[%s5441_s0 + $0x114] ss:$8 sps:$4 sm:$0xff]   ;;  %v3301_v22 = vld [vmem:[%s5441_s0 + $0x2a4] ss:$8 sps:$4 sm:$0xff]  }
  0x49   :  { %772 = vmatmul.mubr.bf16.gmra.mrb[4].mxu0 %v3204_v23  ;;  %972 = vmatmul.mubr.bf16.gmra.mrb[4].mxu1 %v3207_v24  ;;  %v3300_v23 = vld [vmem:[%s5441_s0 + $0x110] ss:$8 sps:$4 sm:$0xff]   ;;  %v3303_v24 = vld [vmem:[%s5441_s0 + $0x2a0] ss:$8 sps:$4 sm:$0xff]  }
  0x4a   :  { %779 = vmatprep.mubr.bf16.mxu0 %v3208_v25  ;;  %979 = vmatprep.mubr.bf16.mxu1 %v3211_v26  ;;  %v3304_v25 = vld [vmem:[%s5441_s0 + $0x124] ss:$8 sps:$4 sm:$0xff]   ;;  %v3307_v26 = vld [vmem:[%s5441_s0 + $0x2b4] ss:$8 sps:$4 sm:$0xff]  }
  0x51   :  { %780 = vmatmul.mubr.bf16.gmra.mrb[8].mxu0 %v3210_v27  ;;  %980 = vmatmul.mubr.bf16.gmra.mrb[8].mxu1 %v3213_v28  ;;  %v3306_v27 = vld [vmem:[%s5441_s0 + $0x120] ss:$8 sps:$4 sm:$0xff]   ;;  %v3309_v28 = vld [vmem:[%s5441_s0 + $0x2b0] ss:$8 sps:$4 sm:$0xff]  }
  0x52   :  { %787 = vmatprep.mubr.bf16.mxu0 %v3214_v29  ;;  %987 = vmatprep.mubr.bf16.mxu1 %v3217_v30  ;;  %v3310_v29 = vld [vmem:[%s5441_s0 + $0x134] ss:$8 sps:$4 sm:$0xff]   ;;  %v3313_v30 = vld [vmem:[%s5441_s0 + $0x2c4] ss:$8 sps:$4 sm:$0xff]  }
  0x59   :  { %788 = vmatmul.mubr.bf16.gmra.mrb[12].mxu0 %v3216_v31  ;;  %988 = vmatmul.mubr.bf16.gmra.mrb[12].mxu1 %v3219_v32  ;;  %v3312_v31 = vld [vmem:[%s5441_s0 + $0x130] ss:$8 sps:$4 sm:$0xff]   ;;  %v3315_v32 = vld [vmem:[%s5441_s0 + $0x2c0] ss:$8 sps:$4 sm:$0xff]  }
  0x5a   :  { %795 = vmatprep.mubr.bf16.mxu0 %v3220_v33  ;;  %995 = vmatprep.mubr.bf16.mxu1 %v3223_v34  ;;  %v3316_v33 = vld [vmem:[%s5441_s0 + $0x144] ss:$8 sps:$4 sm:$0xff]   ;;  %v3319_v34 = vld [vmem:[%s5441_s0 + $0x2d4] ss:$8 sps:$4 sm:$0xff]  }
  0x61   :  { %796 = vmatmul.mubr.bf16.gmra.mrb[16].mxu0 %v3222_v35  ;;  %996 = vmatmul.mubr.bf16.gmra.mrb[16].mxu1 %v3225_v36  ;;  %v3318_v35 = vld [vmem:[%s5441_s0 + $0x140] ss:$8 sps:$4 sm:$0xff]   ;;  %v3321_v36 = vld [vmem:[%s5441_s0 + $0x2d0] ss:$8 sps:$4 sm:$0xff]  }
  0x62   :  { %803 = vmatprep.mubr.bf16.mxu0 %v3226_v37  ;;  %1003 = vmatprep.mubr.bf16.mxu1 %v3229_v38  ;;  %v3322_v37 = vld [vmem:[%s5441_s0 + $0x154] ss:$8 sps:$4 sm:$0xff]   ;;  %v3325_v38 = vld [vmem:[%s5441_s0 + $0x2e4] ss:$8 sps:$4 sm:$0xff]  }
  0x69   :  { %804 = vmatmul.mubr.bf16.gmra.mrb[20].mxu0 %v3228_v39  ;;  %1004 = vmatmul.mubr.bf16.gmra.mrb[20].mxu1 %v3231_v40  ;;  %v3324_v39 = vld [vmem:[%s5441_s0 + $0x150] ss:$8 sps:$4 sm:$0xff]   ;;  %v3327_v40 = vld [vmem:[%s5441_s0 + $0x2e0] ss:$8 sps:$4 sm:$0xff]  }
  0x6a   :  { %811 = vmatprep.mubr.bf16.mxu0 %v3232_v41  ;;  %1011 = vmatprep.mubr.bf16.mxu1 %v3235_v42  ;;  %v3328_v41 = vld [vmem:[%s5441_s0 + $0x164] ss:$8 sps:$4 sm:$0xff]   ;;  %v3331_v42 = vld [vmem:[%s5441_s0 + $0x2f4] ss:$8 sps:$4 sm:$0xff]  }
  0x71   :  { %812 = vmatmul.mubr.bf16.gmra.mrb[24].mxu0 %v3234_v43  ;;  %1012 = vmatmul.mubr.bf16.gmra.mrb[24].mxu1 %v3237_v44  ;;  %v3330_v43 = vld [vmem:[%s5441_s0 + $0x160] ss:$8 sps:$4 sm:$0xff]   ;;  %v3333_v44 = vld [vmem:[%s5441_s0 + $0x2f0] ss:$8 sps:$4 sm:$0xff]  }
  0x72   :  { %819 = vmatprep.mubr.bf16.mxu0 %v3238_v45  ;;  %1019 = vmatprep.mubr.bf16.mxu1 %v3241_v46  ;;  %v3334_v45 = vld [vmem:[%s5441_s0 + $0x174] ss:$8 sps:$4 sm:$0xff]   ;;  %v3337_v46 = vld [vmem:[%s5441_s0 + $0x304] ss:$8 sps:$4 sm:$0xff]  }
  0x79   :  { %820 = vmatmul.mubr.bf16.gmra.mrb[28].mxu0 %v3240_v47  ;;  %1020 = vmatmul.mubr.bf16.gmra.mrb[28].mxu1 %v3243_v48  ;;  %v3336_v47 = vld [vmem:[%s5441_s0 + $0x170] ss:$8 sps:$4 sm:$0xff]   ;;  %v3339_v48 = vld [vmem:[%s5441_s0 + $0x300] ss:$8 sps:$4 sm:$0xff]  }
  0x7a   :  { %827 = vmatprep.mubr.bf16.mxu0 %v3244_v49  ;;  %1027 = vmatprep.mubr.bf16.mxu1 %v3247_v50  ;;  %v3340_v49 = vld [vmem:[%s5441_s0 + $0x184] ss:$8 sps:$4 sm:$0xff]   ;;  %v3342_v50 = vld [vmem:[%s5441_s0 + $0x180] ss:$8 sps:$4 sm:$0xff]   ;;  %s3346_s0 = smov 64  }
  0x81   :  { %828 = vmatmul.mubr.bf16.gmra.mrb[32].mxu0 %v3246_v51  ;;  %1028 = vmatmul.mubr.bf16.gmra.mrb[32].mxu1 %v3249_v52 }
  0x82   :  { %835 = vmatprep.mubr.bf16.mxu0 %v3250_v53  ;;  %1035 = vmatprep.mubr.bf16.mxu1 %v3253_v54 }
  0x89   :  { %836 = vmatmul.mubr.bf16.gmra.mrb[36].mxu0 %v3252_v55  ;;  %1036 = vmatmul.mubr.bf16.gmra.mrb[36].mxu1 %v3255_v56 }
  0x8a   :  { %843 = vmatprep.mubr.bf16.mxu0 %v3256_v57  ;;  %1043 = vmatprep.mubr.bf16.mxu1 %v3259_v58 }
  0x91   :  { %844 = vmatmul.mubr.bf16.gmra.mrb[40].mxu0 %v3258_v59  ;;  %1044 = vmatmul.mubr.bf16.gmra.mrb[40].mxu1 %v3261_v60 }
  0x92   :  { %851 = vmatprep.mubr.bf16.mxu0 %v3262_v61  ;;  %1051 = vmatprep.mubr.bf16.mxu1 %v3265_v62 }
  0x99   :  { %852 = vmatmul.mubr.bf16.gmra.mrb[44].mxu0 %v3264_v63  ;;  %1052 = vmatmul.mubr.bf16.gmra.mrb[44].mxu1 %v3267_v0 }
  0x9a   :  { %859 = vmatprep.mubr.bf16.mxu0 %v3268_v1  ;;  %1059 = vmatprep.mubr.bf16.mxu1 %v3271_v2 }
  0xa1   :  { %860 = vmatmul.mubr.bf16.gmra.mrb[48].mxu0 %v3270_v3  ;;  %1060 = vmatmul.mubr.bf16.gmra.mrb[48].mxu1 %v3273_v4 }
  0xa2   :  { %867 = vmatprep.mubr.bf16.mxu0 %v3274_v5  ;;  %1067 = vmatprep.mubr.bf16.mxu1 %v3277_v6 }
  0xa9   :  { %868 = vmatmul.mubr.bf16.gmra.mrb[52].mxu0 %v3276_v7  ;;  %1068 = vmatmul.mubr.bf16.gmra.mrb[52].mxu1 %v3279_v8 }
  0xaa   :  { %875 = vmatprep.mubr.bf16.mxu0 %v3280_v9  ;;  %1075 = vmatprep.mubr.bf16.mxu1 %v3283_v10 }
  0xb1   :  { %876 = vmatmul.mubr.bf16.gmra.mrb[56].mxu0 %v3282_v11  ;;  %1076 = vmatmul.mubr.bf16.gmra.mrb[56].mxu1 %v3285_v12 }
  0xb2   :  { %883 = vmatprep.mubr.bf16.mxu0 %v3286_v13  ;;  %1083 = vmatprep.mubr.bf16.mxu1 %v3289_v14 }
  0xb9   :  { %884 = vmatmul.mubr.bf16.gmra.mrb[60].mxu0 %v3288_v15  ;;  %1084 = vmatmul.mubr.bf16.gmra.mrb[60].mxu1 %v3291_v16 }
  0xba   :  { %891 = vmatprep.mubr.bf16.mxu0 %v3292_v17  ;;  %1091 = vmatprep.mubr.bf16.mxu1 %v3295_v18 }
  0xc1   :  { %892 = vmatmul.mubr.bf16.gmra.mrb[64].mxu0 %v3294_v19  ;;  %1092 = vmatmul.mubr.bf16.gmra.mrb[64].mxu1 %v3297_v20 }
  0xc2   :  { %899 = vmatprep.mubr.bf16.mxu0 %v3298_v21  ;;  %1099 = vmatprep.mubr.bf16.mxu1 %v3301_v22 }
  0xc9   :  { %900 = vmatmul.mubr.bf16.gmra.mrb[68].mxu0 %v3300_v23  ;;  %1100 = vmatmul.mubr.bf16.gmra.mrb[68].mxu1 %v3303_v24 }
  0xca   :  { %907 = vmatprep.mubr.bf16.mxu0 %v3304_v25  ;;  %1107 = vmatprep.mubr.bf16.mxu1 %v3307_v26 }
  0xd1   :  { %908 = vmatmul.mubr.bf16.gmra.mrb[72].mxu0 %v3306_v27  ;;  %1108 = vmatmul.mubr.bf16.gmra.mrb[72].mxu1 %v3309_v28 }
  0xd2   :  { %915 = vmatprep.mubr.bf16.mxu0 %v3310_v29  ;;  %1115 = vmatprep.mubr.bf16.mxu1 %v3313_v30 }
  0xd9   :  { %916 = vmatmul.mubr.bf16.gmra.mrb[76].mxu0 %v3312_v31  ;;  %1116 = vmatmul.mubr.bf16.gmra.mrb[76].mxu1 %v3315_v32 }
  0xda   :  { %923 = vmatprep.mubr.bf16.mxu0 %v3316_v33  ;;  %1123 = vmatprep.mubr.bf16.mxu1 %v3319_v34 }
  0xe1   :  { %924 = vmatmul.mubr.bf16.gmra.mrb[80].mxu0 %v3318_v35  ;;  %1124 = vmatmul.mubr.bf16.gmra.mrb[80].mxu1 %v3321_v36 }
  0xe2   :  { %931 = vmatprep.mubr.bf16.mxu0 %v3322_v37  ;;  %1131 = vmatprep.mubr.bf16.mxu1 %v3325_v38 }
  0xe9   :  { %932 = vmatmul.mubr.bf16.gmra.mrb[84].mxu0 %v3324_v39  ;;  %1132 = vmatmul.mubr.bf16.gmra.mrb[84].mxu1 %v3327_v40 }
  0xea   :  { %939 = vmatprep.mubr.bf16.mxu0 %v3328_v41  ;;  %1139 = vmatprep.mubr.bf16.mxu1 %v3331_v42 }
  0xf1   :  { %940 = vmatmul.mubr.bf16.gmra.mrb[88].mxu0 %v3330_v43  ;;  %1140 = vmatmul.mubr.bf16.gmra.mrb[88].mxu1 %v3333_v44 }
  0xf2   :  { %947 = vmatprep.mubr.bf16.mxu0 %v3334_v45  ;;  %1147 = vmatprep.mubr.bf16.mxu1 %v3337_v46 }
  0xf9   :  { %948 = vmatmul.mubr.bf16.gmra.mrb[92].mxu0 %v3336_v47  ;;  %1148 = vmatmul.mubr.bf16.gmra.mrb[92].mxu1 %v3339_v48 }
  0xfa   :  { %955 = vmatprep.mubr.bf16.mxu0 %v3340_v49 }
 0x101   :  { %956 = vmatmul.mubr.bf16.gmra.mrb[96].mxu0 %v3342_v50 }
 0x114   :  { %v3741_v51 = vpop.f32.mrb[0].mxu0  ;;  %v3743_v52 = vpop.f32.mrb[0].mxu1 }
 0x115   :  { %v967_v53 = vpop.f32.mrb[1].mxu1  ;;  %1254 = vrot.lane.b32.xlu0 %v3741_v51, %s3345_s17  ;;  %v767_v54 = vpop.f32.mrb[1].mxu0 }
 0x116   :  { %v3747_v55 = vpop.f32.mrb[2].mxu0  ;;  %v3749_v56 = vpop.f32.mrb[2].mxu1 }
 0x117   :  { %1356 = vrot.lane.b32.xlu1 %v3749_v56, %s3345_s17  ;;  %v770_v57 = vpop.f32.mrb[3].mxu0  ;;  %v970_v58 = vpop.f32.mrb[3].mxu1 }
 0x119   :  { %1354 = vrot.lane.b32.xlu0 %v3743_v52, %s3345_s17 }
 0x11c   :  { %v3755_v59 = vpop.f32.mrb[4].mxu0  ;;  %v3757_v60 = vpop.f32.mrb[4].mxu1 }
 0x11d   :  { %1256 = vrot.lane.b32.xlu0 %v3747_v55, %s3345_s17  ;;  %1258 = vrot.lane.b32.xlu1 %v3755_v59, %s3345_s17  ;;  %v775_v61 = vpop.f32.mrb[5].mxu0  ;;  %v975_v62 = vpop.f32.mrb[5].mxu1 }
 0x11e   :  { %v3763_v63 = vpop.f32.mrb[6].mxu0  ;;  %v3765_v0 = vpop.f32.mrb[6].mxu1 }
 0x11f   :  { %v778_v1 = vpop.f32.mrb[7].mxu0  ;;  %v978_v2 = vpop.f32.mrb[7].mxu1 }
 0x121   :  { %1358 = vrot.lane.b32.xlu0 %v3757_v60, %s3345_s17  ;;  %1260 = vrot.lane.b32.xlu1 %v3763_v63, %s3345_s17 }
 0x124   :  { %v3771_v3 = vpop.f32.mrb[8].mxu0  ;;  %v3773_v4 = vpop.f32.mrb[8].mxu1 }
 0x125   :  { %1360 = vrot.lane.b32.xlu1 %v3765_v0, %s3345_s17  ;;  %1262 = vrot.lane.b32.xlu0 %v3771_v3, %s3345_s17  ;;  %v783_v5 = vpop.f32.mrb[9].mxu0  ;;  %v983_v6 = vpop.f32.mrb[9].mxu1 }
 0x126   :  { %v3779_v7 = vpop.f32.mrb[10].mxu0  ;;  %v3781_v8 = vpop.f32.mrb[10].mxu1 }
 0x127   :  { %v786_v9 = vpop.f32.mrb[11].mxu0  ;;  %v986_v10 = vpop.f32.mrb[11].mxu1 }
 0x129   :  { %1362 = vrot.lane.b32.xlu0 %v3773_v4, %s3345_s17  ;;  %1264 = vrot.lane.b32.xlu1 %v3779_v7, %s3345_s17 }
 0x12c   :  { %v3787_v11 = vpop.f32.mrb[12].mxu0  ;;  %v3789_v12 = vpop.f32.mrb[12].mxu1 }
 0x12d   :  { %1364 = vrot.lane.b32.xlu1 %v3781_v8, %s3345_s17  ;;  %1266 = vrot.lane.b32.xlu0 %v3787_v11, %s3345_s17  ;;  %v791_v13 = vpop.f32.mrb[13].mxu0  ;;  %v991_v14 = vpop.f32.mrb[13].mxu1 }
 0x12e   :  { %v3795_v15 = vpop.f32.mrb[14].mxu0  ;;  %v3797_v16 = vpop.f32.mrb[14].mxu1 }
 0x12f   :  { %v794_v17 = vpop.f32.mrb[15].mxu0  ;;  %v994_v18 = vpop.f32.mrb[15].mxu1 }
 0x131   :  { %1366 = vrot.lane.b32.xlu0 %v3789_v12, %s3345_s17  ;;  %1268 = vrot.lane.b32.xlu1 %v3795_v15, %s3345_s17 }
 0x134   :  { %v3803_v19 = vpop.f32.mrb[16].mxu0  ;;  %v3805_v20 = vpop.f32.mrb[16].mxu1 }
 0x135   :  { %1368 = vrot.lane.b32.xlu1 %v3797_v16, %s3345_s17  ;;  %1270 = vrot.lane.b32.xlu0 %v3803_v19, %s3345_s17  ;;  %v799_v21 = vpop.f32.mrb[17].mxu0  ;;  %v999_v22 = vpop.f32.mrb[17].mxu1 }
 0x136   :  { %v3811_v23 = vpop.f32.mrb[18].mxu0  ;;  %v3813_v24 = vpop.f32.mrb[18].mxu1 }
 0x137   :  { %v802_v25 = vpop.f32.mrb[19].mxu0  ;;  %v1002_v26 = vpop.f32.mrb[19].mxu1 }
 0x139   :  { %1370 = vrot.lane.b32.xlu0 %v3805_v20, %s3345_s17  ;;  %1272 = vrot.lane.b32.xlu1 %v3811_v23, %s3345_s17 }
 0x13c   :  { %v3819_v27 = vpop.f32.mrb[20].mxu0  ;;  %v3821_v28 = vpop.f32.mrb[20].mxu1 }
 0x13d   :  { %1372 = vrot.lane.b32.xlu1 %v3813_v24, %s3345_s17  ;;  %1274 = vrot.lane.b32.xlu0 %v3819_v27, %s3345_s17  ;;  %v807_v29 = vpop.f32.mrb[21].mxu0  ;;  %v1007_v30 = vpop.f32.mrb[21].mxu1 }
 0x13e   :  { %v3827_v31 = vpop.f32.mrb[22].mxu0  ;;  %v3829_v32 = vpop.f32.mrb[22].mxu1 }
 0x13f   :  { %v810_v33 = vpop.f32.mrb[23].mxu0  ;;  %v1010_v34 = vpop.f32.mrb[23].mxu1 }
 0x141   :  { %1374 = vrot.lane.b32.xlu0 %v3821_v28, %s3345_s17  ;;  %1276 = vrot.lane.b32.xlu1 %v3827_v31, %s3345_s17 }
 0x144   :  { %v3835_v35 = vpop.f32.mrb[24].mxu0  ;;  %v3837_v36 = vpop.f32.mrb[24].mxu1 }
 0x145   :  { %1376 = vrot.lane.b32.xlu1 %v3829_v32, %s3345_s17  ;;  %1278 = vrot.lane.b32.xlu0 %v3835_v35, %s3345_s17  ;;  %v815_v37 = vpop.f32.mrb[25].mxu0  ;;  %v1015_v38 = vpop.f32.mrb[25].mxu1 }
 0x146   :  { %v3843_v39 = vpop.f32.mrb[26].mxu0  ;;  %v3845_v40 = vpop.f32.mrb[26].mxu1 }
 0x147   :  { %v818_v41 = vpop.f32.mrb[27].mxu0  ;;  %v1018_v42 = vpop.f32.mrb[27].mxu1 }
 0x149   :  { %1378 = vrot.lane.b32.xlu0 %v3837_v36, %s3345_s17  ;;  %1280 = vrot.lane.b32.xlu1 %v3843_v39, %s3345_s17 }
 0x14c   :  { %v3851_v43 = vpop.f32.mrb[28].mxu0  ;;  %v3853_v44 = vpop.f32.mrb[28].mxu1 }
 0x14d   :  { %1380 = vrot.lane.b32.xlu1 %v3845_v40, %s3345_s17  ;;  %1282 = vrot.lane.b32.xlu0 %v3851_v43, %s3345_s17  ;;  %v823_v45 = vpop.f32.mrb[29].mxu0  ;;  %v1023_v46 = vpop.f32.mrb[29].mxu1 }
 0x14e   :  { %v3859_v47 = vpop.f32.mrb[30].mxu0  ;;  %v3861_v48 = vpop.f32.mrb[30].mxu1 }
 0x14f   :  { %v826_v49 = vpop.f32.mrb[31].mxu0  ;;  %v1026_v50 = vpop.f32.mrb[31].mxu1 }
 0x151   :  { %1382 = vrot.lane.b32.xlu0 %v3853_v44, %s3345_s17  ;;  %1284 = vrot.lane.b32.xlu1 %v3859_v47, %s3345_s17 }
 0x154   :  { %v3867_v53 = vpop.f32.mrb[32].mxu0  ;;  %v3869_v54 = vpop.f32.mrb[32].mxu1 }
 0x155   :  { %5536 = vst [vmem:[#allocation2_spill] sm:$0xff] %v3869_v54  ;;  %1384 = vrot.lane.b32.xlu1 %v3861_v48, %s3345_s17  ;;  %1286 = vrot.lane.b32.xlu0 %v3867_v53, %s3345_s17  ;;  %v831_v57 = vpop.f32.mrb[33].mxu0  ;;  %v1031_v58 = vpop.f32.mrb[33].mxu1 }
 0x156   :  { %v3875_v61 = vpop.f32.mrb[34].mxu0  ;;  %v3877_v62 = vpop.f32.mrb[34].mxu1 }
 0x157   :  { %5537 = vst [vmem:[#allocation3_spill] sm:$0xff] %v3875_v61  ;;  %5538 = vst [vmem:[#allocation4_spill] sm:$0xff] %v3877_v62  ;;  %v834_v1 = vpop.f32.mrb[35].mxu0  ;;  %v1034_v2 = vpop.f32.mrb[35].mxu1 }
 0x159   :  { %1386 = vrot.lane.b32.xlu0 %v3869_v54, %s3345_s17  ;;  %1288 = vrot.lane.b32.xlu1 %v3875_v61, %s3345_s17 }
 0x15c   :  { %v3883_v5 = vpop.f32.mrb[36].mxu0  ;;  %v3885_v6 = vpop.f32.mrb[36].mxu1 }
 0x15d   :  { %5539 = vst [vmem:[#allocation5_spill] sm:$0xff] %v3883_v5  ;;  %5540 = vst [vmem:[#allocation6_spill] sm:$0xff] %v3885_v6  ;;  %1388 = vrot.lane.b32.xlu1 %v3877_v62, %s3345_s17  ;;  %1290 = vrot.lane.b32.xlu0 %v3883_v5, %s3345_s17  ;;  %v839_v9 = vpop.f32.mrb[37].mxu0  ;;  %v1039_v10 = vpop.f32.mrb[37].mxu1 }
 0x15e   :  { %v3891_v13 = vpop.f32.mrb[38].mxu0  ;;  %v3893_v14 = vpop.f32.mrb[38].mxu1 }
 0x15f   :  { %5541 = vst [vmem:[#allocation7_spill] sm:$0xff] %v3891_v13  ;;  %5542 = vst [vmem:[#allocation8_spill] sm:$0xff] %v3893_v14  ;;  %v842_v17 = vpop.f32.mrb[39].mxu0  ;;  %v1042_v18 = vpop.f32.mrb[39].mxu1 }
 0x161   :  { %1390 = vrot.lane.b32.xlu0 %v3885_v6, %s3345_s17  ;;  %1292 = vrot.lane.b32.xlu1 %v3891_v13, %s3345_s17 }
 0x164   :  { %v3899_v21 = vpop.f32.mrb[40].mxu0  ;;  %v3901_v22 = vpop.f32.mrb[40].mxu1 }
 0x165   :  { %5543 = vst [vmem:[#allocation9_spill] sm:$0xff] %v3899_v21  ;;  %5544 = vst [vmem:[#allocation10_spill] sm:$0xff] %v3901_v22  ;;  %1392 = vrot.lane.b32.xlu1 %v3893_v14, %s3345_s17  ;;  %1294 = vrot.lane.b32.xlu0 %v3899_v21, %s3345_s17  ;;  %v847_v25 = vpop.f32.mrb[41].mxu0  ;;  %v1047_v26 = vpop.f32.mrb[41].mxu1 }
 0x166   :  { %v3907_v29 = vpop.f32.mrb[42].mxu0  ;;  %v3909_v30 = vpop.f32.mrb[42].mxu1 }
 0x167   :  { %5545 = vst [vmem:[#allocation11_spill] sm:$0xff] %v3907_v29  ;;  %5546 = vst [vmem:[#allocation12_spill] sm:$0xff] %v3909_v30  ;;  %v850_v33 = vpop.f32.mrb[43].mxu0  ;;  %v1050_v34 = vpop.f32.mrb[43].mxu1 }
 0x169   :  { %1394 = vrot.lane.b32.xlu0 %v3901_v22, %s3345_s17  ;;  %1296 = vrot.lane.b32.xlu1 %v3907_v29, %s3345_s17 }
 0x16c   :  { %v3915_v37 = vpop.f32.mrb[44].mxu0  ;;  %v3917_v38 = vpop.f32.mrb[44].mxu1 }
 0x16d   :  { %5547 = vst [vmem:[#allocation13_spill] sm:$0xff] %v3915_v37  ;;  %5548 = vst [vmem:[#allocation14_spill] sm:$0xff] %v3917_v38  ;;  %1396 = vrot.lane.b32.xlu1 %v3909_v30, %s3345_s17  ;;  %1298 = vrot.lane.b32.xlu0 %v3915_v37, %s3345_s17  ;;  %v855_v41 = vpop.f32.mrb[45].mxu0  ;;  %v1055_v42 = vpop.f32.mrb[45].mxu1 }
 0x16e   :  { %v3923_v45 = vpop.f32.mrb[46].mxu0  ;;  %v3925_v46 = vpop.f32.mrb[46].mxu1 }
 0x16f   :  { %5549 = vst [vmem:[#allocation15_spill] sm:$0xff] %v3923_v45  ;;  %5550 = vst [vmem:[#allocation16_spill] sm:$0xff] %v3925_v46  ;;  %v858_v49 = vpop.f32.mrb[47].mxu0  ;;  %v1058_v50 = vpop.f32.mrb[47].mxu1 }
 0x171   :  { %1398 = vrot.lane.b32.xlu0 %v3917_v38, %s3345_s17  ;;  %1300 = vrot.lane.b32.xlu1 %v3923_v45, %s3345_s17 }
 0x174   :  { %v3931_v57 = vpop.f32.mrb[48].mxu0  ;;  %v3933_v58 = vpop.f32.mrb[48].mxu1 }
 0x175   :  { %5551 = vst [vmem:[#allocation17_spill] sm:$0xff] %v3931_v57  ;;  %5552 = vst [vmem:[#allocation18_spill] sm:$0xff] %v3933_v58  ;;  %1400 = vrot.lane.b32.xlu1 %v3925_v46, %s3345_s17  ;;  %1302 = vrot.lane.b32.xlu0 %v3931_v57, %s3345_s17  ;;  %v863_v1 = vpop.f32.mrb[49].mxu0  ;;  %v1063_v2 = vpop.f32.mrb[49].mxu1 }
 0x176   :  { %v3939_v9 = vpop.f32.mrb[50].mxu0  ;;  %v3941_v10 = vpop.f32.mrb[50].mxu1 }
 0x177   :  { %5553 = vst [vmem:[#allocation19_spill] sm:$0xff] %v3939_v9  ;;  %5554 = vst [vmem:[#allocation20_spill] sm:$0xff] %v3941_v10  ;;  %v866_v17 = vpop.f32.mrb[51].mxu0  ;;  %v1066_v18 = vpop.f32.mrb[51].mxu1 }
 0x179   :  { %1402 = vrot.lane.b32.xlu0 %v3933_v58, %s3345_s17  ;;  %1304 = vrot.lane.b32.xlu1 %v3939_v9, %s3345_s17 }
 0x17c   :  { %v3947_v25 = vpop.f32.mrb[52].mxu0  ;;  %v3949_v26 = vpop.f32.mrb[52].mxu1 }
 0x17d   :  { %5555 = vst [vmem:[#allocation21_spill] sm:$0xff] %v3947_v25  ;;  %5556 = vst [vmem:[#allocation22_spill] sm:$0xff] %v3949_v26  ;;  %1404 = vrot.lane.b32.xlu1 %v3941_v10, %s3345_s17  ;;  %1306 = vrot.lane.b32.xlu0 %v3947_v25, %s3345_s17  ;;  %v871_v33 = vpop.f32.mrb[53].mxu0  ;;  %v1071_v34 = vpop.f32.mrb[53].mxu1 }
 0x17e   :  { %v3955_v41 = vpop.f32.mrb[54].mxu0  ;;  %v3957_v42 = vpop.f32.mrb[54].mxu1 }
 0x17f   :  { %5557 = vst [vmem:[#allocation23_spill] sm:$0xff] %v3955_v41  ;;  %5558 = vst [vmem:[#allocation24_spill] sm:$0xff] %v3957_v42  ;;  %v874_v49 = vpop.f32.mrb[55].mxu0  ;;  %v1074_v50 = vpop.f32.mrb[55].mxu1 }
 0x181   :  { %1406 = vrot.lane.b32.xlu0 %v3949_v26, %s3345_s17  ;;  %1308 = vrot.lane.b32.xlu1 %v3955_v41, %s3345_s17 }
 0x184   :  { %v3963_v1 = vpop.f32.mrb[56].mxu0  ;;  %v3965_v2 = vpop.f32.mrb[56].mxu1 }
 0x185   :  { %5559 = vst [vmem:[#allocation25_spill] sm:$0xff] %v3963_v1  ;;  %5560 = vst [vmem:[#allocation26_spill] sm:$0xff] %v3965_v2  ;;  %1408 = vrot.lane.b32.xlu1 %v3957_v42, %s3345_s17  ;;  %1310 = vrot.lane.b32.xlu0 %v3963_v1, %s3345_s17  ;;  %v879_v17 = vpop.f32.mrb[57].mxu0  ;;  %v1079_v18 = vpop.f32.mrb[57].mxu1 }
 0x186   :  { %v3971_v33 = vpop.f32.mrb[58].mxu0  ;;  %v3973_v34 = vpop.f32.mrb[58].mxu1 }
 0x187   :  { %5561 = vst [vmem:[#allocation27_spill] sm:$0xff] %v3971_v33  ;;  %5562 = vst [vmem:[#allocation28_spill] sm:$0xff] %v3973_v34  ;;  %v1255_v49 = vpop.permute.xlu0 %1254  ;;  %v882_v50 = vpop.f32.mrb[59].mxu0 }
 0x188   :  { %v1082_v26 = vpop.f32.mrb[59].mxu1  ;;  %v3980_v42 = vmax.f32 %v3741_v51, %v1255_v49 }
 0x189   :  { %1410 = vrot.lane.b32.xlu0 %v3965_v2, %s3345_s17  ;;  %1312 = vrot.lane.b32.xlu1 %v3971_v33, %s3345_s17  ;;  %v1357_v41 = vpop.permute.xlu1 %1356 }
 0x18b   :  { %v1355_v1 = vpop.permute.xlu0 %1354 }
 0x18c   :  { %v3982_v17 = vpop.f32.mrb[60].mxu0  ;;  %v3984_v18 = vpop.f32.mrb[60].mxu1  ;;  %v3995_v51 = vmax.f32 %v3743_v52, %v1355_v1 }
 0x18d   :  { %5563 = vst [vmem:[#allocation29_spill] sm:$0xff] %v3982_v17  ;;  %5564 = vst [vmem:[#allocation30_spill] sm:$0xff] %v3984_v18  ;;  %1744 = vrot.lane.b32.xlu0 %v3980_v42, %s3346_s0  ;;  %1412 = vrot.lane.b32.xlu1 %v3973_v34, %s3345_s17  ;;  %v887_v26 = vpop.f32.mrb[61].mxu0  ;;  %v1087_v50 = vpop.f32.mrb[61].mxu1  ;;  %v4005_v34 = vmax.f32 %v3749_v56, %v1357_v41 }
 0x18e   :  { %v3990_v2 = vpop.f32.mrb[62].mxu0  ;;  %v3992_v33 = vpop.f32.mrb[62].mxu1 }
 0x18f   :  { %5565 = vst [vmem:[#allocation31_spill] sm:$0xff] %v3990_v2  ;;  %5566 = vst [vmem:[#allocation32_spill] sm:$0xff] %v3992_v33  ;;  %v1257_v49 = vpop.permute.xlu0 %1256  ;;  %v1259_v10 = vpop.permute.xlu1 %1258 }
 0x190   :  { %v3998_v25 = vmax.f32 %v3747_v55, %v1257_v49  ;;  %v890_v9 = vpop.f32.mrb[63].mxu0  ;;  %v1090_v58 = vpop.f32.mrb[63].mxu1 }
 0x191   :  { %1844 = vrot.lane.b32.xlu0 %v3995_v51, %s3346_s0 }
 0x192   :  { %1746 = vrot.lane.b32.xlu1 %v3998_v25, %s3346_s0 }
 0x193   :  { %v1359_v26 = vpop.permute.xlu0 %1358  ;;  %v1261_v50 = vpop.permute.xlu1 %1260 }
 0x194   :  { %v4007_v52 = vpop.f32.mrb[64].mxu0  ;;  %v4009_v1 = vpop.f32.mrb[64].mxu1  ;;  %v4042_v37 = vmax.f32 %v3763_v63, %v1261_v50 }
 0x195   :  { %5567 = vst [vmem:[#allocation33_spill] sm:$0xff] %v4007_v52  ;;  %5568 = vst [vmem:[#allocation34_spill] sm:$0xff] %v4009_v1  ;;  %1314 = vrot.lane.b32.xlu0 %v3982_v17, %s3345_s17  ;;  %v895_v55 = vpop.f32.mrb[65].mxu0  ;;  %v1095_v58 = vpop.f32.mrb[65].mxu1 }
 0x196   :  { %1846 = vrot.lane.b32.xlu1 %v4005_v34, %s3346_s0  ;;  %v4015_v9 = vpop.f32.mrb[66].mxu0  ;;  %v4017_v49 = vpop.f32.mrb[66].mxu1  ;;  %v4024_v55 = vmax.f32 %v3755_v59, %v1259_v10  ;;  %v4039_v59 = vmax.f32 %v3757_v60, %v1359_v26  ;;  %5577 = vst [vmem:[#allocation43_spill] sm:$0xff] %v4042_v37 }
 0x197   :  { %5569 = vst [vmem:[#allocation35_spill] sm:$0xff] %v4015_v9  ;;  %5570 = vst [vmem:[#allocation36_spill] sm:$0xff] %v4017_v49  ;;  %v1361_v46 = vpop.permute.xlu1 %1360  ;;  %v1263_v57 = vpop.permute.xlu0 %1262 }
 0x198   :  { %v898_v56 = vpop.f32.mrb[67].mxu0  ;;  %v1098_v41 = vpop.f32.mrb[67].mxu1  ;;  %5571 = vst [vmem:[#allocation37_spill] sm:$0xff] %v4024_v55  ;;  %5576 = vst [vmem:[#allocation42_spill] sm:$0xff] %v4039_v59  ;;  %v4053_v60 = vmax.f32 %v3765_v0, %v1361_v46 }
 0x199   :  { %1414 = vrot.lane.b32.xlu0 %v3984_v18, %s3345_s17 }
 0x19a   :  { %1316 = vrot.lane.b32.xlu1 %v3990_v2, %s3345_s17  ;;  %5578 = vst [vmem:[#allocation44_spill] sm:$0xff] %v4053_v60 }
 0x19b   :  { %v1363_v58 = vpop.permute.xlu0 %1362  ;;  %v1265_v17 = vpop.permute.xlu1 %1264 }
 0x19c   :  { %v4026_v45 = vpop.f32.mrb[68].mxu0  ;;  %v4028_v38 = vpop.f32.mrb[68].mxu1 }
 0x19d   :  { %5572 = vst [vmem:[#allocation38_spill] sm:$0xff] %v4026_v45  ;;  %5573 = vst [vmem:[#allocation39_spill] sm:$0xff] %v4028_v38  ;;  %1748 = vrot.lane.b32.xlu0 %v4024_v55, %s3346_s0  ;;  %v903_v56 = vpop.f32.mrb[69].mxu0  ;;  %v1103_v41 = vpop.f32.mrb[69].mxu1 }
 0x19e   :  { %1416 = vrot.lane.b32.xlu1 %v3992_v33, %s3345_s17  ;;  %v4034_v18 = vpop.f32.mrb[70].mxu0  ;;  %v4036_v2 = vpop.f32.mrb[70].mxu1 }
 0x19f   :  { %5574 = vst [vmem:[#allocation40_spill] sm:$0xff] %v4034_v18  ;;  %5575 = vst [vmem:[#allocation41_spill] sm:$0xff] %v4036_v2  ;;  %v1365_v10 = vpop.permute.xlu1 %1364  ;;  %v1267_v30 = vpop.permute.xlu0 %1266 }
 0x1a0   :  { %v906_v29 = vpop.f32.mrb[71].mxu0  ;;  %v1106_v22 = vpop.f32.mrb[71].mxu1 }
 0x1a1   :  { %1848 = vrot.lane.b32.xlu0 %v4039_v59, %s3346_s0 }
 0x1a2   :  { %1750 = vrot.lane.b32.xlu1 %v4042_v37, %s3346_s0 }
 0x1a3   :  { %v4048_v56 = vpop.permute.xlu0 %1366  ;;  %v4050_v41 = vpop.permute.xlu1 %1268 }
 0x1a4   :  { %v4055_v26 = vpop.f32.mrb[72].mxu0  ;;  %v4057_v33 = vpop.f32.mrb[72].mxu1 }
 0x1a5   :  { %5579 = vst [vmem:[#allocation45_spill] sm:$0xff] %v4055_v26  ;;  %5580 = vst [vmem:[#allocation46_spill] sm:$0xff] %v4057_v33  ;;  %1318 = vrot.lane.b32.xlu0 %v4007_v52, %s3345_s17  ;;  %v911_v63 = vpop.f32.mrb[73].mxu0  ;;  %v1111_v22 = vpop.f32.mrb[73].mxu1 }
 0x1a6   :  { %1850 = vrot.lane.b32.xlu1 %v4053_v60, %s3346_s0  ;;  %v4063_v29 = vpop.f32.mrb[74].mxu0  ;;  %v4065_v50 = vpop.f32.mrb[74].mxu1  ;;  %v4076_v63 = vmax.f32 %v3771_v3, %v1263_v57  ;;  %v4095_v57 = vmax.f32 %v3773_v4, %v1363_v58  ;;  %v4102_v60 = vmax.f32 %v3779_v7, %v1265_v17  ;;  %v4113_v4 = vmax.f32 %v3781_v8, %v1365_v10 }
 0x1a7   :  { %5581 = vst [vmem:[#allocation47_spill] sm:$0xff] %v4063_v29  ;;  %5582 = vst [vmem:[#allocation48_spill] sm:$0xff] %v4065_v50  ;;  %v4067_v21 = vpop.permute.xlu1 %1368  ;;  %v4069_v0 = vpop.permute.xlu0 %1270 }
 0x1a8   :  { %v914_v46 = vpop.f32.mrb[75].mxu0  ;;  %v1114_v14 = vpop.f32.mrb[75].mxu1  ;;  %5583 = vst [vmem:[#allocation49_spill] sm:$0xff] %v4076_v63  ;;  %5588 = vst [vmem:[#allocation54_spill] sm:$0xff] %v4095_v57 }
 0x1a9   :  { %1418 = vrot.lane.b32.xlu0 %v4009_v1, %s3345_s17  ;;  %5589 = vst [vmem:[#allocation55_spill] sm:$0xff] %v4102_v60  ;;  %5590 = vst [vmem:[#allocation56_spill] sm:$0xff] %v4113_v4 }
 0x1aa   :  { %1320 = vrot.lane.b32.xlu1 %v4015_v9, %s3345_s17 }
 0x1ab   :  { %v4078_v22 = vpop.permute.xlu0 %1370  ;;  %v4080_v52 = vpop.permute.xlu1 %1272 }
 0x1ac   :  { %v4082_v13 = vpop.f32.mrb[76].mxu0  ;;  %v4084_v6 = vpop.f32.mrb[76].mxu1 }
 0x1ad   :  { %5584 = vst [vmem:[#allocation50_spill] sm:$0xff] %v4082_v13  ;;  %5585 = vst [vmem:[#allocation51_spill] sm:$0xff] %v4084_v6  ;;  %1752 = vrot.lane.b32.xlu0 %v4076_v63, %s3346_s0  ;;  %v919_v14 = vpop.f32.mrb[77].mxu0  ;;  %v1119_v46 = vpop.f32.mrb[77].mxu1 }
 0x1ae   :  { %1420 = vrot.lane.b32.xlu1 %v4017_v49, %s3345_s17  ;;  %v4090_v9 = vpop.f32.mrb[78].mxu0  ;;  %v4092_v3 = vpop.f32.mrb[78].mxu1 }
 0x1af   :  { %5586 = vst [vmem:[#allocation52_spill] sm:$0xff] %v4090_v9  ;;  %5587 = vst [vmem:[#allocation53_spill] sm:$0xff] %v4092_v3  ;;  %v4097_v1 = vpop.permute.xlu1 %1372  ;;  %v4099_v5 = vpop.permute.xlu0 %1274 }
 0x1b0   :  { %v922_v63 = vpop.f32.mrb[79].mxu0  ;;  %v1122_v14 = vpop.f32.mrb[79].mxu1 }
 0x1b1   :  { %1852 = vrot.lane.b32.xlu0 %v4095_v57, %s3346_s0 }
 0x1b2   :  { %1754 = vrot.lane.b32.xlu1 %v4102_v60, %s3346_s0 }
 0x1b3   :  { %v4108_v46 = vpop.permute.xlu0 %1374  ;;  %v4110_v49 = vpop.permute.xlu1 %1276 }
 0x1b4   :  { %v4115_v58 = vpop.f32.mrb[80].mxu0  ;;  %v4117_v37 = vpop.f32.mrb[80].mxu1 }
 0x1b5   :  { %5591 = vst [vmem:[#allocation57_spill] sm:$0xff] %v4115_v58  ;;  %5592 = vst [vmem:[#allocation58_spill] sm:$0xff] %v4117_v37  ;;  %1322 = vrot.lane.b32.xlu0 %v4026_v45, %s3345_s17  ;;  %v927_v7 = vpop.f32.mrb[81].mxu0  ;;  %v1127_v17 = vpop.f32.mrb[81].mxu1 }
 0x1b6   :  { %1854 = vrot.lane.b32.xlu1 %v4113_v4, %s3346_s0  ;;  %v4123_v63 = vpop.f32.mrb[82].mxu0  ;;  %v4125_v14 = vpop.f32.mrb[82].mxu1  ;;  %v4136_v7 = vmax.f32 %v3787_v11, %v1267_v30  ;;  %v4156_v30 = vmax.f32 %v3789_v12, %v4048_v56  ;;  %v4176_v56 = vmax.f32 %v3797_v16, %v4067_v21 }
 0x1b7   :  { %5593 = vst [vmem:[#allocation59_spill] sm:$0xff] %v4123_v63  ;;  %5594 = vst [vmem:[#allocation60_spill] sm:$0xff] %v4125_v14  ;;  %v4127_v60 = vpop.permute.xlu1 %1376  ;;  %v4129_v8 = vpop.permute.xlu0 %1278 }
 0x1b8   :  { %v930_v10 = vpop.f32.mrb[83].mxu0  ;;  %v1130_v57 = vpop.f32.mrb[83].mxu1  ;;  %5595 = vst [vmem:[#allocation61_spill] sm:$0xff] %v4136_v7  ;;  %5600 = vst [vmem:[#allocation66_spill] sm:$0xff] %v4156_v30 }
 0x1b9   :  { %1422 = vrot.lane.b32.xlu0 %v4028_v38, %s3345_s17  ;;  %5602 = vst [vmem:[#allocation68_spill] sm:$0xff] %v4176_v56 }
 0x1ba   :  { %1324 = vrot.lane.b32.xlu1 %v4034_v18, %s3345_s17 }
 0x1bb   :  { %v4138_v17 = vpop.permute.xlu0 %1378  ;;  %v4140_v45 = vpop.permute.xlu1 %1280 }
 0x1bc   :  { %v4142_v4 = vpop.f32.mrb[84].mxu0  ;;  %v4144_v59 = vpop.f32.mrb[84].mxu1 }
 0x1bd   :  { %5596 = vst [vmem:[#allocation62_spill] sm:$0xff] %v4142_v4  ;;  %5597 = vst [vmem:[#allocation63_spill] sm:$0xff] %v4144_v59  ;;  %1756 = vrot.lane.b32.xlu0 %v4136_v7, %s3346_s0  ;;  %v935_v57 = vpop.f32.mrb[85].mxu0  ;;  %v1135_v10 = vpop.f32.mrb[85].mxu1  ;;  %v4164_v7 = vmax.f32 %v3795_v15, %v4050_v41 }
 0x1be   :  { %1424 = vrot.lane.b32.xlu1 %v4036_v2, %s3345_s17  ;;  %v4150_v18 = vpop.f32.mrb[86].mxu0  ;;  %v4152_v11 = vpop.f32.mrb[86].mxu1 }
 0x1bf   :  { %5598 = vst [vmem:[#allocation64_spill] sm:$0xff] %v4150_v18  ;;  %5599 = vst [vmem:[#allocation65_spill] sm:$0xff] %v4152_v11  ;;  %v4158_v38 = vpop.permute.xlu1 %1380  ;;  %v4160_v62 = vpop.permute.xlu0 %1282 }
 0x1c0   :  { %5601 = vst [vmem:[#allocation67_spill] sm:$0xff] %v4164_v7  ;;  %v938_v57 = vpop.f32.mrb[87].mxu0  ;;  %v1138_v10 = vpop.f32.mrb[87].mxu1 }
 0x1c1   :  { %1856 = vrot.lane.b32.xlu0 %v4156_v30, %s3346_s0 }
 0x1c2   :  { %1758 = vrot.lane.b32.xlu1 %v4164_v7, %s3346_s0 }
 0x1c3   :  { %v4170_v2 = vpop.permute.xlu0 %1382  ;;  %v4172_v12 = vpop.permute.xlu1 %1284 }
 0x1c4   :  { %v4178_v55 = vpop.f32.mrb[88].mxu0  ;;  %v4180_v15 = vpop.f32.mrb[88].mxu1 }
 0x1c5   :  { %5603 = vst [vmem:[#allocation69_spill] sm:$0xff] %v4178_v55  ;;  %5604 = vst [vmem:[#allocation70_spill] sm:$0xff] %v4180_v15  ;;  %1326 = vrot.lane.b32.xlu0 %v4055_v26, %s3345_s17  ;;  %v943_v41 = vpop.f32.mrb[89].mxu0  ;;  %v1143_v57 = vpop.f32.mrb[89].mxu1 }
 0x1c6   :  { %1858 = vrot.lane.b32.xlu1 %v4176_v56, %s3346_s0  ;;  %v4186_v10 = vpop.f32.mrb[90].mxu0  ;;  %v4188_v7 = vpop.f32.mrb[90].mxu1  ;;  %v4200_v41 = vmax.f32 %v3803_v19, %v4069_v0  ;;  %v4220_v0 = vmax.f32 %v3805_v20, %v4078_v22  ;;  %v4240_v22 = vmax.f32 %v3813_v24, %v4097_v1  ;;  %v4260_v24 = vmax.f32 %v3819_v27, %v4099_v5 }
 0x1c7   :  { %5605 = vst [vmem:[#allocation71_spill] sm:$0xff] %v4186_v10  ;;  %5606 = vst [vmem:[#allocation72_spill] sm:$0xff] %v4188_v7  ;;  %v4190_v30 = vpop.permute.xlu1 %1384  ;;  %v4192_v16 = vpop.permute.xlu0 %1286  ;;  %v4280_v27 = vmax.f32 %v3827_v31, %v4110_v49 }
 0x1c8   :  { %v946_v21 = vpop.f32.mrb[91].mxu0  ;;  %v1146_v61 = vpop.f32.mrb[91].mxu1  ;;  %5607 = vst [vmem:[#allocation73_spill] sm:$0xff] %v4200_v41 }
 0x1c9   :  { %1426 = vrot.lane.b32.xlu0 %v4057_v33, %s3345_s17 }
 0x1ca   :  { %1328 = vrot.lane.b32.xlu1 %v4063_v29, %s3345_s17 }
 0x1cb   :  { %v4202_v57 = vpop.permute.xlu0 %1386  ;;  %v4204_v26 = vpop.permute.xlu1 %1288 }
 0x1cc   :  { %v4206_v56 = vpop.f32.mrb[92].mxu0  ;;  %v4208_v54 = vpop.f32.mrb[92].mxu1 }
 0x1cd   :  { %5608 = vst [vmem:[#allocation74_spill] sm:$0xff] %v4206_v56  ;;  %5609 = vst [vmem:[#allocation75_spill] sm:$0xff] %v4208_v54  ;;  %1760 = vrot.lane.b32.xlu0 %v4200_v41, %s3346_s0  ;;  %v951_v61 = vpop.f32.mrb[93].mxu0  ;;  %v1151_v21 = vpop.f32.mrb[93].mxu1  ;;  %v4228_v41 = vmax.f32 %v3811_v23, %v4080_v52 }
 0x1ce   :  { %1428 = vrot.lane.b32.xlu1 %v4065_v50, %s3345_s17  ;;  %v4214_v29 = vpop.f32.mrb[94].mxu0  ;;  %v4216_v19 = vpop.f32.mrb[94].mxu1 }
 0x1cf   :  { %5610 = vst [vmem:[#allocation76_spill] sm:$0xff] %v4214_v29  ;;  %5611 = vst [vmem:[#allocation77_spill] sm:$0xff] %v4216_v19  ;;  %v4222_v33 = vpop.permute.xlu1 %1388  ;;  %v4224_v56 = vpop.permute.xlu0 %1290 }
 0x1d0   :  { %5612 = vst [vmem:[#allocation78_spill] sm:$0xff] %v4228_v41  ;;  %v954_v61 = vpop.f32.mrb[95].mxu0  ;;  %v1154_v21 = vpop.f32.mrb[95].mxu1 }
 0x1d1   :  { %1860 = vrot.lane.b32.xlu0 %v4220_v0, %s3346_s0 }
 0x1d2   :  { %1762 = vrot.lane.b32.xlu1 %v4228_v41, %s3346_s0 }
 0x1d3   :  { %v4234_v50 = vpop.permute.xlu0 %1390  ;;  %v4236_v20 = vpop.permute.xlu1 %1292 }
 0x1d4   :  { %v4242_v19 = vpop.f32.mrb[96].mxu0 }
 0x1d5   :  { %1330 = vrot.lane.b32.xlu0 %v4082_v13, %s3345_s17  ;;  %v959_v23 = vpop.f32.mrb[97].mxu0 }
 0x1d6   :  { %1862 = vrot.lane.b32.xlu1 %v4240_v22, %s3346_s0  ;;  %v4248_v52 = vpop.f32.mrb[98].mxu0 }
 0x1d7   :  { %v4250_v61 = vpop.permute.xlu1 %1392  ;;  %v4252_v21 = vpop.permute.xlu0 %1294 }
 0x1d8   :  { %v962_v41 = vpop.f32.mrb[99].mxu0 }
 0x1d9   :  { %1430 = vrot.lane.b32.xlu0 %v4084_v6, %s3345_s17  ;;  %v4272_v41 = vmax.f32 %v3821_v28, %v4108_v46  ;;  %v4292_v28 = vmax.f32 %v3829_v32, %v4127_v60  ;;  %v4308_v32 = vmax.f32 %v3835_v35, %v4129_v8  ;;  %v4328_v35 = vmax.f32 %v3843_v39, %v4140_v45 }
 0x1da   :  { %1332 = vrot.lane.b32.xlu1 %v4090_v9, %s3345_s17 }
 0x1db   :  { %v4262_v1 = vpop.permute.xlu0 %1394  ;;  %v4264_v23 = vpop.permute.xlu1 %1296 }
 0x1dd   :  { %1764 = vrot.lane.b32.xlu0 %v4260_v24, %s3346_s0 }
 0x1de   :  { %1432 = vrot.lane.b32.xlu1 %v4092_v3, %s3345_s17 }
 0x1df   :  { %v4274_v6 = vpop.permute.xlu1 %1396  ;;  %v4276_v9 = vpop.permute.xlu0 %1298 }
 0x1e1   :  { %1864 = vrot.lane.b32.xlu0 %v4272_v41, %s3346_s0 }
 0x1e2   :  { %1766 = vrot.lane.b32.xlu1 %v4280_v27, %s3346_s0 }
 0x1e3   :  { %v4286_v5 = vpop.permute.xlu0 %1398  ;;  %v4288_v3 = vpop.permute.xlu1 %1300 }
 0x1e5   :  { %1334 = vrot.lane.b32.xlu0 %v4115_v58, %s3345_s17 }
 0x1e6   :  { %1866 = vrot.lane.b32.xlu1 %v4292_v28, %s3346_s0 }
 0x1e7   :  { %v4298_v31 = vpop.permute.xlu1 %1400  ;;  %v4300_v49 = vpop.permute.xlu0 %1302 }
 0x1e9   :  { %1434 = vrot.lane.b32.xlu0 %v4117_v37, %s3345_s17  ;;  %v4320_v37 = vmax.f32 %v3837_v36, %v4138_v17  ;;  %v4340_v36 = vmax.f32 %v3845_v40, %v4158_v38  ;;  %v4356_v40 = vmax.f32 %v3851_v43, %v4160_v62 }
 0x1ea   :  { %1336 = vrot.lane.b32.xlu1 %v4123_v63, %s3345_s17 }
 0x1eb   :  { %v4310_v60 = vpop.permute.xlu0 %1402  ;;  %v4312_v46 = vpop.permute.xlu1 %1304  ;;  %5613 = vst [vmem:[#allocation79_spill] sm:$0xff] %v4340_v36  ;;  %5614 = vst [vmem:[#allocation80_spill] sm:$0xff] %v4356_v40 }
 0x1ed   :  { %1768 = vrot.lane.b32.xlu0 %v4308_v32, %s3346_s0 }
 0x1ee   :  { %1436 = vrot.lane.b32.xlu1 %v4125_v14, %s3345_s17 }
 0x1ef   :  { %v4322_v58 = vpop.permute.xlu1 %1404  ;;  %v4324_v63 = vpop.permute.xlu0 %1306 }
 0x1f1   :  { %1868 = vrot.lane.b32.xlu0 %v4320_v37, %s3346_s0 }
 0x1f2   :  { %1770 = vrot.lane.b32.xlu1 %v4328_v35, %s3346_s0 }
 0x1f3   :  { %v4334_v8 = vpop.permute.xlu0 %1406  ;;  %v4336_v14 = vpop.permute.xlu1 %1308 }
 0x1f5   :  { %1338 = vrot.lane.b32.xlu0 %v4142_v4, %s3345_s17  ;;  %v4379_v4 = vmax.f32 %v3859_v47, %v4172_v12 }
 0x1f6   :  { %1870 = vrot.lane.b32.xlu1 %v4340_v36, %s3346_s0 }
 0x1f7   :  { %v4346_v39 = vpop.permute.xlu1 %1408  ;;  %v4348_v45 = vpop.permute.xlu0 %1310 }
 0x1f9   :  { %1438 = vrot.lane.b32.xlu0 %v4144_v59, %s3345_s17  ;;  %v4368_v59 = vmax.f32 %v3853_v44, %v4170_v2 }
 0x1fa   :  { %1340 = vrot.lane.b32.xlu1 %v4150_v18, %s3345_s17  ;;  %v4373_v18 = vld [vmem:[%s5442_s2] ss:$0 sm:$0xff] }
 0x1fb   :  { %v4358_v38 = vpop.permute.xlu0 %1410  ;;  %v4360_v17 = vpop.permute.xlu1 %1312 }
 0x1fd   :  { %1772 = vrot.lane.b32.xlu0 %v4356_v40, %s3346_s0 }
 0x1fe   :  { %1440 = vrot.lane.b32.xlu1 %v4152_v11, %s3345_s17  ;;  %v4389_v11 = vmax.f32 %v3861_v48, %v4190_v30 }
 0x1ff   :  { %v1745_v43 = vpop.permute.xlu0 %1744  ;;  %v4375_v62 = vpop.permute.xlu1 %1412 }
 0x200   :  { %v2038_v40 = vmax.f32 %v3980_v42, %v1745_v43 }
 0x201   :  { %1872 = vrot.lane.b32.xlu0 %v4368_v59, %s3346_s0 }
 0x202   :  { %v2143_v44 = vadd.f32 %v4373_v18, %v2038_v40  ;;  %1774 = vrot.lane.b32.xlu1 %v4379_v4, %s3346_s0 }
 0x203   :  { %v1845_v2 = vpop.permute.xlu0 %1844 }
 0x204   :  { %v2241_v13 = vmax.f32 %v2143_v44, 0.0  ;;  %v2088_v36 = vmax.f32 %v3995_v51, %v1845_v2  ;;  %v1747_v47 = vpop.permute.xlu1 %1746 }
 0x205   :  { %v2039_v42 = vmax.f32 %v3998_v25, %v1747_v47  ;;  %1342 = vrot.lane.b32.xlu0 %v4178_v55, %s3345_s17 }
 0x206   :  { %v3047_v12 = vpack.c.bf16 %v2241_v13, %v2241_v13  ;;  %v2193_v40 = vadd.f32 %v4373_v18, %v2088_v36  ;;  %1874 = vrot.lane.b32.xlu1 %v4389_v11, %s3346_s0  ;;  %v4412_v36 = vmax.f32 %v3867_v53, %v4192_v16  ;;  %v5615_v53 = vld [vmem:[#allocation2_spill] sm:$0xff] }
 0x207   :  { %v2144_v43 = vadd.f32 %v4373_v18, %v2039_v42  ;;  %v4399_v48 = vpop.permute.xlu0 %1314  ;;  %v4433_v16 = vmax.f32 %v5615_v53, %v4202_v57  ;;  %v5619_v53 = vld [vmem:[#allocation42_spill] sm:$0xff] }
 0x208   :  { %2732 = vst.msk [vmem:[%s5443_s3] sm:$0xf] %vm2731_vm0, %v3047_v12  ;;  %v2291_v51 = vmax.f32 %v2193_v40, 0.0  ;;  %v1847_v25 = vpop.permute.xlu1 %1846 }
 0x209   :  { %v2242_v30 = vmax.f32 %v2144_v43, 0.0  ;;  %v2089_v44 = vmax.f32 %v4005_v34, %v1847_v25  ;;  %1442 = vrot.lane.b32.xlu0 %v4180_v15, %s3345_s17 }
 0x20a   :  { %v3097_v13 = vpack.c.bf16 %v2291_v51, %v2291_v51  ;;  %1344 = vrot.lane.b32.xlu1 %v4186_v10, %s3345_s17  ;;  %v5616_v51 = vld [vmem:[#allocation3_spill] sm:$0xff] }
 0x20b   :  { %v3048_v2 = vpack.c.bf16 %v2242_v30, %v2242_v30  ;;  %v2194_v47 = vadd.f32 %v4373_v18, %v2089_v44  ;;  %v4415_v42 = vpop.permute.xlu0 %1414  ;;  %v4437_v25 = vmax.f32 %v5616_v51, %v4204_v26  ;;  %v5617_v30 = vld [vmem:[#allocation37_spill] sm:$0xff]  ;;  %v5618_v26 = vld [vmem:[#allocation4_spill] sm:$0xff] }
 0x20c   :  { %2782 = vst.msk [vmem:[%s5443_s3 + $0xc8] sm:$0xf] %vm2731_vm0, %v3097_v13  ;;  %v4421_v34 = vpop.permute.xlu1 %1316 }
 0x20d   :  { %2733 = vst.msk [vmem:[%s5443_s3 + $0x4] sm:$0xf] %vm2731_vm0, %v3048_v2  ;;  %v2292_v12 = vmax.f32 %v2194_v47, 0.0  ;;  %1776 = vrot.lane.b32.xlu0 %v4412_v36, %s3346_s0  ;;  %v4453_v47 = vmax.f32 %v5618_v26, %v4222_v33  ;;  %v5622_v26 = vld [vmem:[#allocation44_spill] sm:$0xff] }
 0x20e   :  { %1444 = vrot.lane.b32.xlu1 %v4188_v7, %s3345_s17 }
 0x20f   :  { %v3098_v40 = vpack.c.bf16 %v2292_v12, %v2292_v12  ;;  %v1749_v43 = vpop.permute.xlu0 %1748 }
 0x210   :  { %v2040_v44 = vmax.f32 %v5617_v30, %v1749_v43  ;;  %v4440_v13 = vpop.permute.xlu1 %1416  ;;  %v5620_v30 = vld [vmem:[#allocation43_spill] sm:$0xff] }
 0x211   :  { %2783 = vst.msk [vmem:[%s5443_s3 + $0xcc] sm:$0xf] %vm2731_vm0, %v3098_v40  ;;  %1876 = vrot.lane.b32.xlu0 %v4433_v16, %s3346_s0  ;;  %v5621_v40 = vld [vmem:[#allocation74_spill] sm:$0xff] }
 0x212   :  { %v2145_v57 = vadd.f32 %v4373_v18, %v2040_v44  ;;  %1778 = vrot.lane.b32.xlu1 %v4437_v25, %s3346_s0 }
 0x213   :  { %v1849_v2 = vpop.permute.xlu0 %1848 }
 0x214   :  { %v2243_v12 = vmax.f32 %v2145_v57, 0.0  ;;  %v2090_v43 = vmax.f32 %v5619_v53, %v1849_v2  ;;  %v1751_v51 = vpop.permute.xlu1 %1750 }
 0x215   :  { %v2041_v7 = vmax.f32 %v5620_v30, %v1751_v51  ;;  %1346 = vrot.lane.b32.xlu0 %v5621_v40, %s3345_s17 }
 0x216   :  { %v3049_v10 = vpack.c.bf16 %v2243_v12, %v2243_v12  ;;  %v2195_v44 = vadd.f32 %v4373_v18, %v2090_v43  ;;  %1878 = vrot.lane.b32.xlu1 %v4453_v47, %s3346_s0 }
 0x217   :  { %v2146_v15 = vadd.f32 %v4373_v18, %v2041_v7  ;;  %v4463_v55 = vpop.permute.xlu0 %1318  ;;  %v5623_v7 = vld [vmem:[#allocation5_spill] sm:$0xff] }
 0x218   :  { %2734 = vst.msk [vmem:[%s5443_s3 + $0x8] sm:$0xf] %vm2731_vm0, %v3049_v10  ;;  %v2293_v33 = vmax.f32 %v2195_v44, 0.0  ;;  %v1851_v57 = vpop.permute.xlu1 %1850  ;;  %v4476_v43 = vmax.f32 %v5623_v7, %v4224_v56  ;;  %v5624_v56 = vld [vmem:[#allocation77_spill] sm:$0xff] }
 0x219   :  { %v2244_v2 = vmax.f32 %v2146_v15, 0.0  ;;  %v2091_v53 = vmax.f32 %v5622_v26, %v1851_v57  ;;  %1446 = vrot.lane.b32.xlu0 %v4208_v54, %s3345_s17  ;;  %v5629_v7 = vld [vmem:[#allocation49_spill] sm:$0xff] }
 0x21a   :  { %v3099_v12 = vpack.c.bf16 %v2293_v33, %v2293_v33  ;;  %1348 = vrot.lane.b32.xlu1 %v4214_v29, %s3345_s17  ;;  %v5625_v33 = vld [vmem:[#allocation6_spill] sm:$0xff] }
 0x21b   :  { %v3050_v51 = vpack.c.bf16 %v2244_v2, %v2244_v2  ;;  %v2196_v30 = vadd.f32 %v4373_v18, %v2091_v53  ;;  %v4479_v10 = vpop.permute.xlu0 %1418  ;;  %v4497_v57 = vmax.f32 %v5625_v33, %v4234_v50  ;;  %v5627_v53 = vld [vmem:[#allocation7_spill] sm:$0xff] }
 0x21c   :  { %2784 = vst.msk [vmem:[%s5443_s3 + $0xd0] sm:$0xf] %vm2731_vm0, %v3099_v12  ;;  %v4485_v15 = vpop.permute.xlu1 %1320  ;;  %v4501_v12 = vmax.f32 %v5627_v53, %v4236_v20  ;;  %v5630_v20 = vld [vmem:[#allocation8_spill] sm:$0xff] }
 0x21d   :  { %2735 = vst.msk [vmem:[%s5443_s3 + $0xc] sm:$0xf] %vm2731_vm0, %v3050_v51  ;;  %v2294_v44 = vmax.f32 %v2196_v30, 0.0  ;;  %1780 = vrot.lane.b32.xlu0 %v4476_v43, %s3346_s0  ;;  %5626 = vst [vmem:[#allocation2_spill] sm:$0xff] %v4497_v57 }
 0x21e   :  { %1448 = vrot.lane.b32.xlu1 %v5624_v56, %s3345_s17  ;;  %5628 = vst [vmem:[#allocation3_spill] sm:$0xff] %v4501_v12  ;;  %v5632_v56 = vld [vmem:[#allocation55_spill] sm:$0xff] }
 0x21f   :  { %v3100_v2 = vpack.c.bf16 %v2294_v44, %v2294_v44  ;;  %v1753_v26 = vpop.permute.xlu0 %1752  ;;  %v4517_v44 = vmax.f32 %v5630_v20, %v4250_v61 }
 0x220   :  { %v2042_v54 = vmax.f32 %v5629_v7, %v1753_v26  ;;  %v4504_v51 = vpop.permute.xlu1 %1420  ;;  %v5631_v26 = vld [vmem:[#allocation54_spill] sm:$0xff] }
 0x221   :  { %2785 = vst.msk [vmem:[%s5443_s3 + $0xd4] sm:$0xf] %vm2731_vm0, %v3100_v2  ;;  %1880 = vrot.lane.b32.xlu0 %v4497_v57, %s3346_s0 }
 0x222   :  { %v2147_v50 = vadd.f32 %v4373_v18, %v2042_v54  ;;  %1782 = vrot.lane.b32.xlu1 %v4501_v12, %s3346_s0  ;;  %v5633_v12 = vld [vmem:[#allocation9_spill] sm:$0xff] }
 0x223   :  { %v1853_v30 = vpop.permute.xlu0 %1852  ;;  %v4528_v57 = vmax.f32 %v5633_v12, %v4252_v21 }
 0x224   :  { %v2245_v33 = vmax.f32 %v2147_v50, 0.0  ;;  %v2092_v53 = vmax.f32 %v5631_v26, %v1853_v30  ;;  %v1755_v7 = vpop.permute.xlu1 %1754 }
 0x225   :  { %v2043_v29 = vmax.f32 %v5632_v56, %v1755_v7  ;;  %1350 = vrot.lane.b32.xlu0 %v4242_v19, %s3345_s17 }
 0x226   :  { %v3051_v2 = vpack.c.bf16 %v2245_v33, %v2245_v33  ;;  %v2197_v54 = vadd.f32 %v4373_v18, %v2092_v53  ;;  %1882 = vrot.lane.b32.xlu1 %v4517_v44, %s3346_s0  ;;  %v5634_v33 = vld [vmem:[#allocation56_spill] sm:$0xff] }
 0x227   :  { %v2148_v61 = vadd.f32 %v4373_v18, %v2043_v29  ;;  %v4531_v50 = vpop.permute.xlu0 %1322  ;;  %v5635_v29 = vld [vmem:[#allocation10_spill] sm:$0xff] }
 0x228   :  { %2736 = vst.msk [vmem:[%s5443_s3 + $0x10] sm:$0xf] %vm2731_vm0, %v3051_v2  ;;  %v2295_v56 = vmax.f32 %v2197_v54, 0.0  ;;  %v1855_v30 = vpop.permute.xlu1 %1854  ;;  %v4544_v21 = vmax.f32 %v5635_v29, %v4262_v1  ;;  %v5637_v54 = vld [vmem:[#allocation11_spill] sm:$0xff]  ;;  %v5643_v29 = vld [vmem:[#allocation61_spill] sm:$0xff] }
 0x229   :  { %v2246_v20 = vmax.f32 %v2148_v61, 0.0  ;;  %v2093_v26 = vmax.f32 %v5634_v33, %v1855_v30  ;;  %1784 = vrot.lane.b32.xlu0 %v4528_v57, %s3346_s0  ;;  %v4551_v61 = vmax.f32 %v5637_v54, %v4264_v23  ;;  %v5639_v23 = vld [vmem:[#allocation13_spill] sm:$0xff] }
 0x22a   :  { %v3101_v53 = vpack.c.bf16 %v2295_v56, %v2295_v56  ;;  %1352 = vrot.lane.b32.xlu1 %v4248_v52, %s3345_s17  ;;  %5636 = vst [vmem:[#allocation37_spill] sm:$0xff] %v4544_v21  ;;  %v4569_v30 = vmax.f32 %v5639_v23, %v4276_v9  ;;  %v5645_v23 = vld [vmem:[#allocation15_spill] sm:$0xff] }
 0x22b   :  { %v3052_v12 = vpack.c.bf16 %v2246_v20, %v2246_v20  ;;  %v2198_v7 = vadd.f32 %v4373_v18, %v2093_v26  ;;  %v4547_v2 = vpop.permute.xlu0 %1422  ;;  %5638 = vst [vmem:[#allocation4_spill] sm:$0xff] %v4551_v61  ;;  %v5641_v26 = vld [vmem:[#allocation12_spill] sm:$0xff] }
 0x22c   :  { %2786 = vst.msk [vmem:[%s5443_s3 + $0xd8] sm:$0xf] %vm2731_vm0, %v3101_v53  ;;  %v4557_v56 = vpop.permute.xlu1 %1324  ;;  %5640 = vst [vmem:[#allocation42_spill] sm:$0xff] %v4569_v30  ;;  %v4573_v53 = vmax.f32 %v5641_v26, %v4274_v6  ;;  %v5644_v6 = vld [vmem:[#allocation14_spill] sm:$0xff] }
 0x22d   :  { %2737 = vst.msk [vmem:[%s5443_s3 + $0x14] sm:$0xf] %vm2731_vm0, %v3052_v12  ;;  %v2296_v1 = vmax.f32 %v2198_v7, 0.0  ;;  %1884 = vrot.lane.b32.xlu0 %v4544_v21, %s3346_s0  ;;  %v4589_v7 = vmax.f32 %v5644_v6, %v4286_v5  ;;  %v5647_v21 = vld [vmem:[#allocation67_spill] sm:$0xff]  ;;  %v5648_v5 = vld [vmem:[#allocation17_spill] sm:$0xff] }
 0x22e   :  { %1786 = vrot.lane.b32.xlu1 %v4551_v61, %s3346_s0  ;;  %5642 = vst [vmem:[#allocation43_spill] sm:$0xff] %v4573_v53  ;;  %v4604_v6 = vmax.f32 %v5648_v5, %v4300_v49 }
 0x22f   :  { %v3102_v20 = vpack.c.bf16 %v2296_v1, %v2296_v1  ;;  %v1757_v33 = vpop.permute.xlu0 %1756 }
 0x230   :  { %v2044_v54 = vmax.f32 %v5643_v29, %v1757_v33  ;;  %v4576_v12 = vpop.permute.xlu1 %1424  ;;  %v4593_v33 = vmax.f32 %v5645_v23, %v4288_v3  ;;  %v5646_v29 = vld [vmem:[#allocation66_spill] sm:$0xff] }
 0x231   :  { %2787 = vst.msk [vmem:[%s5443_s3 + $0xdc] sm:$0xf] %vm2731_vm0, %v3102_v20  ;;  %1788 = vrot.lane.b32.xlu0 %v4569_v30, %s3346_s0 }
 0x232   :  { %v2149_v9 = vadd.f32 %v4373_v18, %v2044_v54  ;;  %1886 = vrot.lane.b32.xlu1 %v4573_v53, %s3346_s0 }
 0x233   :  { %v1857_v1 = vpop.permute.xlu0 %1856 }
 0x234   :  { %v2247_v26 = vmax.f32 %v2149_v9, 0.0  ;;  %v2094_v20 = vmax.f32 %v5646_v29, %v1857_v1  ;;  %v1759_v61 = vpop.permute.xlu1 %1758  ;;  %v5649_v1 = vld [vmem:[#allocation16_spill] sm:$0xff] }
 0x235   :  { %v2045_v30 = vmax.f32 %v5647_v21, %v1759_v61  ;;  %1888 = vrot.lane.b32.xlu0 %v4589_v7, %s3346_s0  ;;  %v4611_v21 = vmax.f32 %v5649_v1, %v4298_v31  ;;  %v5650_v29 = vld [vmem:[#allocation68_spill] sm:$0xff]  ;;  %v5651_v31 = vld [vmem:[#allocation18_spill] sm:$0xff] }
 0x236   :  { %v3053_v54 = vpack.c.bf16 %v2247_v26, %v2247_v26  ;;  %v2199_v53 = vadd.f32 %v4373_v18, %v2094_v20  ;;  %1790 = vrot.lane.b32.xlu1 %v4593_v33, %s3346_s0 }
 0x237   :  { %v2150_v3 = vadd.f32 %v4373_v18, %v2045_v30  ;;  %v4607_v9 = vpop.permute.xlu0 %1326  ;;  %v4624_v30 = vmax.f32 %v5651_v31, %v4310_v60  ;;  %v5658_v31 = vld [vmem:[#allocation73_spill] sm:$0xff] }
 0x238   :  { %2738 = vst.msk [vmem:[%s5443_s3 + $0x18] sm:$0xf] %vm2731_vm0, %v3053_v54  ;;  %v2297_v61 = vmax.f32 %v2199_v53, 0.0  ;;  %v1859_v23 = vpop.permute.xlu1 %1858  ;;  %v5652_v53 = vld [vmem:[#allocation19_spill] sm:$0xff] }
 0x239   :  { %v2248_v26 = vmax.f32 %v2150_v3, 0.0  ;;  %v2095_v20 = vmax.f32 %v5650_v29, %v1859_v23  ;;  %1792 = vrot.lane.b32.xlu0 %v4604_v6, %s3346_s0  ;;  %v4631_v3 = vmax.f32 %v5652_v53, %v4312_v46  ;;  %v5654_v46 = vld [vmem:[#allocation21_spill] sm:$0xff] }
 0x23a   :  { %v3103_v49 = vpack.c.bf16 %v2297_v61, %v2297_v61  ;;  %1890 = vrot.lane.b32.xlu1 %v4611_v21, %s3346_s0  ;;  %v4649_v23 = vmax.f32 %v5654_v46, %v4324_v63  ;;  %v5660_v46 = vld [vmem:[#allocation23_spill] sm:$0xff] }
 0x23b   :  { %v3054_v5 = vpack.c.bf16 %v2248_v26, %v2248_v26  ;;  %v2200_v1 = vadd.f32 %v4373_v18, %v2095_v20  ;;  %v4627_v54 = vpop.permute.xlu0 %1426  ;;  %5653 = vst [vmem:[#allocation74_spill] sm:$0xff] %v4631_v3  ;;  %v5656_v20 = vld [vmem:[#allocation20_spill] sm:$0xff] }
 0x23c   :  { %2788 = vst.msk [vmem:[%s5443_s3 + $0xe0] sm:$0xf] %vm2731_vm0, %v3103_v49  ;;  %v4637_v61 = vpop.permute.xlu1 %1328  ;;  %5655 = vst [vmem:[#allocation44_spill] sm:$0xff] %v4649_v23  ;;  %v4653_v49 = vmax.f32 %v5656_v20, %v4322_v58  ;;  %v5659_v58 = vld [vmem:[#allocation22_spill] sm:$0xff] }
 0x23d   :  { %2739 = vst.msk [vmem:[%s5443_s3 + $0x1c] sm:$0xf] %vm2731_vm0, %v3054_v5  ;;  %v2298_v60 = vmax.f32 %v2200_v1, 0.0  ;;  %1892 = vrot.lane.b32.xlu0 %v4624_v30, %s3346_s0  ;;  %v4669_v1 = vmax.f32 %v5659_v58, %v4334_v8  ;;  %v5662_v8 = vld [vmem:[#allocation25_spill] sm:$0xff] }
 0x23e   :  { %1794 = vrot.lane.b32.xlu1 %v4631_v3, %s3346_s0  ;;  %5657 = vst [vmem:[#allocation5_spill] sm:$0xff] %v4653_v49  ;;  %v5661_v3 = vld [vmem:[#allocation78_spill] sm:$0xff]  ;;  %v4684_v58 = vmax.f32 %v5662_v8, %v4348_v45 }
 0x23f   :  { %v3104_v26 = vpack.c.bf16 %v2298_v60, %v2298_v60  ;;  %v1761_v29 = vpop.permute.xlu0 %1760 }
 0x240   :  { %v2046_v53 = vmax.f32 %v5658_v31, %v1761_v29  ;;  %v4656_v5 = vpop.permute.xlu1 %1428  ;;  %v4673_v29 = vmax.f32 %v5660_v46, %v4336_v14 }
 0x241   :  { %2789 = vst.msk [vmem:[%s5443_s3 + $0xe4] sm:$0xf] %vm2731_vm0, %v3104_v26  ;;  %1796 = vrot.lane.b32.xlu0 %v4649_v23, %s3346_s0 }
 0x242   :  { %v2151_v63 = vadd.f32 %v4373_v18, %v2046_v53  ;;  %1894 = vrot.lane.b32.xlu1 %v4653_v49, %s3346_s0 }
 0x243   :  { %v1861_v60 = vpop.permute.xlu0 %1860 }
 0x244   :  { %v2249_v20 = vmax.f32 %v2151_v63, 0.0  ;;  %v2096_v26 = vmax.f32 %v4220_v0, %v1861_v60  ;;  %v1763_v31 = vpop.permute.xlu1 %1762  ;;  %v5663_v0 = vld [vmem:[#allocation24_spill] sm:$0xff] }
 0x245   :  { %v2047_v23 = vmax.f32 %v5661_v3, %v1763_v31  ;;  %1896 = vrot.lane.b32.xlu0 %v4669_v1, %s3346_s0  ;;  %v4691_v3 = vmax.f32 %v5663_v0, %v4346_v39  ;;  %v5664_v39 = vld [vmem:[#allocation26_spill] sm:$0xff] }
 0x246   :  { %v3055_v53 = vpack.c.bf16 %v2249_v20, %v2249_v20  ;;  %v2201_v49 = vadd.f32 %v4373_v18, %v2096_v26  ;;  %1798 = vrot.lane.b32.xlu1 %v4673_v29, %s3346_s0 }
 0x247   :  { %v2152_v14 = vadd.f32 %v4373_v18, %v2047_v23  ;;  %v4687_v63 = vpop.permute.xlu0 %1330  ;;  %v4704_v23 = vmax.f32 %v5664_v39, %v4358_v38 }
 0x248   :  { %2740 = vst.msk [vmem:[%s5443_s3 + $0x20] sm:$0xf] %vm2731_vm0, %v3055_v53  ;;  %v2299_v60 = vmax.f32 %v2201_v49, 0.0  ;;  %v1863_v46 = vpop.permute.xlu1 %1862  ;;  %v5665_v49 = vld [vmem:[#allocation27_spill] sm:$0xff] }
 0x249   :  { %v2250_v20 = vmax.f32 %v2152_v14, 0.0  ;;  %v2097_v26 = vmax.f32 %v4240_v22, %v1863_v46  ;;  %1800 = vrot.lane.b32.xlu0 %v4684_v58, %s3346_s0  ;;  %v4711_v14 = vmax.f32 %v5665_v49, %v4360_v17  ;;  %v5666_v17 = vld [vmem:[#allocation29_spill] sm:$0xff] }
 0x24a   :  { %v3105_v45 = vpack.c.bf16 %v2299_v60, %v2299_v60  ;;  %1898 = vrot.lane.b32.xlu1 %v4691_v3, %s3346_s0  ;;  %v4729_v0 = vmax.f32 %v5666_v17, %v4399_v48 }
 0x24b   :  { %v3056_v31 = vpack.c.bf16 %v2250_v20, %v2250_v20  ;;  %v2202_v8 = vadd.f32 %v4373_v18, %v2097_v26  ;;  %v4707_v53 = vpop.permute.xlu0 %1430  ;;  %v5667_v20 = vld [vmem:[#allocation28_spill] sm:$0xff] }
 0x24c   :  { %2790 = vst.msk [vmem:[%s5443_s3 + $0xe8] sm:$0xf] %vm2731_vm0, %v3105_v45  ;;  %v4717_v22 = vpop.permute.xlu1 %1332  ;;  %v4733_v26 = vmax.f32 %v5667_v20, %v4375_v62  ;;  %v5668_v62 = vld [vmem:[#allocation30_spill] sm:$0xff] }
 0x24d   :  { %2741 = vst.msk [vmem:[%s5443_s3 + $0x24] sm:$0xf] %vm2731_vm0, %v3056_v31  ;;  %v2300_v38 = vmax.f32 %v2202_v8, 0.0  ;;  %1900 = vrot.lane.b32.xlu0 %v4704_v23, %s3346_s0  ;;  %v4749_v31 = vmax.f32 %v5668_v62, %v4415_v42  ;;  %v5669_v8 = vld [vmem:[#allocation31_spill] sm:$0xff]  ;;  %v5670_v42 = vld [vmem:[#allocation33_spill] sm:$0xff] }
 0x24e   :  { %1802 = vrot.lane.b32.xlu1 %v4711_v14, %s3346_s0  ;;  %v4753_v49 = vmax.f32 %v5669_v8, %v4421_v34  ;;  %v4764_v62 = vmax.f32 %v5670_v42, %v4463_v55 }
 0x24f   :  { %v3106_v60 = vpack.c.bf16 %v2300_v38, %v2300_v38  ;;  %v1765_v46 = vpop.permute.xlu0 %1764 }
 0x250   :  { %v2048_v45 = vmax.f32 %v4260_v24, %v1765_v46  ;;  %v4736_v39 = vpop.permute.xlu1 %1432 }
 0x251   :  { %2791 = vst.msk [vmem:[%s5443_s3 + $0xec] sm:$0xf] %vm2731_vm0, %v3106_v60  ;;  %1804 = vrot.lane.b32.xlu0 %v4729_v0, %s3346_s0 }
 0x252   :  { %v2153_v48 = vadd.f32 %v4373_v18, %v2048_v45  ;;  %1902 = vrot.lane.b32.xlu1 %v4733_v26, %s3346_s0 }
 0x253   :  { %v1865_v24 = vpop.permute.xlu0 %1864 }
 0x254   :  { %v2251_v38 = vmax.f32 %v2153_v48, 0.0  ;;  %v2098_v17 = vmax.f32 %v4272_v41, %v1865_v24  ;;  %v1767_v60 = vpop.permute.xlu1 %1766  ;;  %v5671_v41 = vld [vmem:[#allocation32_spill] sm:$0xff] }
 0x255   :  { %v2049_v46 = vmax.f32 %v4280_v27, %v1767_v60  ;;  %1904 = vrot.lane.b32.xlu0 %v4749_v31, %s3346_s0  ;;  %v4771_v27 = vmax.f32 %v5671_v41, %v4440_v13  ;;  %v5672_v13 = vld [vmem:[#allocation34_spill] sm:$0xff] }
 0x256   :  { %v3057_v20 = vpack.c.bf16 %v2251_v38, %v2251_v38  ;;  %v2203_v45 = vadd.f32 %v4373_v18, %v2098_v17  ;;  %1806 = vrot.lane.b32.xlu1 %v4753_v49, %s3346_s0  ;;  %v4784_v60 = vmax.f32 %v5672_v13, %v4479_v10 }
 0x257   :  { %v2154_v34 = vadd.f32 %v4373_v18, %v2049_v46  ;;  %v4767_v48 = vpop.permute.xlu0 %1334 }
 0x258   :  { %2742 = vst.msk [vmem:[%s5443_s3 + $0x28] sm:$0xf] %vm2731_vm0, %v3057_v20  ;;  %v2301_v24 = vmax.f32 %v2203_v45, 0.0  ;;  %v1867_v8 = vpop.permute.xlu1 %1866  ;;  %v5673_v45 = vld [vmem:[#allocation35_spill] sm:$0xff] }
 0x259   :  { %v2252_v38 = vmax.f32 %v2154_v34, 0.0  ;;  %v2099_v17 = vmax.f32 %v4292_v28, %v1867_v8  ;;  %1808 = vrot.lane.b32.xlu0 %v4764_v62, %s3346_s0  ;;  %v4791_v34 = vmax.f32 %v5673_v45, %v4485_v15  ;;  %v5674_v15 = vld [vmem:[#allocation38_spill] sm:$0xff] }
 0x25a   :  { %v3107_v55 = vpack.c.bf16 %v2301_v24, %v2301_v24  ;;  %1906 = vrot.lane.b32.xlu1 %v4771_v27, %s3346_s0  ;;  %v4809_v41 = vmax.f32 %v5674_v15, %v4531_v50 }
 0x25b   :  { %v3058_v46 = vpack.c.bf16 %v2252_v38, %v2252_v38  ;;  %v2204_v42 = vadd.f32 %v4373_v18, %v2099_v17  ;;  %v4787_v20 = vpop.permute.xlu0 %1434  ;;  %v5675_v38 = vld [vmem:[#allocation36_spill] sm:$0xff] }
 0x25c   :  { %2792 = vst.msk [vmem:[%s5443_s3 + $0xf0] sm:$0xf] %vm2731_vm0, %v3107_v55  ;;  %v4797_v28 = vpop.permute.xlu1 %1336  ;;  %v4813_v17 = vmax.f32 %v5675_v38, %v4504_v51  ;;  %v5676_v51 = vld [vmem:[#allocation39_spill] sm:$0xff] }
 0x25d   :  { %2743 = vst.msk [vmem:[%s5443_s3 + $0x2c] sm:$0xf] %vm2731_vm0, %v3058_v46  ;;  %v2302_v10 = vmax.f32 %v2204_v42, 0.0  ;;  %1908 = vrot.lane.b32.xlu0 %v4784_v60, %s3346_s0  ;;  %v4829_v46 = vmax.f32 %v5676_v51, %v4547_v2  ;;  %v5677_v42 = vld [vmem:[#allocation40_spill] sm:$0xff]  ;;  %v5678_v2 = vld [vmem:[#allocation45_spill] sm:$0xff] }
 0x25e   :  { %1810 = vrot.lane.b32.xlu1 %v4791_v34, %s3346_s0  ;;  %v4833_v45 = vmax.f32 %v5677_v42, %v4557_v56  ;;  %v4844_v51 = vmax.f32 %v5678_v2, %v4607_v9 }
 0x25f   :  { %v3108_v24 = vpack.c.bf16 %v2302_v10, %v2302_v10  ;;  %v1769_v8 = vpop.permute.xlu0 %1768 }
 0x260   :  { %v2050_v55 = vmax.f32 %v4308_v32, %v1769_v8  ;;  %v4816_v13 = vpop.permute.xlu1 %1436 }
 0x261   :  { %2793 = vst.msk [vmem:[%s5443_s3 + $0xf4] sm:$0xf] %vm2731_vm0, %v3108_v24  ;;  %1812 = vrot.lane.b32.xlu0 %v4809_v41, %s3346_s0 }
 0x262   :  { %v2155_v50 = vadd.f32 %v4373_v18, %v2050_v55  ;;  %1910 = vrot.lane.b32.xlu1 %v4813_v17, %s3346_s0 }
 0x263   :  { %v1869_v32 = vpop.permute.xlu0 %1868 }
 0x264   :  { %v2253_v10 = vmax.f32 %v2155_v50, 0.0  ;;  %v2100_v15 = vmax.f32 %v4320_v37, %v1869_v32  ;;  %v1771_v24 = vpop.permute.xlu1 %1770  ;;  %v5679_v37 = vld [vmem:[#allocation41_spill] sm:$0xff] }
 0x265   :  { %v2051_v8 = vmax.f32 %v4328_v35, %v1771_v24  ;;  %1912 = vrot.lane.b32.xlu0 %v4829_v46, %s3346_s0  ;;  %v4851_v35 = vmax.f32 %v5679_v37, %v4576_v12  ;;  %v5681_v12 = vld [vmem:[#allocation46_spill] sm:$0xff] }
 0x266   :  { %v3059_v38 = vpack.c.bf16 %v2253_v10, %v2253_v10  ;;  %v2205_v55 = vadd.f32 %v4373_v18, %v2100_v15  ;;  %1814 = vrot.lane.b32.xlu1 %v4833_v45, %s3346_s0  ;;  %v5680_v15 = vld [vmem:[#allocation79_spill] sm:$0xff] }
 0x267   :  { %v2156_v56 = vadd.f32 %v4373_v18, %v2051_v8  ;;  %v4847_v50 = vpop.permute.xlu0 %1338  ;;  %v4864_v8 = vmax.f32 %v5681_v12, %v4627_v54  ;;  %v5687_v12 = vld [vmem:[#allocation80_spill] sm:$0xff] }
 0x268   :  { %2744 = vst.msk [vmem:[%s5443_s3 + $0x30] sm:$0xf] %vm2731_vm0, %v3059_v38  ;;  %v2303_v32 = vmax.f32 %v2205_v55, 0.0  ;;  %v1871_v42 = vpop.permute.xlu1 %1870  ;;  %v5682_v55 = vld [vmem:[#allocation47_spill] sm:$0xff] }
 0x269   :  { %v2254_v10 = vmax.f32 %v2156_v56, 0.0  ;;  %v2101_v24 = vmax.f32 %v5680_v15, %v1871_v42  ;;  %1816 = vrot.lane.b32.xlu0 %v4844_v51, %s3346_s0  ;;  %v4869_v56 = vmax.f32 %v5682_v55, %v4637_v61  ;;  %v5683_v61 = vld [vmem:[#allocation50_spill] sm:$0xff] }
 0x26a   :  { %v3109_v9 = vpack.c.bf16 %v2303_v32, %v2303_v32  ;;  %1914 = vrot.lane.b32.xlu1 %v4851_v35, %s3346_s0  ;;  %v4885_v42 = vmax.f32 %v5683_v61, %v4687_v63  ;;  %v5689_v61 = vld [vmem:[#allocation52_spill] sm:$0xff] }
 0x26b   :  { %v3060_v2 = vpack.c.bf16 %v2254_v10, %v2254_v10  ;;  %v2206_v37 = vadd.f32 %v4373_v18, %v2101_v24  ;;  %v1439_v38 = vpop.permute.xlu0 %1438  ;;  %v5685_v24 = vld [vmem:[#allocation48_spill] sm:$0xff] }
 0x26c   :  { %2794 = vst.msk [vmem:[%s5443_s3 + $0xf8] sm:$0xf] %vm2731_vm0, %v3109_v9  ;;  %v1341_v32 = vpop.permute.xlu1 %1340  ;;  %5684 = vst [vmem:[#allocation6_spill] sm:$0xff] %v4885_v42  ;;  %v4889_v9 = vmax.f32 %v5685_v24, %v4656_v5  ;;  %v5688_v5 = vld [vmem:[#allocation51_spill] sm:$0xff] }
 0x26d   :  { %2745 = vst.msk [vmem:[%s5443_s3 + $0x34] sm:$0xf] %vm2731_vm0, %v3060_v2  ;;  %v2304_v54 = vmax.f32 %v2206_v37, 0.0  ;;  %1916 = vrot.lane.b32.xlu0 %v4864_v8, %s3346_s0  ;;  %v4905_v37 = vmax.f32 %v5688_v5, %v4707_v53  ;;  %v5690_v53 = vld [vmem:[#allocation57_spill] sm:$0xff] }
 0x26e   :  { %1818 = vrot.lane.b32.xlu1 %v4869_v56, %s3346_s0  ;;  %5686 = vst [vmem:[#allocation7_spill] sm:$0xff] %v4889_v9  ;;  %v4920_v5 = vmax.f32 %v5690_v53, %v4767_v48 }
 0x26f   :  { %v3110_v10 = vpack.c.bf16 %v2304_v54, %v2304_v54  ;;  %v1773_v15 = vpop.permute.xlu0 %1772 }
 0x270   :  { %v2052_v55 = vmax.f32 %v5687_v12, %v1773_v15  ;;  %v4892_v2 = vpop.permute.xlu1 %1440  ;;  %v4909_v15 = vmax.f32 %v5689_v61, %v4717_v22 }
 0x271   :  { %2795 = vst.msk [vmem:[%s5443_s3 + $0xfc] sm:$0xf] %vm2731_vm0, %v3110_v10  ;;  %1820 = vrot.lane.b32.xlu0 %v4885_v42, %s3346_s0 }
 0x272   :  { %v2157_v63 = vadd.f32 %v4373_v18, %v2052_v55  ;;  %1918 = vrot.lane.b32.xlu1 %v4889_v9, %s3346_s0 }
 0x273   :  { %v1873_v54 = vpop.permute.xlu0 %1872 }
 0x274   :  { %v2255_v24 = vmax.f32 %v2157_v63, 0.0  ;;  %v2102_v10 = vmax.f32 %v4368_v59, %v1873_v54  ;;  %v1775_v12 = vpop.permute.xlu1 %1774  ;;  %v5691_v59 = vld [vmem:[#allocation53_spill] sm:$0xff] }
 0x275   :  { %v2053_v42 = vmax.f32 %v4379_v4, %v1775_v12  ;;  %1920 = vrot.lane.b32.xlu0 %v4905_v37, %s3346_s0  ;;  %v4925_v54 = vmax.f32 %v5691_v59, %v4736_v39  ;;  %v5692_v39 = vld [vmem:[#allocation58_spill] sm:$0xff] }
 0x276   :  { %v3061_v55 = vpack.c.bf16 %v2255_v24, %v2255_v24  ;;  %v2207_v9 = vadd.f32 %v4373_v18, %v2102_v10  ;;  %1822 = vrot.lane.b32.xlu1 %v4909_v15, %s3346_s0 }
 0x277   :  { %v2158_v22 = vadd.f32 %v4373_v18, %v2053_v42  ;;  %v1343_v63 = vpop.permute.xlu0 %1342  ;;  %v4938_v42 = vmax.f32 %v5692_v39, %v4787_v20 }
 0x278   :  { %2746 = vst.msk [vmem:[%s5443_s3 + $0x38] sm:$0xf] %vm2731_vm0, %v3061_v55  ;;  %v2305_v4 = vmax.f32 %v2207_v9, 0.0  ;;  %v1875_v61 = vpop.permute.xlu1 %1874  ;;  %v5693_v9 = vld [vmem:[#allocation59_spill] sm:$0xff] }
 0x279   :  { %v2256_v24 = vmax.f32 %v2158_v22, 0.0  ;;  %v2103_v10 = vmax.f32 %v4389_v11, %v1875_v61  ;;  %1824 = vrot.lane.b32.xlu0 %v4920_v5, %s3346_s0  ;;  %v4943_v22 = vmax.f32 %v5693_v9, %v4797_v28  ;;  %v5694_v28 = vld [vmem:[#allocation62_spill] sm:$0xff]  ;;  %v5697_v9 = vld [vmem:[#allocation64_spill] sm:$0xff] }
 0x27a   :  { %v3111_v48 = vpack.c.bf16 %v2305_v4, %v2305_v4  ;;  %1922 = vrot.lane.b32.xlu1 %v4925_v54, %s3346_s0  ;;  %v4959_v59 = vmax.f32 %v5694_v28, %v4847_v50 }
 0x27b   :  { %v3062_v12 = vpack.c.bf16 %v2256_v24, %v2256_v24  ;;  %v2208_v53 = vadd.f32 %v4373_v18, %v2103_v10  ;;  %v1443_v55 = vpop.permute.xlu0 %1442  ;;  %v5695_v24 = vld [vmem:[#allocation60_spill] sm:$0xff] }
 0x27c   :  { %2796 = vst.msk [vmem:[%s5443_s3 + $0x100] sm:$0xf] %vm2731_vm0, %v3111_v48  ;;  %v1345_v11 = vpop.permute.xlu1 %1344  ;;  %v4963_v10 = vmax.f32 %v5695_v24, %v4816_v13 }
 0x27d   :  { %2747 = vst.msk [vmem:[%s5443_s3 + $0x3c] sm:$0xf] %vm2731_vm0, %v3062_v12  ;;  %v2306_v20 = vmax.f32 %v2208_v53, 0.0  ;;  %1924 = vrot.lane.b32.xlu0 %v4938_v42, %s3346_s0  ;;  %v5696_v12 = vld [vmem:[#allocation63_spill] sm:$0xff] }
 0x27e   :  { %1826 = vrot.lane.b32.xlu1 %v4943_v22, %s3346_s0  ;;  %v4976_v53 = vmax.f32 %v5696_v12, %v1439_v38  ;;  %v5698_v38 = vld [vmem:[#allocation69_spill] sm:$0xff] }
 0x27f   :  { %v3112_v4 = vpack.c.bf16 %v2306_v20, %v2306_v20  ;;  %v1777_v61 = vpop.permute.xlu0 %1776  ;;  %v4989_v12 = vmax.f32 %v5698_v38, %v1343_v63 }
 0x280   :  { %v2054_v48 = vmax.f32 %v4412_v36, %v1777_v61  ;;  %v1445_v39 = vpop.permute.xlu1 %1444  ;;  %v4979_v36 = vmax.f32 %v5697_v9, %v1341_v32 }
 0x281   :  { %2797 = vst.msk [vmem:[%s5443_s3 + $0x104] sm:$0xf] %vm2731_vm0, %v3112_v4  ;;  %1828 = vrot.lane.b32.xlu0 %v4959_v59, %s3346_s0 }
 0x282   :  { %v2159_v50 = vadd.f32 %v4373_v18, %v2054_v48  ;;  %1926 = vrot.lane.b32.xlu1 %v4963_v10, %s3346_s0 }
 0x283   :  { %v1877_v13 = vpop.permute.xlu0 %1876 }
 0x284   :  { %v2257_v20 = vmax.f32 %v2159_v50, 0.0  ;;  %v2104_v28 = vmax.f32 %v4433_v16, %v1877_v13  ;;  %v1779_v61 = vpop.permute.xlu1 %1778  ;;  %v5699_v16 = vld [vmem:[#allocation65_spill] sm:$0xff] }
 0x285   :  { %v2055_v4 = vmax.f32 %v4437_v25, %v1779_v61  ;;  %1928 = vrot.lane.b32.xlu0 %v4976_v53, %s3346_s0  ;;  %v4994_v13 = vmax.f32 %v5699_v16, %v4892_v2  ;;  %v5700_v61 = vld [vmem:[#allocation70_spill] sm:$0xff] }
 0x286   :  { %v3063_v24 = vpack.c.bf16 %v2257_v20, %v2257_v20  ;;  %v2209_v48 = vadd.f32 %v4373_v18, %v2104_v28  ;;  %1830 = vrot.lane.b32.xlu1 %v4979_v36, %s3346_s0  ;;  %v5006_v2 = vmax.f32 %v5700_v61, %v1443_v55 }
 0x287   :  { %v2160_v32 = vadd.f32 %v4373_v18, %v2055_v4  ;;  %v1347_v50 = vpop.permute.xlu0 %1346 }
 0x288   :  { %2748 = vst.msk [vmem:[%s5443_s3 + $0x40] sm:$0xf] %vm2731_vm0, %v3063_v24  ;;  %v2307_v25 = vmax.f32 %v2209_v48, 0.0  ;;  %v1879_v9 = vpop.permute.xlu1 %1878  ;;  %v5701_v24 = vld [vmem:[#allocation71_spill] sm:$0xff] }
 0x289   :  { %v2258_v20 = vmax.f32 %v2160_v32, 0.0  ;;  %v2105_v28 = vmax.f32 %v4453_v47, %v1879_v9  ;;  %1832 = vrot.lane.b32.xlu0 %v4989_v12, %s3346_s0  ;;  %v5010_v48 = vmax.f32 %v5701_v24, %v1345_v11  ;;  %v5025_v11 = vmax.f32 %v5621_v40, %v1347_v50  ;;  %v5703_v9 = vld [vmem:[#allocation72_spill] sm:$0xff] }
 0x28a   :  { %v3113_v63 = vpack.c.bf16 %v2307_v25, %v2307_v25  ;;  %1930 = vrot.lane.b32.xlu1 %v4994_v13, %s3346_s0  ;;  %v5704_v50 = vld [vmem:[#allocation76_spill] sm:$0xff] }
 0x28b   :  { %v3064_v4 = vpack.c.bf16 %v2258_v20, %v2258_v20  ;;  %v2210_v38 = vadd.f32 %v4373_v18, %v2105_v28  ;;  %v1447_v16 = vpop.permute.xlu0 %1446  ;;  %5702 = vst [vmem:[#allocation49_spill] sm:$0xff] %v5025_v11  ;;  %v5028_v20 = vmax.f32 %v5703_v9, %v1445_v39 }
 0x28c   :  { %2798 = vst.msk [vmem:[%s5443_s3 + $0x108] sm:$0xf] %vm2731_vm0, %v3113_v63  ;;  %v1349_v47 = vpop.permute.xlu1 %1348 }
 0x28d   :  { %2749 = vst.msk [vmem:[%s5443_s3 + $0x44] sm:$0xf] %vm2731_vm0, %v3064_v4  ;;  %v2308_v55 = vmax.f32 %v2210_v38, 0.0  ;;  %1932 = vrot.lane.b32.xlu0 %v5006_v2, %s3346_s0  ;;  %v5041_v39 = vmax.f32 %v5704_v50, %v1349_v47 }
 0x28e   :  { %1834 = vrot.lane.b32.xlu1 %v5010_v48, %s3346_s0 }
 0x28f   :  { %v3114_v32 = vpack.c.bf16 %v2308_v55, %v2308_v55  ;;  %v1781_v25 = vpop.permute.xlu0 %1780  ;;  %5705 = vst [vmem:[#allocation8_spill] sm:$0xff] %v5041_v39  ;;  %v5707_v55 = vld [vmem:[#allocation3_spill] sm:$0xff] }
 0x290   :  { %v2056_v28 = vmax.f32 %v4476_v43, %v1781_v25  ;;  %v1449_v63 = vpop.permute.xlu1 %1448  ;;  %v5706_v43 = vld [vmem:[#allocation2_spill] sm:$0xff] }
 0x291   :  { %2799 = vst.msk [vmem:[%s5443_s3 + $0x10c] sm:$0xf] %vm2731_vm0, %v3114_v32  ;;  %1836 = vrot.lane.b32.xlu0 %v5025_v11, %s3346_s0 }
 0x292   :  { %v2161_v61 = vadd.f32 %v4373_v18, %v2056_v28  ;;  %1934 = vrot.lane.b32.xlu1 %v5028_v20, %s3346_s0 }
 0x293   :  { %v1881_v40 = vpop.permute.xlu0 %1880 }
 0x294   :  { %v2259_v4 = vmax.f32 %v2161_v61, 0.0  ;;  %v2106_v38 = vmax.f32 %v5706_v43, %v1881_v40  ;;  %v1783_v24 = vpop.permute.xlu1 %1782 }
 0x295   :  { %v2057_v25 = vmax.f32 %v5707_v55, %v1783_v24 }
 0x296   :  { %v3065_v9 = vpack.c.bf16 %v2259_v4, %v2259_v4  ;;  %v2211_v32 = vadd.f32 %v4373_v18, %v2106_v38  ;;  %1838 = vrot.lane.b32.xlu1 %v5041_v39, %s3346_s0 }
 0x297   :  { %v2162_v28 = vadd.f32 %v4373_v18, %v2057_v25  ;;  %v1351_v11 = vpop.permute.xlu0 %1350  ;;  %v5708_v25 = vld [vmem:[#allocation75_spill] sm:$0xff] }
 0x298   :  { %2750 = vst.msk [vmem:[%s5443_s3 + $0x48] sm:$0xf] %vm2731_vm0, %v3065_v9  ;;  %v2309_v47 = vmax.f32 %v2211_v32, 0.0  ;;  %v5054_v61 = vmax.f32 %v4242_v19, %v1351_v11  ;;  %v1883_v40 = vpop.permute.xlu1 %1882  ;;  %v5061_v39 = vmax.f32 %v5708_v25, %v1447_v16 }
 0x299   :  { %v2260_v50 = vmax.f32 %v2162_v28, 0.0  ;;  %v2107_v4 = vmax.f32 %v4517_v44, %v1883_v40 }
 0x29a   :  { %v3115_v43 = vpack.c.bf16 %v2309_v47, %v2309_v47  ;;  %1840 = vrot.lane.b32.xlu0 %v5054_v61, %s3346_s0  ;;  %v5709_v47 = vld [vmem:[#allocation37_spill] sm:$0xff] }
 0x29b   :  { %v3066_v38 = vpack.c.bf16 %v2260_v50, %v2260_v50  ;;  %v2212_v24 = vadd.f32 %v4373_v18, %v2107_v4  ;;  %v1785_v55 = vpop.permute.xlu0 %1784  ;;  %v5710_v4 = vld [vmem:[#allocation77_spill] sm:$0xff] }
 0x29c   :  { %2800 = vst.msk [vmem:[%s5443_s3 + $0x110] sm:$0xf] %vm2731_vm0, %v3115_v43  ;;  %v2058_v19 = vmax.f32 %v4528_v57, %v1785_v55  ;;  %v1353_v11 = vpop.permute.xlu1 %1352  ;;  %v5082_v43 = vmax.f32 %v5710_v4, %v1449_v63 }
 0x29d   :  { %2751 = vst.msk [vmem:[%s5443_s3 + $0x4c] sm:$0xf] %vm2731_vm0, %v3066_v38  ;;  %v2310_v44 = vmax.f32 %v2212_v24, 0.0  ;;  %v5073_v9 = vmax.f32 %v4248_v52, %v1353_v11  ;;  %v5711_v52 = vld [vmem:[#allocation4_spill] sm:$0xff]  ;;  %v5712_v11 = vld [vmem:[#allocation42_spill] sm:$0xff] }
 0x29e   :  { %v2163_v16 = vadd.f32 %v4373_v18, %v2058_v19  ;;  %1936 = vrot.lane.b32.xlu0 %v5061_v39, %s3346_s0 }
 0x29f   :  { %v3116_v32 = vpack.c.bf16 %v2310_v44, %v2310_v44  ;;  %v1885_v28 = vpop.permute.xlu0 %1884  ;;  %1842 = vrot.lane.b32.xlu1 %v5073_v9, %s3346_s0 }
 0x2a0   :  { %v2261_v57 = vmax.f32 %v2163_v16, 0.0  ;;  %v2108_v40 = vmax.f32 %v5709_v47, %v1885_v28  ;;  %v1787_v50 = vpop.permute.xlu1 %1786  ;;  %v5713_v28 = vld [vmem:[#allocation43_spill] sm:$0xff] }
 0x2a1   :  { %2801 = vst.msk [vmem:[%s5443_s3 + $0x114] sm:$0xf] %vm2731_vm0, %v3116_v32  ;;  %v2059_v38 = vmax.f32 %v5711_v52, %v1787_v50 }
 0x2a2   :  { %v3067_v24 = vpack.c.bf16 %v2261_v57, %v2261_v57  ;;  %v2213_v55 = vadd.f32 %v4373_v18, %v2108_v40 }
 0x2a3   :  { %v2164_v25 = vadd.f32 %v4373_v18, %v2059_v38  ;;  %v1789_v19 = vpop.permute.xlu0 %1788  ;;  %1938 = vrot.lane.b32.xlu1 %v5082_v43, %s3346_s0 }
 0x2a4   :  { %2752 = vst.msk [vmem:[%s5443_s3 + $0x50] sm:$0xf] %vm2731_vm0, %v3067_v24  ;;  %v2311_v63 = vmax.f32 %v2213_v55, 0.0  ;;  %v2060_v44 = vmax.f32 %v5712_v11, %v1789_v19  ;;  %v1887_v16 = vpop.permute.xlu1 %1886 }
 0x2a5   :  { %v2262_v32 = vmax.f32 %v2164_v25, 0.0  ;;  %v2109_v57 = vmax.f32 %v5713_v28, %v1887_v16 }
 0x2a6   :  { %v3117_v47 = vpack.c.bf16 %v2311_v63, %v2311_v63  ;;  %v2165_v40 = vadd.f32 %v4373_v18, %v2060_v44 }
 0x2a7   :  { %v3068_v50 = vpack.c.bf16 %v2262_v32, %v2262_v32  ;;  %v2214_v4 = vadd.f32 %v4373_v18, %v2109_v57  ;;  %v1889_v52 = vpop.permute.xlu0 %1888 }
 0x2a8   :  { %2802 = vst.msk [vmem:[%s5443_s3 + $0x118] sm:$0xf] %vm2731_vm0, %v3117_v47  ;;  %v2263_v38 = vmax.f32 %v2165_v40, 0.0  ;;  %v2110_v24 = vmax.f32 %v4589_v7, %v1889_v52  ;;  %v1791_v55 = vpop.permute.xlu1 %1790 }
 0x2a9   :  { %2753 = vst.msk [vmem:[%s5443_s3 + $0x54] sm:$0xf] %vm2731_vm0, %v3068_v50  ;;  %v2312_v25 = vmax.f32 %v2214_v4, 0.0  ;;  %v2061_v19 = vmax.f32 %v4593_v33, %v1791_v55 }
 0x2aa   :  { %v3069_v63 = vpack.c.bf16 %v2263_v38, %v2263_v38  ;;  %v2215_v11 = vadd.f32 %v4373_v18, %v2110_v24 }
 0x2ab   :  { %v3118_v44 = vpack.c.bf16 %v2312_v25, %v2312_v25  ;;  %v2166_v16 = vadd.f32 %v4373_v18, %v2061_v19  ;;  %v1793_v32 = vpop.permute.xlu0 %1792  ;;  %v5714_v25 = vld [vmem:[#allocation74_spill] sm:$0xff] }
 0x2ac   :  { %2754 = vst.msk [vmem:[%s5443_s3 + $0x58] sm:$0xf] %vm2731_vm0, %v3069_v63  ;;  %v2313_v7 = vmax.f32 %v2215_v11, 0.0  ;;  %v2062_v28 = vmax.f32 %v4604_v6, %v1793_v32  ;;  %v1891_v57 = vpop.permute.xlu1 %1890 }
 0x2ad   :  { %2803 = vst.msk [vmem:[%s5443_s3 + $0x11c] sm:$0xf] %vm2731_vm0, %v3118_v44  ;;  %v2264_v33 = vmax.f32 %v2166_v16, 0.0  ;;  %v2111_v47 = vmax.f32 %v4611_v21, %v1891_v57 }
 0x2ae   :  { %v3119_v40 = vpack.c.bf16 %v2313_v7, %v2313_v7  ;;  %v2167_v50 = vadd.f32 %v4373_v18, %v2062_v28  ;;  %v5715_v7 = vld [vmem:[#allocation44_spill] sm:$0xff] }
 0x2af   :  { %v3070_v4 = vpack.c.bf16 %v2264_v33, %v2264_v33  ;;  %v2216_v52 = vadd.f32 %v4373_v18, %v2111_v47  ;;  %v1893_v38 = vpop.permute.xlu0 %1892  ;;  %v5716_v47 = vld [vmem:[#allocation5_spill] sm:$0xff] }
 0x2b0   :  { %2804 = vst.msk [vmem:[%s5443_s3 + $0x120] sm:$0xf] %vm2731_vm0, %v3119_v40  ;;  %v2265_v6 = vmax.f32 %v2167_v50, 0.0  ;;  %v2112_v24 = vmax.f32 %v4624_v30, %v1893_v38  ;;  %v1795_v55 = vpop.permute.xlu1 %1794 }
 0x2b1   :  { %2755 = vst.msk [vmem:[%s5443_s3 + $0x5c] sm:$0xf] %vm2731_vm0, %v3070_v4  ;;  %v2314_v21 = vmax.f32 %v2216_v52, 0.0  ;;  %v2063_v19 = vmax.f32 %v5714_v25, %v1795_v55 }
 0x2b2   :  { %v3071_v63 = vpack.c.bf16 %v2265_v6, %v2265_v6  ;;  %v2217_v11 = vadd.f32 %v4373_v18, %v2112_v24 }
 0x2b3   :  { %v3120_v44 = vpack.c.bf16 %v2314_v21, %v2314_v21  ;;  %v2168_v16 = vadd.f32 %v4373_v18, %v2063_v19  ;;  %v1797_v32 = vpop.permute.xlu0 %1796 }
 0x2b4   :  { %2756 = vst.msk [vmem:[%s5443_s3 + $0x60] sm:$0xf] %vm2731_vm0, %v3071_v63  ;;  %v2315_v30 = vmax.f32 %v2217_v11, 0.0  ;;  %v2064_v28 = vmax.f32 %v5715_v7, %v1797_v32  ;;  %v1895_v57 = vpop.permute.xlu1 %1894 }
 0x2b5   :  { %2805 = vst.msk [vmem:[%s5443_s3 + $0x124] sm:$0xf] %vm2731_vm0, %v3120_v44  ;;  %v2266_v33 = vmax.f32 %v2168_v16, 0.0  ;;  %v2113_v40 = vmax.f32 %v5716_v47, %v1895_v57 }
 0x2b6   :  { %v3121_v50 = vpack.c.bf16 %v2315_v30, %v2315_v30  ;;  %v2169_v4 = vadd.f32 %v4373_v18, %v2064_v28 }
 0x2b7   :  { %v3072_v52 = vpack.c.bf16 %v2266_v33, %v2266_v33  ;;  %v2218_v38 = vadd.f32 %v4373_v18, %v2113_v40  ;;  %v1897_v6 = vpop.permute.xlu0 %1896 }
 0x2b8   :  { %2806 = vst.msk [vmem:[%s5443_s3 + $0x128] sm:$0xf] %vm2731_vm0, %v3121_v50  ;;  %v2267_v24 = vmax.f32 %v2169_v4, 0.0  ;;  %v2114_v55 = vmax.f32 %v4669_v1, %v1897_v6  ;;  %v1799_v21 = vpop.permute.xlu1 %1798 }
 0x2b9   :  { %2757 = vst.msk [vmem:[%s5443_s3 + $0x64] sm:$0xf] %vm2731_vm0, %v3072_v52  ;;  %v2316_v25 = vmax.f32 %v2218_v38, 0.0  ;;  %v2065_v19 = vmax.f32 %v4673_v29, %v1799_v21 }
 0x2ba   :  { %v3073_v63 = vpack.c.bf16 %v2267_v24, %v2267_v24  ;;  %v2219_v11 = vadd.f32 %v4373_v18, %v2114_v55 }
 0x2bb   :  { %v3122_v44 = vpack.c.bf16 %v2316_v25, %v2316_v25  ;;  %v2170_v16 = vadd.f32 %v4373_v18, %v2065_v19  ;;  %v1801_v32 = vpop.permute.xlu0 %1800  ;;  %v5174_v18 = vld [vmem:[%s5442_s2] ss:$0 sm:$0xff] }
 0x2bc   :  { %2758 = vst.msk [vmem:[%s5443_s3 + $0x68] sm:$0xf] %vm2731_vm0, %v3073_v63  ;;  %v2317_v1 = vmax.f32 %v2219_v11, 0.0  ;;  %v2066_v30 = vmax.f32 %v4684_v58, %v1801_v32  ;;  %v1899_v7 = vpop.permute.xlu1 %1898 }
 0x2bd   :  { %2807 = vst.msk [vmem:[%s5443_s3 + $0x12c] sm:$0xf] %vm2731_vm0, %v3122_v44  ;;  %v2268_v29 = vmax.f32 %v2170_v16, 0.0  ;;  %v2115_v28 = vmax.f32 %v4691_v3, %v1899_v7 }
 0x2be   :  { %v3123_v57 = vpack.c.bf16 %v2317_v1, %v2317_v1  ;;  %v2171_v33 = vadd.f32 %v5174_v18, %v2066_v30 }
 0x2bf   :  { %v3074_v47 = vpack.c.bf16 %v2268_v29, %v2268_v29  ;;  %v2220_v58 = vadd.f32 %v5174_v18, %v2115_v28  ;;  %v1901_v40 = vpop.permute.xlu0 %1900 }
 0x2c0   :  { %2808 = vst.msk [vmem:[%s5443_s3 + $0x130] sm:$0xf] %vm2731_vm0, %v3123_v57  ;;  %v2269_v50 = vmax.f32 %v2171_v33, 0.0  ;;  %v2116_v3 = vmax.f32 %v4704_v23, %v1901_v40  ;;  %v1803_v4 = vpop.permute.xlu1 %1802 }
 0x2c1   :  { %2759 = vst.msk [vmem:[%s5443_s3 + $0x6c] sm:$0xf] %vm2731_vm0, %v3074_v47  ;;  %v2318_v52 = vmax.f32 %v2220_v58, 0.0  ;;  %v2067_v38 = vmax.f32 %v4711_v14, %v1803_v4 }
 0x2c2   :  { %v3075_v6 = vpack.c.bf16 %v2269_v50, %v2269_v50  ;;  %v2221_v24 = vadd.f32 %v5174_v18, %v2116_v3 }
 0x2c3   :  { %v3124_v55 = vpack.c.bf16 %v2318_v52, %v2318_v52  ;;  %v2172_v21 = vadd.f32 %v5174_v18, %v2067_v38  ;;  %v1805_v25 = vpop.permute.xlu0 %1804 }
 0x2c4   :  { %2760 = vst.msk [vmem:[%s5443_s3 + $0x70] sm:$0xf] %vm2731_vm0, %v3075_v6  ;;  %v2319_v23 = vmax.f32 %v2221_v24, 0.0  ;;  %v2068_v19 = vmax.f32 %v4729_v0, %v1805_v25  ;;  %v1903_v63 = vpop.permute.xlu1 %1902 }
 0x2c5   :  { %2809 = vst.msk [vmem:[%s5443_s3 + $0x134] sm:$0xf] %vm2731_vm0, %v3124_v55  ;;  %v2270_v14 = vmax.f32 %v2172_v21, 0.0  ;;  %v2117_v11 = vmax.f32 %v4733_v26, %v1903_v63 }
 0x2c6   :  { %v3125_v44 = vpack.c.bf16 %v2319_v23, %v2319_v23  ;;  %v2173_v16 = vadd.f32 %v5174_v18, %v2068_v19 }
 0x2c7   :  { %v3076_v32 = vpack.c.bf16 %v2270_v14, %v2270_v14  ;;  %v2222_v1 = vadd.f32 %v5174_v18, %v2117_v11  ;;  %v1905_v30 = vpop.permute.xlu0 %1904 }
 0x2c8   :  { %2810 = vst.msk [vmem:[%s5443_s3 + $0x138] sm:$0xf] %vm2731_vm0, %v3125_v44  ;;  %v2271_v0 = vmax.f32 %v2173_v16, 0.0  ;;  %v2118_v7 = vmax.f32 %v4749_v31, %v1905_v30  ;;  %v1807_v29 = vpop.permute.xlu1 %1806 }
 0x2c9   :  { %2761 = vst.msk [vmem:[%s5443_s3 + $0x74] sm:$0xf] %vm2731_vm0, %v3076_v32  ;;  %v2320_v26 = vmax.f32 %v2222_v1, 0.0  ;;  %v2069_v28 = vmax.f32 %v4753_v49, %v1807_v29 }
 0x2ca   :  { %v3077_v57 = vpack.c.bf16 %v2271_v0, %v2271_v0  ;;  %v2223_v33 = vadd.f32 %v5174_v18, %v2118_v7 }
 0x2cb   :  { %v3126_v47 = vpack.c.bf16 %v2320_v26, %v2320_v26  ;;  %v2174_v58 = vadd.f32 %v5174_v18, %v2069_v28  ;;  %v1809_v40 = vpop.permute.xlu0 %1808 }
 0x2cc   :  { %2762 = vst.msk [vmem:[%s5443_s3 + $0x78] sm:$0xf] %vm2731_vm0, %v3077_v57  ;;  %v2321_v31 = vmax.f32 %v2223_v33, 0.0  ;;  %v2070_v50 = vmax.f32 %v4764_v62, %v1809_v40  ;;  %v1907_v3 = vpop.permute.xlu1 %1906 }
 0x2cd   :  { %2811 = vst.msk [vmem:[%s5443_s3 + $0x13c] sm:$0xf] %vm2731_vm0, %v3126_v47  ;;  %v2272_v49 = vmax.f32 %v2174_v58, 0.0  ;;  %v2119_v4 = vmax.f32 %v4771_v27, %v1907_v3 }
 0x2ce   :  { %v3127_v52 = vpack.c.bf16 %v2321_v31, %v2321_v31  ;;  %v2175_v38 = vadd.f32 %v5174_v18, %v2070_v50 }
 0x2cf   :  { %v3078_v6 = vpack.c.bf16 %v2272_v49, %v2272_v49  ;;  %v2224_v24 = vadd.f32 %v5174_v18, %v2119_v4  ;;  %v1909_v55 = vpop.permute.xlu0 %1908 }
 0x2d0   :  { %2812 = vst.msk [vmem:[%s5443_s3 + $0x140] sm:$0xf] %vm2731_vm0, %v3127_v52  ;;  %v2273_v62 = vmax.f32 %v2175_v38, 0.0  ;;  %v2120_v21 = vmax.f32 %v4784_v60, %v1909_v55  ;;  %v1811_v25 = vpop.permute.xlu1 %1810 }
 0x2d1   :  { %2763 = vst.msk [vmem:[%s5443_s3 + $0x7c] sm:$0xf] %vm2731_vm0, %v3078_v6  ;;  %v2322_v27 = vmax.f32 %v2224_v24, 0.0  ;;  %v2071_v23 = vmax.f32 %v4791_v34, %v1811_v25 }
 0x2d2   :  { %v3079_v19 = vpack.c.bf16 %v2273_v62, %v2273_v62  ;;  %v2225_v63 = vadd.f32 %v5174_v18, %v2120_v21 }
 0x2d3   :  { %v3128_v14 = vpack.c.bf16 %v2322_v27, %v2322_v27  ;;  %v2176_v11 = vadd.f32 %v5174_v18, %v2071_v23  ;;  %v1813_v44 = vpop.permute.xlu0 %1812 }
 0x2d4   :  { %2764 = vst.msk [vmem:[%s5443_s3 + $0x80] sm:$0xf] %vm2731_vm0, %v3079_v19  ;;  %v2323_v60 = vmax.f32 %v2225_v63, 0.0  ;;  %v2072_v16 = vmax.f32 %v4809_v41, %v1813_v44  ;;  %v1911_v32 = vpop.permute.xlu1 %1910 }
 0x2d5   :  { %2813 = vst.msk [vmem:[%s5443_s3 + $0x144] sm:$0xf] %vm2731_vm0, %v3128_v14  ;;  %v2274_v34 = vmax.f32 %v2176_v11, 0.0  ;;  %v2121_v1 = vmax.f32 %v4813_v17, %v1911_v32  ;;  %v5717_v11 = vld [vmem:[#allocation6_spill] sm:$0xff] }
 0x2d6   :  { %v3129_v30 = vpack.c.bf16 %v2323_v60, %v2323_v60  ;;  %v2177_v0 = vadd.f32 %v5174_v18, %v2072_v16  ;;  %v5718_v16 = vld [vmem:[#allocation7_spill] sm:$0xff] }
 0x2d7   :  { %v3080_v7 = vpack.c.bf16 %v2274_v34, %v2274_v34  ;;  %v2226_v29 = vadd.f32 %v5174_v18, %v2121_v1  ;;  %v1913_v26 = vpop.permute.xlu0 %1912 }
 0x2d8   :  { %2814 = vst.msk [vmem:[%s5443_s3 + $0x148] sm:$0xf] %vm2731_vm0, %v3129_v30  ;;  %v2275_v41 = vmax.f32 %v2177_v0, 0.0  ;;  %v2122_v28 = vmax.f32 %v4829_v46, %v1913_v26  ;;  %v1815_v57 = vpop.permute.xlu1 %1814 }
 0x2d9   :  { %2765 = vst.msk [vmem:[%s5443_s3 + $0x84] sm:$0xf] %vm2731_vm0, %v3080_v7  ;;  %v2324_v17 = vmax.f32 %v2226_v29, 0.0  ;;  %v2073_v33 = vmax.f32 %v4833_v45, %v1815_v57 }
 0x2da   :  { %v3081_v47 = vpack.c.bf16 %v2275_v41, %v2275_v41  ;;  %v2227_v58 = vadd.f32 %v5174_v18, %v2122_v28 }
 0x2db   :  { %v3130_v40 = vpack.c.bf16 %v2324_v17, %v2324_v17  ;;  %v2178_v31 = vadd.f32 %v5174_v18, %v2073_v33  ;;  %v1817_v50 = vpop.permute.xlu0 %1816 }
 0x2dc   :  { %2766 = vst.msk [vmem:[%s5443_s3 + $0x88] sm:$0xf] %vm2731_vm0, %v3081_v47  ;;  %v2325_v46 = vmax.f32 %v2227_v58, 0.0  ;;  %v2074_v3 = vmax.f32 %v4844_v51, %v1817_v50  ;;  %v1915_v49 = vpop.permute.xlu1 %1914 }
 0x2dd   :  { %2815 = vst.msk [vmem:[%s5443_s3 + $0x14c] sm:$0xf] %vm2731_vm0, %v3130_v40  ;;  %v2276_v45 = vmax.f32 %v2178_v31, 0.0  ;;  %v2123_v4 = vmax.f32 %v4851_v35, %v1915_v49 }
 0x2de   :  { %v3131_v52 = vpack.c.bf16 %v2325_v46, %v2325_v46  ;;  %v2179_v38 = vadd.f32 %v5174_v18, %v2074_v3 }
 0x2df   :  { %v3082_v6 = vpack.c.bf16 %v2276_v45, %v2276_v45  ;;  %v2228_v24 = vadd.f32 %v5174_v18, %v2123_v4  ;;  %v1917_v55 = vpop.permute.xlu0 %1916 }
 0x2e0   :  { %2816 = vst.msk [vmem:[%s5443_s3 + $0x150] sm:$0xf] %vm2731_vm0, %v3131_v52  ;;  %v2277_v51 = vmax.f32 %v2179_v38, 0.0  ;;  %v2124_v62 = vmax.f32 %v4864_v8, %v1917_v55  ;;  %v1819_v21 = vpop.permute.xlu1 %1818 }
 0x2e1   :  { %2767 = vst.msk [vmem:[%s5443_s3 + $0x8c] sm:$0xf] %vm2731_vm0, %v3082_v6  ;;  %v2326_v35 = vmax.f32 %v2228_v24, 0.0  ;;  %v2075_v25 = vmax.f32 %v4869_v56, %v1819_v21 }
 0x2e2   :  { %v3083_v27 = vpack.c.bf16 %v2277_v51, %v2277_v51  ;;  %v2229_v23 = vadd.f32 %v5174_v18, %v2124_v62 }
 0x2e3   :  { %v3132_v19 = vpack.c.bf16 %v2326_v35, %v2326_v35  ;;  %v2180_v63 = vadd.f32 %v5174_v18, %v2075_v25  ;;  %v1821_v14 = vpop.permute.xlu0 %1820 }
 0x2e4   :  { %2768 = vst.msk [vmem:[%s5443_s3 + $0x90] sm:$0xf] %vm2731_vm0, %v3083_v27  ;;  %v2327_v8 = vmax.f32 %v2229_v23, 0.0  ;;  %v2076_v44 = vmax.f32 %v5717_v11, %v1821_v14  ;;  %v1919_v60 = vpop.permute.xlu1 %1918 }
 0x2e5   :  { %2817 = vst.msk [vmem:[%s5443_s3 + $0x154] sm:$0xf] %vm2731_vm0, %v3132_v19  ;;  %v2278_v56 = vmax.f32 %v2180_v63, 0.0  ;;  %v2125_v32 = vmax.f32 %v5718_v16, %v1919_v60 }
 0x2e6   :  { %v3133_v34 = vpack.c.bf16 %v2327_v8, %v2327_v8  ;;  %v2181_v1 = vadd.f32 %v5174_v18, %v2076_v44 }
 0x2e7   :  { %v3084_v30 = vpack.c.bf16 %v2278_v56, %v2278_v56  ;;  %v2230_v0 = vadd.f32 %v5174_v18, %v2125_v32  ;;  %v1921_v7 = vpop.permute.xlu0 %1920 }
 0x2e8   :  { %2818 = vst.msk [vmem:[%s5443_s3 + $0x158] sm:$0xf] %vm2731_vm0, %v3133_v34  ;;  %v2279_v29 = vmax.f32 %v2181_v1, 0.0  ;;  %v2126_v26 = vmax.f32 %v4905_v37, %v1921_v7  ;;  %v1823_v41 = vpop.permute.xlu1 %1822 }
 0x2e9   :  { %2769 = vst.msk [vmem:[%s5443_s3 + $0x94] sm:$0xf] %vm2731_vm0, %v3084_v30  ;;  %v2328_v28 = vmax.f32 %v2230_v0, 0.0  ;;  %v2077_v57 = vmax.f32 %v4909_v15, %v1823_v41 }
 0x2ea   :  { %v3085_v17 = vpack.c.bf16 %v2279_v29, %v2279_v29  ;;  %v2231_v33 = vadd.f32 %v5174_v18, %v2126_v26 }
 0x2eb   :  { %v3134_v47 = vpack.c.bf16 %v2328_v28, %v2328_v28  ;;  %v2182_v58 = vadd.f32 %v5174_v18, %v2077_v57  ;;  %v1825_v40 = vpop.permute.xlu0 %1824 }
 0x2ec   :  { %2770 = vst.msk [vmem:[%s5443_s3 + $0x98] sm:$0xf] %vm2731_vm0, %v3085_v17  ;;  %v2329_v37 = vmax.f32 %v2231_v33, 0.0  ;;  %v2078_v31 = vmax.f32 %v4920_v5, %v1825_v40  ;;  %v1923_v50 = vpop.permute.xlu1 %1922 }
 0x2ed   :  { %2819 = vst.msk [vmem:[%s5443_s3 + $0x15c] sm:$0xf] %vm2731_vm0, %v3134_v47  ;;  %v2280_v15 = vmax.f32 %v2182_v58, 0.0  ;;  %v2127_v46 = vmax.f32 %v4925_v54, %v1923_v50 }
 0x2ee   :  { %v3135_v3 = vpack.c.bf16 %v2329_v37, %v2329_v37  ;;  %v2183_v49 = vadd.f32 %v5174_v18, %v2078_v31 }
 0x2ef   :  { %v3086_v45 = vpack.c.bf16 %v2280_v15, %v2280_v15  ;;  %v2232_v4 = vadd.f32 %v5174_v18, %v2127_v46  ;;  %v1925_v52 = vpop.permute.xlu0 %1924  ;;  %v5719_v46 = vld [vmem:[#allocation49_spill] sm:$0xff] }
 0x2f0   :  { %2820 = vst.msk [vmem:[%s5443_s3 + $0x160] sm:$0xf] %vm2731_vm0, %v3135_v3  ;;  %v2281_v5 = vmax.f32 %v2183_v49, 0.0  ;;  %v2128_v38 = vmax.f32 %v4938_v42, %v1925_v52  ;;  %v1827_v6 = vpop.permute.xlu1 %1826 }
 0x2f1   :  { %2771 = vst.msk [vmem:[%s5443_s3 + $0x9c] sm:$0xf] %vm2731_vm0, %v3086_v45  ;;  %v2330_v54 = vmax.f32 %v2232_v4, 0.0  ;;  %v2079_v24 = vmax.f32 %v4943_v22, %v1827_v6 }
 0x2f2   :  { %v3087_v55 = vpack.c.bf16 %v2281_v5, %v2281_v5  ;;  %v2233_v51 = vadd.f32 %v5174_v18, %v2128_v38 }
 0x2f3   :  { %v3136_v62 = vpack.c.bf16 %v2330_v54, %v2330_v54  ;;  %v2184_v21 = vadd.f32 %v5174_v18, %v2079_v24  ;;  %v1829_v35 = vpop.permute.xlu0 %1828 }
 0x2f4   :  { %2772 = vst.msk [vmem:[%s5443_s3 + $0xa0] sm:$0xf] %vm2731_vm0, %v3087_v55  ;;  %v2331_v42 = vmax.f32 %v2233_v51, 0.0  ;;  %v2080_v25 = vmax.f32 %v4959_v59, %v1829_v35  ;;  %v1927_v27 = vpop.permute.xlu1 %1926 }
 0x2f5   :  { %2821 = vst.msk [vmem:[%s5443_s3 + $0x164] sm:$0xf] %vm2731_vm0, %v3136_v62  ;;  %v2282_v22 = vmax.f32 %v2184_v21, 0.0  ;;  %v2129_v23 = vmax.f32 %v4963_v10, %v1927_v27 }
 0x2f6   :  { %v3137_v19 = vpack.c.bf16 %v2331_v42, %v2331_v42  ;;  %v2185_v63 = vadd.f32 %v5174_v18, %v2080_v25 }
 0x2f7   :  { %v3088_v14 = vpack.c.bf16 %v2282_v22, %v2282_v22  ;;  %v2234_v8 = vadd.f32 %v5174_v18, %v2129_v23  ;;  %v1929_v11 = vpop.permute.xlu0 %1928 }
 0x2f8   :  { %2822 = vst.msk [vmem:[%s5443_s3 + $0x168] sm:$0xf] %vm2731_vm0, %v3137_v19  ;;  %v2283_v59 = vmax.f32 %v2185_v63, 0.0  ;;  %v2130_v44 = vmax.f32 %v4976_v53, %v1929_v11  ;;  %v1831_v60 = vpop.permute.xlu1 %1830 }
 0x2f9   :  { %2773 = vst.msk [vmem:[%s5443_s3 + $0xa4] sm:$0xf] %vm2731_vm0, %v3088_v14  ;;  %v2332_v10 = vmax.f32 %v2234_v8, 0.0  ;;  %v2081_v56 = vmax.f32 %v4979_v36, %v1831_v60 }
 0x2fa   :  { %v3089_v16 = vpack.c.bf16 %v2283_v59, %v2283_v59  ;;  %v2235_v32 = vadd.f32 %v5174_v18, %v2130_v44 }
 0x2fb   :  { %v3138_v34 = vpack.c.bf16 %v2332_v10, %v2332_v10  ;;  %v2186_v1 = vadd.f32 %v5174_v18, %v2081_v56  ;;  %v1833_v30 = vpop.permute.xlu0 %1832 }
 0x2fc   :  { %2774 = vst.msk [vmem:[%s5443_s3 + $0xa8] sm:$0xf] %vm2731_vm0, %v3089_v16  ;;  %v2333_v53 = vmax.f32 %v2235_v32, 0.0  ;;  %v2082_v0 = vmax.f32 %v4989_v12, %v1833_v30  ;;  %v1931_v7 = vpop.permute.xlu1 %1930 }
 0x2fd   :  { %2823 = vst.msk [vmem:[%s5443_s3 + $0x16c] sm:$0xf] %vm2731_vm0, %v3138_v34  ;;  %v2284_v36 = vmax.f32 %v2186_v1, 0.0  ;;  %v2131_v29 = vmax.f32 %v4994_v13, %v1931_v7 }
 0x2fe   :  { %v3139_v26 = vpack.c.bf16 %v2333_v53, %v2333_v53  ;;  %v2187_v41 = vadd.f32 %v5174_v18, %v2082_v0 }
 0x2ff   :  { %v3090_v28 = vpack.c.bf16 %v2284_v36, %v2284_v36  ;;  %v2236_v57 = vadd.f32 %v5174_v18, %v2131_v29  ;;  %v1933_v17 = vpop.permute.xlu0 %1932 }
 0x300   :  { %2824 = vst.msk [vmem:[%s5443_s3 + $0x170] sm:$0xf] %vm2731_vm0, %v3139_v26  ;;  %v2285_v12 = vmax.f32 %v2187_v41, 0.0  ;;  %v2132_v33 = vmax.f32 %v5006_v2, %v1933_v17  ;;  %v1835_v47 = vpop.permute.xlu1 %1834 }
 0x301   :  { %2775 = vst.msk [vmem:[%s5443_s3 + $0xac] sm:$0xf] %vm2731_vm0, %v3090_v28  ;;  %v2334_v13 = vmax.f32 %v2236_v57, 0.0  ;;  %v2083_v58 = vmax.f32 %v5010_v48, %v1835_v47 }
 0x302   :  { %v3091_v40 = vpack.c.bf16 %v2285_v12, %v2285_v12  ;;  %v2237_v37 = vadd.f32 %v5174_v18, %v2132_v33 }
 0x303   :  { %v3140_v31 = vpack.c.bf16 %v2334_v13, %v2334_v13  ;;  %v2188_v50 = vadd.f32 %v5174_v18, %v2083_v58  ;;  %v1837_v15 = vpop.permute.xlu0 %1836 }
 0x304   :  { %2776 = vst.msk [vmem:[%s5443_s3 + $0xb0] sm:$0xf] %vm2731_vm0, %v3091_v40  ;;  %v2335_v2 = vmax.f32 %v2237_v37, 0.0  ;;  %v2084_v3 = vmax.f32 %v5719_v46, %v1837_v15  ;;  %v1935_v49 = vpop.permute.xlu1 %1934 }
 0x305   :  { %2825 = vst.msk [vmem:[%s5443_s3 + $0x174] sm:$0xf] %vm2731_vm0, %v3140_v31  ;;  %v2286_v48 = vmax.f32 %v2188_v50, 0.0  ;;  %v2133_v45 = vmax.f32 %v5028_v20, %v1935_v49  ;;  %v5720_v20 = vld [vmem:[#allocation8_spill] sm:$0xff] }
 0x306   :  { %v3141_v4 = vpack.c.bf16 %v2335_v2, %v2335_v2  ;;  %v2189_v52 = vadd.f32 %v5174_v18, %v2084_v3 }
 0x307   :  { %v3092_v5 = vpack.c.bf16 %v2286_v48, %v2286_v48  ;;  %v2238_v38 = vadd.f32 %v5174_v18, %v2133_v45 }
 0x308   :  { %2826 = vst.msk [vmem:[%s5443_s3 + $0x178] sm:$0xf] %vm2731_vm0, %v3141_v4  ;;  %v2287_v6 = vmax.f32 %v2189_v52, 0.0  ;;  %v1839_v54 = vpop.permute.xlu1 %1838 }
 0x309   :  { %2777 = vst.msk [vmem:[%s5443_s3 + $0xb4] sm:$0xf] %vm2731_vm0, %v3092_v5  ;;  %v2336_v24 = vmax.f32 %v2238_v38, 0.0  ;;  %v2085_v55 = vmax.f32 %v5720_v20, %v1839_v54 }
 0x30a   :  { %v3093_v51 = vpack.c.bf16 %v2287_v6, %v2287_v6 }
 0x30b   :  { %v3142_v62 = vpack.c.bf16 %v2336_v24, %v2336_v24  ;;  %v2190_v21 = vadd.f32 %v5174_v18, %v2085_v55 }
 0x30c   :  { %2778 = vst.msk [vmem:[%s5443_s3 + $0xb8] sm:$0xf] %vm2731_vm0, %v3093_v51  ;;  %v1841_v35 = vpop.permute.xlu0 %1840 }
 0x30d   :  { %2827 = vst.msk [vmem:[%s5443_s3 + $0x17c] sm:$0xf] %vm2731_vm0, %v3142_v62  ;;  %v2288_v42 = vmax.f32 %v2190_v21, 0.0  ;;  %v2086_v25 = vmax.f32 %v5054_v61, %v1841_v35 }
 0x30f   :  { %v3094_v27 = vpack.c.bf16 %v2288_v42, %v2288_v42  ;;  %v2191_v22 = vadd.f32 %v5174_v18, %v2086_v25 }
 0x310   :  { %v1937_v23 = vpop.permute.xlu0 %1936 }
 0x311   :  { %2779 = vst.msk [vmem:[%s5443_s3 + $0xbc] sm:$0xf] %vm2731_vm0, %v3094_v27  ;;  %v2289_v19 = vmax.f32 %v2191_v22, 0.0  ;;  %v2134_v63 = vmax.f32 %v5061_v39, %v1937_v23  ;;  %v1843_v14 = vpop.permute.xlu1 %1842 }
 0x312   :  { %v2087_v8 = vmax.f32 %v5073_v9, %v1843_v14 }
 0x313   :  { %v3095_v11 = vpack.c.bf16 %v2289_v19, %v2289_v19  ;;  %v2239_v59 = vadd.f32 %v5174_v18, %v2134_v63 }
 0x314   :  { %v2192_v61 = vadd.f32 %v5174_v18, %v2087_v8 }
 0x315   :  { %2780 = vst.msk [vmem:[%s5443_s3 + $0xc0] sm:$0xf] %vm2731_vm0, %v3095_v11  ;;  %v2337_v44 = vmax.f32 %v2239_v59, 0.0  ;;  %v1939_v60 = vpop.permute.xlu1 %1938 }
 0x316   :  { %v2290_v10 = vmax.f32 %v2192_v61, 0.0  ;;  %v2135_v56 = vmax.f32 %v5082_v43, %v1939_v60 }
 0x317   :  { %v3143_v16 = vpack.c.bf16 %v2337_v44, %v2337_v44 }
 0x318   :  { %v3096_v39 = vpack.c.bf16 %v2290_v10, %v2290_v10  ;;  %v2240_v32 = vadd.f32 %v5174_v18, %v2135_v56 }
 0x319   :  { %2828 = vst.msk [vmem:[%s5443_s3 + $0x180] sm:$0xf] %vm2731_vm0, %v3143_v16 }
 0x31a   :  { %2781 = vst.msk [vmem:[%s5443_s3 + $0xc4] sm:$0xf] %vm2731_vm0, %v3096_v39  ;;  %v2338_v9 = vmax.f32 %v2240_v32, 0.0 }
 0x31c   :  { %v3144_v34 = vpack.c.bf16 %v2338_v9, %v2338_v9 }
 0x31e   :  { %2829 = vst.msk [vmem:[%s5443_s3 + $0x184] sm:$0xf] %vm2731_vm0, %v3144_v34 }

// kernel: cnn_forward.5
= control target key start
LH: loop header
LB: loop body
LE: loop exit
PB: predicated region body
PF: predicated region fallthrough
CT: control target
= control target key end

     0   :  { %vm1559_vm0 = vmmov 0   ;;  %vm885_vm1 = vcmask 261120   ;;  %vm1176_vm2 = vcmask 80896   ;;  %s1922_s1 = inlined_call_operand.vmem [shape: bf16[1568,10], index: 1, kind: input, shape index: {}]   ;;  %s1923_s0 = inlined_call_operand.vmem [shape: bf16[16,1568], index: 0, kind: input, shape index: {}]   ;;  %s1924_s2 = inlined_call_operand.vmem [shape: f32[1,10], index: 2, kind: input, shape index: {}]   ;;  %s1925_s3 = inlined_call_operand.vmem [shape: f32[16,10], index: 3, kind: output, shape index: {}]  }
   0x1   :  { %v1441_v0 = vld [vmem:[%s1922_s1 + $0x40] sm:$0xff]   ;;  %v1445_v4 = vld [vmem:[%s1922_s1 + $0x48] sm:$0xff]   ;;  %v1449_v8 = vld [vmem:[%s1922_s1 + $0x50] sm:$0xff]  }
   0x2   :  { %v1442_v1 = vld [vmem:[%s1922_s1] sm:$0xff]   ;;  %1296 = vmatprep.subr.bf16.mxu0 %v1441_v0  ;;  %v1446_v5 = vld [vmem:[%s1922_s1 + $0x8] sm:$0xff]   ;;  %v1450_v9 = vld [vmem:[%s1922_s1 + $0x10] sm:$0xff]  }
   0x3   :  { %v1443_v2 = vld [vmem:[%s1922_s1 + $0xc0] sm:$0xff]   ;;  %1297 = vmatpush3.bf16.msra.mxu0 %v1442_v1  ;;  %v1447_v6 = vld [vmem:[%s1922_s1 + $0xc8] sm:$0xff]   ;;  %v1451_v10 = vld [vmem:[%s1922_s1 + $0xd0] sm:$0xff]  }
   0x4   :  { %v1444_v3 = vld [vmem:[%s1922_s1 + $0x80] sm:$0xff]   ;;  %1318 = vmatprep.subr.bf16.mxu1 %v1443_v2  ;;  %1298 = vmatprep.subr.bf16.mxu0 %v1445_v4  ;;  %v1448_v7 = vld [vmem:[%s1922_s1 + $0x88] sm:$0xff]   ;;  %v1452_v11 = vld [vmem:[%s1922_s1 + $0x90] sm:$0xff]  }
   0x5   :  { %1319 = vmatpush3.bf16.msra.mxu1 %v1444_v3  ;;  %v1453_v12 = vld [vmem:[%s1922_s1 + $0x58] sm:$0xff]   ;;  %v1457_v16 = vld [vmem:[%s1922_s1 + $0x60] sm:$0xff]   ;;  %v1461_v20 = vld [vmem:[%s1922_s1 + $0x68] sm:$0xff]  }
   0x6   :  { %1320 = vmatprep.subr.bf16.mxu1 %v1447_v6  ;;  %v1454_v13 = vld [vmem:[%s1922_s1 + $0x18] sm:$0xff]   ;;  %v1458_v17 = vld [vmem:[%s1922_s1 + $0x20] sm:$0xff]   ;;  %v1462_v21 = vld [vmem:[%s1922_s1 + $0x28] sm:$0xff]  }
   0x7   :  { %1299 = vmatpush3.bf16.msra.mxu0 %v1446_v5  ;;  %v1455_v14 = vld [vmem:[%s1922_s1 + $0xd8] sm:$0xff]   ;;  %v1459_v18 = vld [vmem:[%s1922_s1 + $0xe0] sm:$0xff]   ;;  %v1463_v22 = vld [vmem:[%s1922_s1 + $0xe8] sm:$0xff]  }
   0x8   :  { %1300 = vmatprep.subr.bf16.mxu0 %v1449_v8  ;;  %v1456_v15 = vld [vmem:[%s1922_s1 + $0x98] sm:$0xff]   ;;  %v1460_v19 = vld [vmem:[%s1922_s1 + $0xa0] sm:$0xff]   ;;  %v1464_v23 = vld [vmem:[%s1922_s1 + $0xa8] sm:$0xff]  }
   0x9   :  { %1321 = vmatpush3.bf16.msra.mxu1 %v1448_v7  ;;  %v1465_v24 = vld [vmem:[%s1922_s1 + $0x70] sm:$0xff]   ;;  %v1469_v28 = vld [vmem:[%s1922_s1 + $0x78] sm:$0xff]   ;;  %v1476_v34 = vld [vmem:[%s1922_s1 + $0x140] sm:$0xff]  }
   0xa   :  { %1322 = vmatprep.subr.bf16.mxu1 %v1451_v10  ;;  %v1466_v25 = vld [vmem:[%s1922_s1 + $0x30] sm:$0xff]   ;;  %v1470_v29 = vld [vmem:[%s1922_s1 + $0x38] sm:$0xff]   ;;  %v1479_v36 = vld [vmem:[%s1923_s0 + $0xc] ss:$52 sps:$4 sm:$0xff]  }
   0xb   :  { %1301 = vmatpush3.bf16.msra.mxu0 %v1450_v9  ;;  %v1467_v26 = vld [vmem:[%s1922_s1 + $0xf0] sm:$0xff]   ;;  %v1471_v30 = vld [vmem:[%s1922_s1 + $0xf8] sm:$0xff]   ;;  %v1480_v37 = vld [vmem:[%s1922_s1 + $0x100] sm:$0xff]   ;;  %962 = vmatprep.mubr.bf16.mxu1 %v1479_v36 }
   0xc   :  { %1302 = vmatprep.subr.bf16.mxu0 %v1453_v12  ;;  %v1468_v27 = vld [vmem:[%s1922_s1 + $0xb0] sm:$0xff]   ;;  %v1472_v31 = vld [vmem:[%s1922_s1 + $0xb8] sm:$0xff]   ;;  %v1481_v38 = vld [vmem:[%s1922_s1 + $0x1c0] sm:$0xff]  }
   0xd   :  { %1323 = vmatpush3.bf16.msra.mxu1 %v1452_v11  ;;  %v1473_v32 = vld [vmem:[%s1923_s0] ss:$52 sps:$4 sm:$0xff]   ;;  %v1475_v33 = vld [vmem:[%s1923_s0 + $0x4] ss:$52 sps:$4 sm:$0xff]   ;;  %v1477_v35 = vld [vmem:[%s1923_s0 + $0x8] ss:$52 sps:$4 sm:$0xff]  }
   0xe   :  { %1324 = vmatprep.subr.bf16.mxu1 %v1455_v14  ;;  %921 = vmatprep.mubr.bf16.mxu0 %v1475_v33  ;;  %v1482_v39 = vld [vmem:[%s1922_s1 + $0x180] sm:$0xff]   ;;  %v1483_v40 = vld [vmem:[%s1922_s1 + $0x148] sm:$0xff]   ;;  %v1487_v44 = vld [vmem:[%s1922_s1 + $0x150] sm:$0xff]  }
   0xf   :  { %1303 = vmatpush3.bf16.msra.mxu0 %v1454_v13  ;;  %v1484_v41 = vld [vmem:[%s1922_s1 + $0x108] sm:$0xff]   ;;  %v1488_v45 = vld [vmem:[%s1922_s1 + $0x110] sm:$0xff]   ;;  %v1491_v48 = vld [vmem:[%s1922_s1 + $0x158] sm:$0xff]  }
  0x10   :  { %1304 = vmatprep.subr.bf16.mxu0 %v1457_v16  ;;  %v1485_v42 = vld [vmem:[%s1922_s1 + $0x1c8] sm:$0xff]   ;;  %v1489_v46 = vld [vmem:[%s1922_s1 + $0x1d0] sm:$0xff]   ;;  %v1492_v49 = vld [vmem:[%s1922_s1 + $0x118] sm:$0xff]  }
  0x11   :  { %1325 = vmatpush3.bf16.msra.mxu1 %v1456_v15  ;;  %v1486_v43 = vld [vmem:[%s1922_s1 + $0x188] sm:$0xff]   ;;  %v1490_v47 = vld [vmem:[%s1922_s1 + $0x190] sm:$0xff]   ;;  %v1493_v50 = vld [vmem:[%s1922_s1 + $0x1d8] sm:$0xff]  }
  0x12   :  { %1326 = vmatprep.subr.bf16.mxu1 %v1459_v18  ;;  %v1494_v51 = vld [vmem:[%s1922_s1 + $0x198] sm:$0xff]   ;;  %v1495_v52 = vld [vmem:[%s1922_s1 + $0x160] sm:$0xff]   ;;  %v1499_v56 = vld [vmem:[%s1922_s1 + $0x168] sm:$0xff]  }
  0x13   :  { %1305 = vmatpush3.bf16.msra.mxu0 %v1458_v17  ;;  %v1496_v53 = vld [vmem:[%s1922_s1 + $0x120] sm:$0xff]   ;;  %v1500_v57 = vld [vmem:[%s1922_s1 + $0x128] sm:$0xff]   ;;  %v1503_v60 = vld [vmem:[%s1922_s1 + $0x170] sm:$0xff]  }
  0x14   :  { %1306 = vmatprep.subr.bf16.mxu0 %v1461_v20  ;;  %v1497_v54 = vld [vmem:[%s1922_s1 + $0x1e0] sm:$0xff]   ;;  %v1501_v58 = vld [vmem:[%s1922_s1 + $0x1e8] sm:$0xff]   ;;  %v1504_v61 = vld [vmem:[%s1922_s1 + $0x130] sm:$0xff]  }
  0x15   :  { %1327 = vmatpush3.bf16.msra.mxu1 %v1460_v19  ;;  %v1498_v55 = vld [vmem:[%s1922_s1 + $0x1a0] sm:$0xff]   ;;  %v1502_v59 = vld [vmem:[%s1922_s1 + $0x1a8] sm:$0xff]   ;;  %v1505_v62 = vld [vmem:[%s1922_s1 + $0x1f0] sm:$0xff]  }
  0x16   :  { %1328 = vmatprep.subr.bf16.mxu1 %v1463_v22  ;;  %v1506_v63 = vld [vmem:[%s1922_s1 + $0x1b0] sm:$0xff]   ;;  %v1507_v0 = vld [vmem:[%s1922_s1 + $0x178] sm:$0xff]   ;;  %v1514_v6 = vld [vmem:[%s1922_s1 + $0x240] sm:$0xff]  }
  0x17   :  { %1307 = vmatpush3.bf16.msra.mxu0 %v1462_v21  ;;  %v1508_v1 = vld [vmem:[%s1922_s1 + $0x138] sm:$0xff]   ;;  %v1511_v4 = vld [vmem:[%s1923_s0 + $0x10] ss:$52 sps:$4 sm:$0xff]   ;;  %v1513_v5 = vld [vmem:[%s1923_s0 + $0x14] ss:$52 sps:$4 sm:$0xff]  }
  0x18   :  { %1308 = vmatprep.subr.bf16.mxu0 %v1465_v24  ;;  %v1509_v2 = vld [vmem:[%s1922_s1 + $0x1f8] sm:$0xff]   ;;  %v1518_v9 = vld [vmem:[%s1922_s1 + $0x200] sm:$0xff]   ;;  %v1521_v12 = vld [vmem:[%s1922_s1 + $0x248] sm:$0xff]  }
  0x19   :  { %1329 = vmatpush3.bf16.msra.mxu1 %v1464_v23  ;;  %v1510_v3 = vld [vmem:[%s1922_s1 + $0x1b8] sm:$0xff]   ;;  %v1519_v10 = vld [vmem:[%s1922_s1 + $0x2c0] sm:$0xff]   ;;  %v1522_v13 = vld [vmem:[%s1922_s1 + $0x208] sm:$0xff]  }
  0x1a   :  { %1330 = vmatprep.subr.bf16.mxu1 %v1467_v26  ;;  %v1515_v7 = vld [vmem:[%s1923_s0 + $0x18] ss:$52 sps:$4 sm:$0xff]   ;;  %v1517_v8 = vld [vmem:[%s1923_s0 + $0x1c] ss:$52 sps:$4 sm:$0xff]   ;;  %v1520_v11 = vld [vmem:[%s1922_s1 + $0x280] sm:$0xff]  }
  0x1b   :  { %1309 = vmatpush3.bf16.msra.mxu0 %v1466_v25  ;;  %v1523_v14 = vld [vmem:[%s1922_s1 + $0x2c8] sm:$0xff]   ;;  %v1525_v16 = vld [vmem:[%s1922_s1 + $0x250] sm:$0xff]   ;;  %v1529_v20 = vld [vmem:[%s1922_s1 + $0x258] sm:$0xff]  }
  0x1c   :  { %1310 = vmatprep.subr.bf16.mxu0 %v1469_v28  ;;  %v1524_v15 = vld [vmem:[%s1922_s1 + $0x288] sm:$0xff]   ;;  %v1526_v17 = vld [vmem:[%s1922_s1 + $0x210] sm:$0xff]   ;;  %v1530_v21 = vld [vmem:[%s1922_s1 + $0x218] sm:$0xff]  }
  0x1d   :  { %1331 = vmatpush3.bf16.msra.mxu1 %v1468_v27  ;;  %v1527_v18 = vld [vmem:[%s1922_s1 + $0x2d0] sm:$0xff]   ;;  %v1531_v22 = vld [vmem:[%s1922_s1 + $0x2d8] sm:$0xff]   ;;  %v1533_v24 = vld [vmem:[%s1922_s1 + $0x260] sm:$0xff]  }
  0x1e   :  { %1332 = vmatprep.subr.bf16.mxu1 %v1471_v30  ;;  %v1528_v19 = vld [vmem:[%s1922_s1 + $0x290] sm:$0xff]   ;;  %v1532_v23 = vld [vmem:[%s1922_s1 + $0x298] sm:$0xff]   ;;  %v1534_v25 = vld [vmem:[%s1922_s1 + $0x220] sm:$0xff]  }
  0x1f   :  { %1311 = vmatpush3.bf16.msra.mxu0 %v1470_v29  ;;  %v1535_v26 = vld [vmem:[%s1922_s1 + $0x2e0] sm:$0xff]   ;;  %v1537_v28 = vld [vmem:[%s1922_s1 + $0x268] sm:$0xff]   ;;  %v1542_v33 = vld [vmem:[%s1922_s1 + $0x230] sm:$0xff]  }
  0x20   :  { %1340 = vmatprep.subr.bf16.mxu0 %v1476_v34  ;;  %v1536_v27 = vld [vmem:[%s1922_s1 + $0x2a0] sm:$0xff]   ;;  %v1538_v29 = vld [vmem:[%s1922_s1 + $0x228] sm:$0xff]   ;;  %v1543_v34 = vld [vmem:[%s1922_s1 + $0x2f0] sm:$0xff]  }
  0x21   :  { %1333 = vmatpush3.bf16.msra.mxu1 %v1472_v31  ;;  %v1539_v30 = vld [vmem:[%s1922_s1 + $0x2e8] sm:$0xff]   ;;  %v1545_v36 = vld [vmem:[%s1922_s1 + $0x278] sm:$0xff]  }
  0x22   :  { %922 = vmatmul.mubr.bf16.vlgmr.msra.gmra.mrb[0].mxu0 %v1473_v32  ;;  %1362 = vmatprep.subr.bf16.mxu1 %v1481_v38  ;;  %v1540_v31 = vld [vmem:[%s1922_s1 + $0x2a8] sm:$0xff]   ;;  %v1541_v32 = vld [vmem:[%s1922_s1 + $0x270] sm:$0xff]   ;;  %v1547_v38 = vld [vmem:[%s1922_s1 + $0x2f8] sm:$0xff]  }
  0x23   :  { %1341 = vmatpush3.bf16.msra.mxu0 %v1480_v37  ;;  %1003 = vmatprep.mubr.bf16.mxu0 %v1513_v5  ;;  %v1546_v37 = vld [vmem:[%s1922_s1 + $0x238] sm:$0xff]  }
  0x24   :  { %963 = vmatmul.mubr.bf16.vlgmr.msra.gmra.mrb[0].mxu1 %v1477_v35  ;;  %1342 = vmatprep.subr.bf16.mxu0 %v1483_v40  ;;  %v1544_v35 = vld [vmem:[%s1922_s1 + $0x2b0] sm:$0xff]  }
  0x25   :  { %1363 = vmatpush3.bf16.msra.mxu1 %v1482_v39  ;;  %1044 = vmatprep.mubr.bf16.mxu1 %v1517_v8  ;;  %v1548_v39 = vld [vmem:[%s1922_s1 + $0x2b8] sm:$0xff]   ;;  %v1549_v40 = vld [vmem:[%s1923_s0 + $0x20] ss:$52 sps:$4 sm:$0xff]  }
  0x26   :  { %1364 = vmatprep.subr.bf16.mxu1 %v1485_v42  ;;  %v1558_v42 = vmov 0.0  }
  0x27   :  { %1343 = vmatpush3.bf16.msra.mxu0 %v1484_v41  ;;  %v1551_v41 = vld [vmem:[%s1923_s0 + $0x24] ss:$52 sps:$4 sm:$0xff]  }
  0x28   :  { %1344 = vmatprep.subr.bf16.mxu0 %v1487_v44  ;;  %v1554_v44 = vld [vmem:[%s1923_s0 + $0x2c] ss:$52 sps:$4 sm:$0xff]  }
  0x29   :  { %1365 = vmatpush3.bf16.msra.mxu1 %v1486_v43  ;;  %v1552_v43 = vld [vmem:[%s1923_s0 + $0x28] ss:$52 sps:$4 sm:$0xff]  }
  0x2a   :  { %1366 = vmatprep.subr.bf16.mxu1 %v1489_v46  ;;  %v1556_v46 = vld [vmem:[%s1922_s1 + $0x308] sm:$0xff]  }
  0x2b   :  { %1345 = vmatpush3.bf16.msra.mxu0 %v1488_v45  ;;  %v1555_v45 = vld [vmem:[%s1922_s1 + $0x300] sm:$0xff]  }
  0x2c   :  { %1346 = vmatprep.subr.bf16.mxu0 %v1491_v48 }
  0x2d   :  { %1367 = vmatpush3.bf16.msra.mxu1 %v1490_v47  ;;  %v1557_v47 = vld [vmem:[%s1923_s0 + $0x30] ss:$52 sps:$4 sm:$0xff]  }
  0x2e   :  { %1368 = vmatprep.subr.bf16.mxu1 %v1493_v50 }
  0x2f   :  { %1347 = vmatpush3.bf16.msra.mxu0 %v1492_v49  ;;  %v1183_v49 = vld [vmem:[%s1924_s2] ss:$0 sm:$0xff] }
  0x30   :  { %1348 = vmatprep.subr.bf16.mxu0 %v1495_v52 }
  0x31   :  { %1369 = vmatpush3.bf16.msra.mxu1 %v1494_v51 }
  0x32   :  { %1370 = vmatprep.subr.bf16.mxu1 %v1497_v54 }
  0x33   :  { %1349 = vmatpush3.bf16.msra.mxu0 %v1496_v53 }
  0x34   :  { %1350 = vmatprep.subr.bf16.mxu0 %v1499_v56 }
  0x35   :  { %1371 = vmatpush3.bf16.msra.mxu1 %v1498_v55 }
  0x36   :  { %1372 = vmatprep.subr.bf16.mxu1 %v1501_v58 }
  0x37   :  { %1351 = vmatpush3.bf16.msra.mxu0 %v1500_v57 }
  0x38   :  { %1352 = vmatprep.subr.bf16.mxu0 %v1503_v60 }
  0x39   :  { %1373 = vmatpush3.bf16.msra.mxu1 %v1502_v59 }
  0x3a   :  { %1374 = vmatprep.subr.bf16.mxu1 %v1505_v62 }
  0x3b   :  { %1353 = vmatpush3.bf16.msra.mxu0 %v1504_v61 }
  0x3c   :  { %1354 = vmatprep.subr.bf16.mxu0 %v1507_v0 }
  0x3d   :  { %1375 = vmatpush3.bf16.msra.mxu1 %v1506_v63 }
  0x3e   :  { %1376 = vmatprep.subr.bf16.mxu1 %v1509_v2 }
  0x3f   :  { %1355 = vmatpush3.bf16.msra.mxu0 %v1508_v1 }
  0x40   :  { %1384 = vmatprep.subr.bf16.mxu0 %v1514_v6 }
  0x41   :  { %1377 = vmatpush3.bf16.msra.mxu1 %v1510_v3 }
  0x42   :  { %1004 = vmatmul.mubr.bf16.vlgmr.msra.gmra.mrb[4].mxu0 %v1511_v4  ;;  %1406 = vmatprep.subr.bf16.mxu1 %v1519_v10 }
  0x43   :  { %1385 = vmatpush3.bf16.msra.mxu0 %v1518_v9  ;;  %1085 = vmatprep.mubr.bf16.mxu0 %v1551_v41 }
  0x44   :  { %1045 = vmatmul.mubr.bf16.vlgmr.msra.gmra.mrb[4].mxu1 %v1515_v7  ;;  %1386 = vmatprep.subr.bf16.mxu0 %v1521_v12 }
  0x45   :  { %1407 = vmatpush3.bf16.msra.mxu1 %v1520_v11  ;;  %1126 = vmatprep.mubr.bf16.mxu1 %v1554_v44 }
  0x46   :  { %1408 = vmatprep.subr.bf16.mxu1 %v1523_v14 }
  0x47   :  { %1387 = vmatpush3.bf16.msra.mxu0 %v1522_v13 }
  0x48   :  { %1388 = vmatprep.subr.bf16.mxu0 %v1525_v16 }
  0x49   :  { %1409 = vmatpush3.bf16.msra.mxu1 %v1524_v15 }
  0x4a   :  { %1410 = vmatprep.subr.bf16.mxu1 %v1527_v18 }
  0x4b   :  { %1389 = vmatpush3.bf16.msra.mxu0 %v1526_v17 }
  0x4c   :  { %1390 = vmatprep.subr.bf16.mxu0 %v1529_v20 }
  0x4d   :  { %1411 = vmatpush3.bf16.msra.mxu1 %v1528_v19 }
  0x4e   :  { %1412 = vmatprep.subr.bf16.mxu1 %v1531_v22 }
  0x4f   :  { %1391 = vmatpush3.bf16.msra.mxu0 %v1530_v21 }
  0x50   :  { %1392 = vmatprep.subr.bf16.mxu0 %v1533_v24 }
  0x51   :  { %1413 = vmatpush3.bf16.msra.mxu1 %v1532_v23 }
  0x52   :  { %1414 = vmatprep.subr.bf16.mxu1 %v1535_v26 }
  0x53   :  { %1393 = vmatpush3.bf16.msra.mxu0 %v1534_v25 }
  0x54   :  { %1394 = vmatprep.subr.bf16.mxu0 %v1537_v28 }
  0x55   :  { %1415 = vmatpush3.bf16.msra.mxu1 %v1536_v27 }
  0x56   :  { %1416 = vmatprep.subr.bf16.mxu1 %v1539_v30 }
  0x57   :  { %1395 = vmatpush3.bf16.msra.mxu0 %v1538_v29 }
  0x58   :  { %1396 = vmatprep.subr.bf16.mxu0 %v1541_v32 }
  0x59   :  { %1417 = vmatpush3.bf16.msra.mxu1 %v1540_v31 }
  0x5a   :  { %1418 = vmatprep.subr.bf16.mxu1 %v1543_v34 }
  0x5b   :  { %1397 = vmatpush3.bf16.msra.mxu0 %v1542_v33 }
  0x5c   :  { %1398 = vmatprep.subr.bf16.mxu0 %v1545_v36 }
  0x5d   :  { %1419 = vmatpush3.bf16.msra.mxu1 %v1544_v35 }
  0x5e   :  { %1420 = vmatprep.subr.bf16.mxu1 %v1547_v38 }
  0x5f   :  { %1399 = vmatpush3.bf16.msra.mxu0 %v1546_v37 }
  0x60   :  { %1431 = vmatprep.subr.bf16.mxu0 %v1558_v42 }
  0x61   :  { %1421 = vmatpush3.bf16.msra.mxu1 %v1548_v39 }
  0x62   :  { %1086 = vmatmul.mubr.bf16.vlgmr.msra.gmra.mrb[8].mxu0 %v1549_v40 }
  0x63   :  { %1432 = vmatpush3.bf16.msra.mxu0 %v1555_v45  ;;  %1435 = vmatprep.mubr.msk.bf16.mxu0 %vm1559_vm0, %v1558_v42 }
  0x64   :  { %1127 = vmatmul.mubr.bf16.vlgmr.msra.gmra.mrb[8].mxu1 %v1552_v43  ;;  %1433 = vmatprep.subr.bf16.mxu0 %v1558_v42 }
  0x67   :  { %1434 = vmatpush3.bf16.msra.mxu0 %v1556_v46 }
  0x6a   :  { %1436 = vmatmul.mubr.msk.bf16.vlgmr.msra.gmra.mrb[12].mxu0 %vm885_vm1, %v1557_v47 }
  0xf5   :  { %v1312_v48 = vpop.f32.mrb[0].mxu0 }
  0xf6   :  { %v1313_v50 = vpop.f32.mrb[1].mxu0 }
  0xf7   :  { %v1314_v51 = vadd.f32 %v1313_v50, %v1312_v48  ;;  %v1315_v52 = vpop.f32.mrb[2].mxu0  ;;  %v1334_v53 = vpop.f32.mrb[0].mxu1 }
  0xf8   :  { %v1316_v54 = vpop.f32.mrb[3].mxu0  ;;  %v1335_v55 = vpop.f32.mrb[1].mxu1 }
  0xf9   :  { %v924_v56 = vadd.f32 %v1314_v51, %v1183_v49  ;;  %v1317_v57 = vadd.f32 %v1316_v54, %v1315_v52  ;;  %v1336_v58 = vadd.f32 %v1335_v55, %v1334_v53  ;;  %v1337_v59 = vpop.f32.mrb[2].mxu1 }
  0xfa   :  { %v1338_v60 = vpop.f32.mrb[3].mxu1 }
  0xfb   :  { %v927_v61 = vadd.f32 %v1317_v57, %v1183_v49  ;;  %v965_v62 = vadd.f32 %v1336_v58, %v924_v56  ;;  %v1339_v63 = vadd.f32 %v1338_v60, %v1337_v59 }
  0xfd   :  { %v968_v0 = vadd.f32 %v1339_v63, %v927_v61 }
 0x115   :  { %v1356_v1 = vpop.f32.mrb[4].mxu0 }
 0x116   :  { %v1357_v2 = vpop.f32.mrb[5].mxu0 }
 0x117   :  { %v1358_v3 = vadd.f32 %v1357_v2, %v1356_v1  ;;  %v1359_v4 = vpop.f32.mrb[6].mxu0  ;;  %v1378_v5 = vpop.f32.mrb[4].mxu1 }
 0x118   :  { %v1360_v6 = vpop.f32.mrb[7].mxu0  ;;  %v1379_v9 = vpop.f32.mrb[5].mxu1 }
 0x119   :  { %v1006_v7 = vadd.f32 %v1358_v3, %v965_v62  ;;  %v1361_v8 = vadd.f32 %v1360_v6, %v1359_v4  ;;  %v1380_v10 = vadd.f32 %v1379_v9, %v1378_v5  ;;  %v1381_v11 = vpop.f32.mrb[6].mxu1 }
 0x11a   :  { %v1382_v13 = vpop.f32.mrb[7].mxu1 }
 0x11b   :  { %v1009_v12 = vadd.f32 %v1361_v8, %v968_v0  ;;  %v1047_v14 = vadd.f32 %v1380_v10, %v1006_v7  ;;  %v1383_v15 = vadd.f32 %v1382_v13, %v1381_v11 }
 0x11d   :  { %v1050_v16 = vadd.f32 %v1383_v15, %v1009_v12 }
 0x135   :  { %v1400_v17 = vpop.f32.mrb[8].mxu0 }
 0x136   :  { %v1401_v18 = vpop.f32.mrb[9].mxu0 }
 0x137   :  { %v1422_v19 = vpop.f32.mrb[8].mxu1  ;;  %v1402_v20 = vadd.f32 %v1401_v18, %v1400_v17  ;;  %v1403_v21 = vpop.f32.mrb[10].mxu0 }
 0x138   :  { %v1423_v22 = vpop.f32.mrb[9].mxu1  ;;  %v1404_v24 = vpop.f32.mrb[11].mxu0 }
 0x139   :  { %v1424_v23 = vadd.f32 %v1423_v22, %v1422_v19  ;;  %v1425_v25 = vpop.f32.mrb[10].mxu1  ;;  %v1088_v26 = vadd.f32 %v1402_v20, %v1047_v14  ;;  %v1405_v27 = vadd.f32 %v1404_v24, %v1403_v21 }
 0x13a   :  { %v1426_v28 = vpop.f32.mrb[11].mxu1 }
 0x13b   :  { %v1427_v29 = vadd.f32 %v1426_v28, %v1425_v25  ;;  %v1091_v30 = vadd.f32 %v1405_v27, %v1050_v16  ;;  %v1129_v31 = vadd.f32 %v1424_v23, %v1088_v26 }
 0x13d   :  { %v1169_v32 = vpop.f32.mrb[12].mxu0  ;;  %v1132_v33 = vadd.f32 %v1427_v29, %v1091_v30 }
 0x13e   :  { %v1170_v34 = vadd.f32 %v1169_v32, %v1129_v31  ;;  %v1437_v35 = vpop.f32.mrb[13].mxu0 }
 0x13f   :  { %v1172_v36 = vpop.f32.mrb[14].mxu0 }
 0x140   :  { %1177 = vst.msk [vmem:[%s1925_s3] sm:$0xff] %vm1176_vm2, %v1170_v34  ;;  %v1173_v37 = vadd.f32 %v1172_v36, %v1132_v33  ;;  %v1438_v38 = vpop.f32.mrb[15].mxu0 }
 0x142   :  { %1178 = vst.msk [vmem:[%s1925_s3 + $0x8] sm:$0xff] %vm1176_vm2, %v1173_v37 }

</bundles_post_ra>
